<compile_context>
chip_gen: v6e
topology: v6e:2x2x1
jax: 0.10.0
libtpu: 0.0.40
codegen_flags: <defaults>
</compile_context>

<pallas_src>
import functools

import jax
import jax.numpy as jnp
from jax.experimental import pallas as pl
from jax.experimental.pallas import tpu as pltpu


def _round_up(x, m):
    return ((x + m - 1) // m) * m


# ---------------------------------------------------------------------------
# Kernel A: fused GRU step + Luong 'general' attention (online softmax over S
# chunks) + concat Linear + tanh.  Grid = (S_pad // CHUNK_S,), axis "arbitrary".
# ---------------------------------------------------------------------------
def gru_attn_kernel(
    emb_ref,      # (B_pad, H_pad)            embedded input token (eval-mode dropout = id)
    h0_ref,       # (B_pad, H_pad)            previous hidden state (layer 0)
    enc_ref,      # (B_pad, CHUNK_S, H_pad)   encoder outputs chunk, bf16, zero-padded
    w_ih_ref,     # (H_pad, 3*H_pad)          fused GRU input weights (r|z|n), 128-aligned gates
    b_ih_ref,     # (1, 3*H_pad)
    w_hh_ref,     # (H_pad, 3*H_pad)          fused GRU hidden weights
    b_hh_ref,     # (1, 3*H_pad)
    w_attn_ref,   # (H_pad, H_pad)            Attn 'general' weight (used as h_new @ W_a)
    w_cat_h_ref,  # (H_pad, H_pad)            concat Linear weight^T, half applied to h_new
    w_cat_c_ref,  # (H_pad, H_pad)            concat Linear weight^T, half applied to context
    b_cat_ref,    # (1, H_pad)
    concat_ref,   # (B_pad, H_pad)   out: tanh(concat Linear)
    hnew_ref,     # (B_pad, H_pad)   out: new hidden state (== rnn_output)
    attn_ref,     # (B_pad, S_pad)   out: attention weights, lane-dense over S
    scores_sc,    # (num_chunks, B_pad, CHUNK_S) VMEM scratch: raw scores
    m_sc,         # (B_pad, 1)  running max
    l_sc,         # (B_pad, 1)  running exp-sum
    ctx_sc,       # (B_pad, H_pad) running (unnormalized) context
    hnew_sc,      # (B_pad, H_pad) GRU output, computed once at chunk 0
    g_sc,         # (B_pad, H_pad) attention query h_new @ W_a, computed once
    *,
    seq_len: int,
):
    k = pl.program_id(0)
    nk = pl.num_programs(0)
    Hp = w_attn_ref.shape[0]
    chunk_s = enc_ref.shape[1]
    s_pad = attn_ref.shape[1]

    # ---- chunk 0: GRU step (2 fused matmuls) + attention query + state init ----
    @pl.when(k == 0)
    def _():
        x = emb_ref[...]
        h = h0_ref[...]
        gi = jnp.dot(x, w_ih_ref[...], preferred_element_type=jnp.float32) + b_ih_ref[...]
        gh = jnp.dot(h, w_hh_ref[...], preferred_element_type=jnp.float32) + b_hh_ref[...]
        # PyTorch gate order (r, z, n); gate boundaries are 128-lane aligned (Hp % 128 == 0).
        r = jax.nn.sigmoid(gi[:, :Hp] + gh[:, :Hp])
        z = jax.nn.sigmoid(gi[:, Hp:2 * Hp] + gh[:, Hp:2 * Hp])
        n = jnp.tanh(gi[:, 2 * Hp:] + r * gh[:, 2 * Hp:])
        h_new = (1.0 - z) * n + z * h
        hnew_sc[...] = h_new
        # score(b,s) = h_new[b] . (W_a enc[b,s]); the b_attn term is constant over s and
        # cancels in the softmax, so it is dropped (dead work, mathematically exact).
        g_sc[...] = jnp.dot(h_new, w_attn_ref[...], preferred_element_type=jnp.float32)
        m_sc[...] = jnp.full_like(m_sc, -1e30)
        l_sc[...] = jnp.zeros_like(l_sc)
        ctx_sc[...] = jnp.zeros_like(ctx_sc)

    # ---- every chunk: scores + online softmax + context accumulation ----
    enc = enc_ref[...].astype(jnp.float32)                       # bf16 stream, f32 math
    g = g_sc[...]
    s_chunk = jnp.sum(enc * g[:, None, :], axis=-1)              # (B_pad, CHUNK_S)
    if seq_len < s_pad:  # static check: mask the zero-padded sequence positions
        pos = jax.lax.broadcasted_iota(jnp.int32, s_chunk.shape, 1) + k * chunk_s
        s_chunk = jnp.where(pos < seq_len, s_chunk, -1e30)
    scores_sc[k] = s_chunk                                       # raw scores, per-chunk slot

    m_prev = m_sc[...]
    m_new = jnp.maximum(m_prev, jnp.max(s_chunk, axis=-1, keepdims=True))
    alpha = jnp.exp(m_prev - m_new)
    p = jnp.exp(s_chunk - m_new)
    l_sc[...] = alpha * l_sc[...] + jnp.sum(p, axis=-1, keepdims=True)
    ctx_sc[...] = alpha * ctx_sc[...] + jnp.sum(p[:, :, None] * enc, axis=1)
    m_sc[...] = m_new

    # ---- last chunk: normalize, emit attention weights, concat Linear + tanh ----
    @pl.when(k == nk - 1)
    def _():
        inv_l = pl.reciprocal(l_sc[...], approx=True)
        m_fin = m_sc[...]
        for c in range(scores_sc.shape[0]):                      # static trip count
            attn_ref[:, c * chunk_s:(c + 1) * chunk_s] = (
                jnp.exp(scores_sc[c] - m_fin) * inv_l)
        context = ctx_sc[...] * inv_l
        h_new = hnew_sc[...]
        concat_ref[...] = jnp.tanh(
            jnp.dot(h_new, w_cat_h_ref[...], preferred_element_type=jnp.float32)
            + jnp.dot(context, w_cat_c_ref[...], preferred_element_type=jnp.float32)
            + b_cat_ref[...])
        hnew_ref[...] = h_new


# ---------------------------------------------------------------------------
# Kernel B: vocab projection, tiled over V; w_out streamed as int8 + per-column
# scales (dequant after the f32-accumulated matmul).
# ---------------------------------------------------------------------------
def vocab_proj_kernel(concat_ref, w_out_ref, scale_ref, b_out_ref, logits_ref):
    x = concat_ref[...]                                  # (B_pad, H_pad) f32 (no per-tile cast)
    w = w_out_ref[...].astype(jnp.float32)               # int8 tile -> f32 on the VPU
    acc = jnp.dot(x, w, preferred_element_type=jnp.float32)
    logits_ref[...] = acc * scale_ref[...] + b_out_ref[...]


# ---------------------------------------------------------------------------
# One-time preparation: padding / transposes / gate fusion / int8 quantization
# ---------------------------------------------------------------------------
def _pick_tile_v(V, H_pad, max_tile_v=2048, budget_bytes=8 << 20):
    tile = min(_round_up(max_tile_v, 128), _round_up(V, 128))
    while tile > 128 and 3 * H_pad * tile > budget_bytes:   # triple-buffered int8 tile
        tile -= 128
    return max(tile, 128)


def _pick_chunk_s(S_pad, B_pad, H_pad, max_chunk_s, budget_bytes=4 << 20):
    best, c = 128, 128
    cap = min(S_pad, _round_up(max_chunk_s, 128))
    while c <= cap:
        if S_pad % c == 0 and 2 * B_pad * c * H_pad * 2 <= budget_bytes:
            best = c
        c += 128
    return best


def prepare_params(params, max_tile_v=2048):
    """Once per model: pad to (8,128)-friendly shapes, fuse GRU gates, quantize w_out."""
    H = params["embedding"].shape[1]
    V = params["w_out"].shape[0]
    H_pad = _round_up(H, 128)

    def fuse_gates(w, b):   # (3H, H),(3H,) -> (H_pad, 3*H_pad),(1, 3*H_pad), 128-aligned gates
        w_f = jnp.zeros((H_pad, 3 * H_pad), jnp.float32)
        b_f = jnp.zeros((1, 3 * H_pad), jnp.float32)
        for g in range(3):
            w_f = w_f.at[:H, g * H_pad:g * H_pad + H].set(w[g * H:(g + 1) * H, :].T)
            b_f = b_f.at[0, g * H_pad:g * H_pad + H].set(b[g * H:(g + 1) * H])
        return w_f, b_f

    def pad_hh(w):          # (H, H) -> (H_pad, H_pad)
        return jnp.zeros((H_pad, H_pad), jnp.float32).at[:H, :H].set(w)

    w_ih_f, b_ih_f = fuse_gates(params["w_ih"].astype(jnp.float32),
                                params["b_ih"].astype(jnp.float32))
    w_hh_f, b_hh_f = fuse_gates(params["w_hh"].astype(jnp.float32),
                                params["b_hh"].astype(jnp.float32))

    TILE_V = _pick_tile_v(V, H_pad, max_tile_v)
    V_pad = _round_up(V, TILE_V)

    # int8 per-column-scaled vocab projection weights (streamed; dequant in-kernel).
    w_out_t = jnp.zeros((H_pad, V_pad), jnp.float32).at[:H, :V].set(
        params["w_out"].astype(jnp.float32).T)
    absmax = jnp.max(jnp.abs(w_out_t), axis=0)
    scale = jnp.where(absmax > 0, absmax / 127.0, 1.0)
    w_out_q = jnp.clip(jnp.round(w_out_t / scale[None, :]), -127.0, 127.0).astype(jnp.int8)
    b_out = jnp.zeros((1, V_pad), jnp.float32).at[0, :V].set(params["b_out"])

    w_cat = params["w_cat"].astype(jnp.float32)
    return dict(
        H=H, H_pad=H_pad, V=V, V_pad=V_pad, TILE_V=TILE_V,
        embedding=jnp.zeros((V, H_pad), jnp.float32).at[:, :H].set(params["embedding"]),
        w_ih=w_ih_f, b_ih=b_ih_f, w_hh=w_hh_f, b_hh=b_hh_f,
        w_attn=pad_hh(params["w_attn"]),
        w_cat_h=pad_hh(w_cat[:, :H].T),
        w_cat_c=pad_hh(w_cat[:, H:].T),
        b_cat=jnp.zeros((1, H_pad), jnp.float32).at[0, :H].set(params["b_cat"]),
        w_out_q=w_out_q,
        w_out_scale=scale.reshape(1, V_pad).astype(jnp.float32),
        b_out=b_out,
    )


def prepare_encoder(encoder_outputs, prep, max_chunk_s=512):
    """Once per sequence: (S,B,H) -> (B_pad, S_pad, H_pad) bf16, and pick the S chunk."""
    S, B, H = encoder_outputs.shape
    H_pad = prep["H_pad"]
    B_pad = _round_up(B, 8)
    S_pad = _round_up(max(S, 128), 128)
    chunk_s = _pick_chunk_s(S_pad, B_pad, H_pad, max_chunk_s)
    enc = jnp.transpose(encoder_outputs, (1, 0, 2)).astype(jnp.float32)
    enc = jnp.pad(enc, ((0, B_pad - B), (0, S_pad - S), (0, H_pad - H)))
    return enc.astype(jnp.bfloat16), S, chunk_s


# ---------------------------------------------------------------------------
# Forward pass (one decode step)
# ---------------------------------------------------------------------------
def luong_attn_decoder_forward(input_seq, last_hidden, enc_prepped, seq_len, chunk_s, prep):
    """input_seq: (B,) int32; last_hidden: (1,B,H); enc_prepped: (B_pad,S_pad,H_pad) bf16."""
    B = input_seq.shape[0]
    H, H_pad = prep["H"], prep["H_pad"]
    V, V_pad, TILE_V = prep["V"], prep["V_pad"], prep["TILE_V"]
    B_pad, S_pad, _ = enc_prepped.shape
    num_chunks = S_pad // chunk_s

    # Embedding lookup (gather) — plain-JAX glue outside the kernel.
    # TODO(synk): embedding_dropout / GRU dropout are identity (eval-mode semantics).
    emb = prep["embedding"][input_seq]                                    # (B, H_pad)
    emb = jnp.pad(emb, ((0, B_pad - B), (0, 0)))
    h0 = jnp.pad(last_hidden[0].astype(jnp.float32),
                 ((0, B_pad - B), (0, H_pad - H)))

    # ----- Kernel A -----
    a_bytes = (2 * B_pad * chunk_s * H_pad * 2                 # enc chunk, double-buffered bf16
               + (9 * H_pad * H_pad + 7 * H_pad) * 4           # fused GRU + attn/cat weights
               + 2 * B_pad * H_pad * 4                         # emb, h0
               + num_chunks * B_pad * chunk_s * 4              # scores scratch
               + 4 * B_pad * H_pad * 4                         # ctx/hnew/g scratch + slack
               + 2 * (2 * B_pad * H_pad + B_pad * S_pad) * 4)  # outputs
    vmem_a = min(100 * (1 << 20), max(32 * (1 << 20), 2 * a_bytes))

    res_spec = pl.BlockSpec((B_pad, H_pad), lambda k: (0, 0))   # resident across S chunks
    concat_out, h_new_pad, attn_pad = pl.pallas_call(
        functools.partial(gru_attn_kernel, seq_len=seq_len),
        out_shape=(
            jax.ShapeDtypeStruct((B_pad, H_pad), jnp.float32),   # concat activations
            jax.ShapeDtypeStruct((B_pad, H_pad), jnp.float32),   # new hidden
            jax.ShapeDtypeStruct((B_pad, S_pad), jnp.float32),   # attention weights
        ),
        grid=(num_chunks,),
        in_specs=[
            res_spec,                                                    # emb
            res_spec,                                                    # h0
            pl.BlockSpec((B_pad, chunk_s, H_pad), lambda k: (0, k, 0)),  # enc (streamed)
            pl.BlockSpec((H_pad, 3 * H_pad), lambda k: (0, 0)),          # w_ih
            pl.BlockSpec((1, 3 * H_pad), lambda k: (0, 0)),              # b_ih
            pl.BlockSpec((H_pad, 3 * H_pad), lambda k: (0, 0)),          # w_hh
            pl.BlockSpec((1, 3 * H_pad), lambda k: (0, 0)),              # b_hh
            pl.BlockSpec((H_pad, H_pad), lambda k: (0, 0)),              # w_attn
            pl.BlockSpec((H_pad, H_pad), lambda k: (0, 0)),              # w_cat_h
            pl.BlockSpec((H_pad, H_pad), lambda k: (0, 0)),              # w_cat_c
            pl.BlockSpec((1, H_pad), lambda k: (0, 0)),                  # b_cat
        ],
        out_specs=(res_spec, res_spec,
                   pl.BlockSpec((B_pad, S_pad), lambda k: (0, 0))),
        scratch_shapes=[
            pltpu.VMEM((num_chunks, B_pad, chunk_s), jnp.float32),   # raw scores
            pltpu.VMEM((B_pad, 1), jnp.float32),                     # running max
            pltpu.VMEM((B_pad, 1), jnp.float32),                     # running exp-sum
            pltpu.VMEM((B_pad, H_pad), jnp.float32),                 # running context
            pltpu.VMEM((B_pad, H_pad), jnp.float32),                 # h_new
            pltpu.VMEM((B_pad, H_pad), jnp.float32),                 # attention query g
        ],
        compiler_params=pltpu.CompilerParams(
            dimension_semantics=("arbitrary",), vmem_limit_bytes=vmem_a),
    )(emb, h0, enc_prepped,
      prep["w_ih"], prep["b_ih"], prep["w_hh"], prep["b_hh"],
      prep["w_attn"], prep["w_cat_h"], prep["w_cat_c"], prep["b_cat"])

    # ----- Kernel B: vocab projection (HBM-streaming-bound, "parallel" over V) -----
    num_tiles = V_pad // TILE_V
    b_bytes = (3 * H_pad * TILE_V + B_pad * H_pad * 4
               + 2 * B_pad * TILE_V * 4 + 4 * TILE_V * 4)
    vmem_b = min(100 * (1 << 20), max(32 * (1 << 20), 2 * b_bytes))
    cost = pl.CostEstimate(
        flops=2 * B_pad * H_pad * V_pad,
        transcendentals=0,
        bytes_accessed=H_pad * V_pad + B_pad * H_pad * 4 + (B_pad + 2) * V_pad * 4)

    def run_proj(w_spec):
        return pl.pallas_call(
            vocab_proj_kernel,
            out_shape=jax.ShapeDtypeStruct((B_pad, V_pad), jnp.float32),
            grid=(num_tiles,),
            in_specs=[
                pl.BlockSpec((B_pad, H_pad), lambda j: (0, 0)),
                w_spec,
                pl.BlockSpec((1, TILE_V), lambda j: (0, j)),
                pl.BlockSpec((1, TILE_V), lambda j: (0, j)),
            ],
            out_specs=pl.BlockSpec((B_pad, TILE_V), lambda j: (0, j)),
            compiler_params=pltpu.CompilerParams(
                dimension_semantics=("parallel",), vmem_limit_bytes=vmem_b),
            cost_estimate=cost,
        )(concat_out, prep["w_out_q"], prep["w_out_scale"], prep["b_out"])

    plain_spec = pl.BlockSpec((H_pad, TILE_V), lambda j: (0, j))
    logits_pad = None
    if num_tiles >= 3:
        try:   # deeper pipelining of the weight stream; fall back safely if unsupported
            buf_spec = pl.BlockSpec((H_pad, TILE_V), lambda j: (0, j),
                                    pipeline_mode=pl.Buffered(3))
            logits_pad = run_proj(buf_spec)
        except Exception:
            logits_pad = None
    if logits_pad is None:
        logits_pad = run_proj(plain_spec)

    logits = logits_pad[:B, :V]                       # (B, V)
    hidden = h_new_pad[:B, :H][None, :, :]            # (1, B, H)
    attn_weights = attn_pad[:B, :S_pad][:, :seq_len][:, None, :]   # (B, 1, S)
    return logits, hidden, attn_weights


# ---------------------------------------------------------------------------
# Pure-JAX reference mirroring the PyTorch forward (eval mode)
# ---------------------------------------------------------------------------
def _reference_forward(input_seq, last_hidden, encoder_outputs, params):
    H = params["embedding"].shape[1]
    emb = params["embedding"][input_seq]
    h = last_hidden[0]
    gi = emb @ params["w_ih"].T + params["b_ih"]
    gh = h @ params["w_hh"].T + params["b_hh"]
    r = jax.nn.sigmoid(gi[:, :H] + gh[:, :H])
    z = jax.nn.sigmoid(gi[:, H:2 * H] + gh[:, H:2 * H])
    n = jnp.tanh(gi[:, 2 * H:] + r * gh[:, 2 * H:])
    h_new = (1.0 - z) * n + z * h
    proj = jnp.einsum("sbh,kh->sbk", encoder_outputs, params["w_attn"]) + params["b_attn"]
    scores = jnp.einsum("bh,sbh->bs", h_new, proj)
    attn = jax.nn.softmax(scores, axis=-1)[:, None, :]          # (B, 1, S)
    context = jnp.einsum("bs,sbh->bh", attn[:, 0, :], encoder_outputs)
    cat = jnp.concatenate([h_new, context], axis=1)
    co = jnp.tanh(cat @ params["w_cat"].T + params["b_cat"])
    logits = co @ params["w_out"].T + params["b_out"]
    return logits, h_new[None], attn


def _run_case(key, H, V, S, B, max_tile_v, max_chunk_s, tol):
    ks = jax.random.split(key, 16)

    def u(k, shape, scale=0.1):
        return (jax.random.uniform(k, shape, jnp.float32) - 0.5) * 2.0 * scale

    params = dict(
        embedding=u(ks[0], (V, H)),
        w_ih=u(ks[1], (3 * H, H)), b_ih=u(ks[2], (3 * H,)),
        w_hh=u(ks[3], (3 * H, H)), b_hh=u(ks[4], (3 * H,)),
        w_attn=u(ks[5], (H, H)), b_attn=u(ks[6], (H,)),
        w_cat=u(ks[7], (H, 2 * H)), b_cat=u(ks[8], (H,)),
        w_out=u(ks[9], (V, H)), b_out=u(ks[10], (V,)),
    )
    input_seq = jax.random.randint(ks[11], (B,), 0, V, dtype=jnp.int32)
    last_hidden = u(ks[12], (1, B, H), 1.0)
    encoder_outputs = u(ks[13], (S, B, H), 1.0)

    prep = prepare_params(params, max_tile_v=max_tile_v)         # once per model
    enc_prepped, seq_len, chunk_s = prepare_encoder(encoder_outputs, prep,
                                                    max_chunk_s=max_chunk_s)  # once per sequence

    out = luong_attn_decoder_forward(input_seq, last_hidden, enc_prepped,
                                     seq_len, chunk_s, prep)
    out = jax.block_until_ready(out)

    ref = _reference_forward(input_seq, last_hidden, encoder_outputs, params)
    for got, want in zip(out, ref):
        assert got.shape == want.shape, (got.shape, want.shape)
        # int8 w_out streaming + bf16 enc + approx reciprocal -> relaxed tolerance
        # (fine for greedy decoding; see notes).
        assert jnp.allclose(got, want, atol=tol, rtol=tol), (
            float(jnp.max(jnp.abs(got - want))))


if __name__ == "__main__":
    key = jax.random.PRNGKey(0)
    k1, k2 = jax.random.split(key)
    # Small shapes matching the module (batch=4, hidden=32, vocab=16, seq=8).
    _run_case(k1, H=32, V=16, S=8, B=4, max_tile_v=2048, max_chunk_s=512, tol=2e-2)
    # Second config exercising the multi-chunk S pipeline and the multi-tile vocab grid.
    _run_case(k2, H=96, V=600, S=300, B=5, max_tile_v=256, max_chunk_s=128, tol=2e-2)
    print("KERNEL_OK")
</pallas_src>

<mosaic_0001>
module attributes {stable_mosaic.version = 11 : i64} {
  func.func @gru_attn_kernel(%arg0: i32, %arg1: memref<8x128xf32, #tpu.memory_space<vmem>>, %arg2: memref<8x128xf32, #tpu.memory_space<vmem>>, %arg3: memref<8x128x128xbf16, #tpu.memory_space<vmem>>, %arg4: memref<128x384xf32, #tpu.memory_space<vmem>>, %arg5: memref<1x384xf32, #tpu.memory_space<vmem>>, %arg6: memref<128x384xf32, #tpu.memory_space<vmem>>, %arg7: memref<1x384xf32, #tpu.memory_space<vmem>>, %arg8: memref<128x128xf32, #tpu.memory_space<vmem>>, %arg9: memref<128x128xf32, #tpu.memory_space<vmem>>, %arg10: memref<128x128xf32, #tpu.memory_space<vmem>>, %arg11: memref<1x128xf32, #tpu.memory_space<vmem>>, %arg12: memref<8x128xf32, #tpu.memory_space<vmem>>, %arg13: memref<8x128xf32, #tpu.memory_space<vmem>>, %arg14: memref<8x128xf32, #tpu.memory_space<vmem>>, %arg15: memref<1x8x128xf32, #tpu.memory_space<vmem>>, %arg16: memref<8x1xf32, #tpu.memory_space<vmem>>, %arg17: memref<8x1xf32, #tpu.memory_space<vmem>>, %arg18: memref<8x128xf32, #tpu.memory_space<vmem>>, %arg19: memref<8x128xf32, #tpu.memory_space<vmem>>, %arg20: memref<8x128xf32, #tpu.memory_space<vmem>>) attributes {dimension_semantics = [#tpu.dimension_semantics<arbitrary>], iteration_bounds = array<i64: 1>, scalar_prefetch = 0 : i64, scratch_operands = 6 : i64, tpu.core_type = #tpu.core_type<tc>, window_params = [{pipeline_mode = #tpu.pipeline_mode<synchronous>, transform_indices = @transform_0, window_bounds = array<i64: 8, 128>}, {pipeline_mode = #tpu.pipeline_mode<synchronous>, transform_indices = @transform_1, window_bounds = array<i64: 8, 128>}, {transform_indices = @transform_2, window_bounds = array<i64: 8, 128, 128>}, {pipeline_mode = #tpu.pipeline_mode<synchronous>, transform_indices = @transform_3, window_bounds = array<i64: 128, 384>}, {pipeline_mode = #tpu.pipeline_mode<synchronous>, transform_indices = @transform_4, window_bounds = array<i64: 1, 384>}, {pipeline_mode = #tpu.pipeline_mode<synchronous>, transform_indices = @transform_5, window_bounds = array<i64: 128, 384>}, {pipeline_mode = #tpu.pipeline_mode<synchronous>, transform_indices = @transform_6, window_bounds = array<i64: 1, 384>}, {pipeline_mode = #tpu.pipeline_mode<synchronous>, transform_indices = @transform_7, window_bounds = array<i64: 128, 128>}, {pipeline_mode = #tpu.pipeline_mode<synchronous>, transform_indices = @transform_8, window_bounds = array<i64: 128, 128>}, {pipeline_mode = #tpu.pipeline_mode<synchronous>, transform_indices = @transform_9, window_bounds = array<i64: 128, 128>}, {pipeline_mode = #tpu.pipeline_mode<synchronous>, transform_indices = @transform_10, window_bounds = array<i64: 1, 128>}, {pipeline_mode = #tpu.pipeline_mode<synchronous>, transform_indices = @transform_11, window_bounds = array<i64: 8, 128>}, {pipeline_mode = #tpu.pipeline_mode<synchronous>, transform_indices = @transform_12, window_bounds = array<i64: 8, 128>}, {pipeline_mode = #tpu.pipeline_mode<synchronous>, transform_indices = @transform_13, window_bounds = array<i64: 8, 128>}]} {
    %c0_i32 = arith.constant 0 : i32
    %0 = arith.cmpi eq, %arg0, %c0_i32 : i32
    %1 = arith.extui %0 : i1 to i32
    %c0_i32_0 = arith.constant 0 : i32
    %2 = arith.cmpi ne, %1, %c0_i32_0 : i32
    scf.if %2 {
      %c0_25 = arith.constant 0 : index
      %c0_26 = arith.constant 0 : index
      %50 = vector.load %arg1[%c0_25, %c0_26] : memref<8x128xf32, #tpu.memory_space<vmem>>, vector<8x128xf32>
      %c0_27 = arith.constant 0 : index
      %c0_28 = arith.constant 0 : index
      %51 = vector.load %arg2[%c0_27, %c0_28] : memref<8x128xf32, #tpu.memory_space<vmem>>, vector<8x128xf32>
      %c0_29 = arith.constant 0 : index
      %c0_30 = arith.constant 0 : index
      %52 = vector.load %arg4[%c0_29, %c0_30] : memref<128x384xf32, #tpu.memory_space<vmem>>, vector<128x384xf32>
      %cst_31 = arith.constant dense<0.000000e+00> : vector<8x384xf32>
      %53 = tpu.matmul %50, %52, %cst_31 {dimension_numbers = #tpu.dot_dimension_numbers<[1], [0], [0], [1], [0, 0, 1, 1], [], []>} : vector<8x128xf32>, vector<128x384xf32>, vector<8x384xf32> -> vector<8x384xf32>
      %c0_32 = arith.constant 0 : index
      %c0_33 = arith.constant 0 : index
      %54 = vector.load %arg5[%c0_32, %c0_33] : memref<1x384xf32, #tpu.memory_space<vmem>>, vector<1x384xf32>
      %55 = vector.broadcast %54 : vector<1x384xf32> to vector<8x384xf32>
      %56 = arith.addf %53, %55 : vector<8x384xf32>
      %c0_34 = arith.constant 0 : index
      %c0_35 = arith.constant 0 : index
      %57 = vector.load %arg6[%c0_34, %c0_35] : memref<128x384xf32, #tpu.memory_space<vmem>>, vector<128x384xf32>
      %cst_36 = arith.constant dense<0.000000e+00> : vector<8x384xf32>
      %58 = tpu.matmul %51, %57, %cst_36 {dimension_numbers = #tpu.dot_dimension_numbers<[1], [0], [0], [1], [0, 0, 1, 1], [], []>} : vector<8x128xf32>, vector<128x384xf32>, vector<8x384xf32> -> vector<8x384xf32>
      %c0_37 = arith.constant 0 : index
      %c0_38 = arith.constant 0 : index
      %59 = vector.load %arg7[%c0_37, %c0_38] : memref<1x384xf32, #tpu.memory_space<vmem>>, vector<1x384xf32>
      %60 = vector.broadcast %59 : vector<1x384xf32> to vector<8x384xf32>
      %61 = arith.addf %58, %60 : vector<8x384xf32>
      %62 = vector.extract_strided_slice %56 {offsets = [0, 0], sizes = [8, 128], strides = [1, 1]} : vector<8x384xf32> to vector<8x128xf32>
      %63 = vector.extract_strided_slice %61 {offsets = [0, 0], sizes = [8, 128], strides = [1, 1]} : vector<8x384xf32> to vector<8x128xf32>
      %64 = arith.addf %62, %63 : vector<8x128xf32>
      %65 = arith.negf %64 : vector<8x128xf32>
      %66 = math.exp %65 : vector<8x128xf32>
      %cst_39 = arith.constant 1.000000e+00 : f32
      %67 = vector.broadcast %cst_39 : f32 to vector<8x128xf32>
      %68 = arith.addf %67, %66 : vector<8x128xf32>
      %69 = arith.divf %67, %68 : vector<8x128xf32>
      %70 = vector.extract_strided_slice %56 {offsets = [0, 128], sizes = [8, 128], strides = [1, 1]} : vector<8x384xf32> to vector<8x128xf32>
      %71 = vector.extract_strided_slice %61 {offsets = [0, 128], sizes = [8, 128], strides = [1, 1]} : vector<8x384xf32> to vector<8x128xf32>
      %72 = arith.addf %70, %71 : vector<8x128xf32>
      %73 = arith.negf %72 : vector<8x128xf32>
      %74 = math.exp %73 : vector<8x128xf32>
      %cst_40 = arith.constant 1.000000e+00 : f32
      %75 = vector.broadcast %cst_40 : f32 to vector<8x128xf32>
      %76 = arith.addf %75, %74 : vector<8x128xf32>
      %77 = arith.divf %75, %76 : vector<8x128xf32>
      %78 = vector.extract_strided_slice %56 {offsets = [0, 256], sizes = [8, 128], strides = [1, 1]} : vector<8x384xf32> to vector<8x128xf32>
      %79 = vector.extract_strided_slice %61 {offsets = [0, 256], sizes = [8, 128], strides = [1, 1]} : vector<8x384xf32> to vector<8x128xf32>
      %80 = arith.mulf %69, %79 : vector<8x128xf32>
      %81 = arith.addf %78, %80 : vector<8x128xf32>
      %82 = math.tanh %81 : vector<8x128xf32>
      %cst_41 = arith.constant 1.000000e+00 : f32
      %83 = vector.broadcast %cst_41 : f32 to vector<8x128xf32>
      %84 = arith.subf %83, %77 : vector<8x128xf32>
      %85 = arith.mulf %84, %82 : vector<8x128xf32>
      %86 = arith.mulf %77, %51 : vector<8x128xf32>
      %87 = arith.addf %85, %86 : vector<8x128xf32>
      %c0_42 = arith.constant 0 : index
      %c0_43 = arith.constant 0 : index
      %88 = vector.load %arg19[%c0_42, %c0_43] : memref<8x128xf32, #tpu.memory_space<vmem>>, vector<8x128xf32>
      tpu.vector_store %arg19[%c0_42, %c0_43], %87 {strides = array<i32>} : memref<8x128xf32, #tpu.memory_space<vmem>>, vector<8x128xf32>,
      %c0_44 = arith.constant 0 : index
      %c0_45 = arith.constant 0 : index
      %89 = vector.load %arg8[%c0_44, %c0_45] : memref<128x128xf32, #tpu.memory_space<vmem>>, vector<128x128xf32>
      %cst_46 = arith.constant dense<0.000000e+00> : vector<8x128xf32>
      %90 = tpu.matmul %87, %89, %cst_46 {dimension_numbers = #tpu.dot_dimension_numbers<[1], [0], [0], [1], [0, 0, 1, 1], [], []>} : vector<8x128xf32>, vector<128x128xf32>, vector<8x128xf32> -> vector<8x128xf32>
      %c0_47 = arith.constant 0 : index
      %c0_48 = arith.constant 0 : index
      %91 = vector.load %arg20[%c0_47, %c0_48] : memref<8x128xf32, #tpu.memory_space<vmem>>, vector<8x128xf32>
      tpu.vector_store %arg20[%c0_47, %c0_48], %90 {strides = array<i32>} : memref<8x128xf32, #tpu.memory_space<vmem>>, vector<8x128xf32>,
      %cst_49 = arith.constant -1.000000e+30 : f32
      %92 = vector.broadcast %cst_49 : f32 to vector<8x1xf32>
      %c0_50 = arith.constant 0 : index
      %c0_51 = arith.constant 0 : index
      %93 = vector.load %arg16[%c0_50, %c0_51] : memref<8x1xf32, #tpu.memory_space<vmem>>, vector<8x1xf32>
      tpu.vector_store %arg16[%c0_50, %c0_51], %92 {strides = array<i32>} : memref<8x1xf32, #tpu.memory_space<vmem>>, vector<8x1xf32>,
      %cst_52 = arith.constant 0.000000e+00 : f32
      %94 = vector.broadcast %cst_52 : f32 to vector<8x1xf32>
      %c0_53 = arith.constant 0 : index
      %c0_54 = arith.constant 0 : index
      %95 = vector.load %arg17[%c0_53, %c0_54] : memref<8x1xf32, #tpu.memory_space<vmem>>, vector<8x1xf32>
      tpu.vector_store %arg17[%c0_53, %c0_54], %94 {strides = array<i32>} : memref<8x1xf32, #tpu.memory_space<vmem>>, vector<8x1xf32>,
      %cst_55 = arith.constant 0.000000e+00 : f32
      %96 = vector.broadcast %cst_55 : f32 to vector<8x128xf32>
      %c0_56 = arith.constant 0 : index
      %c0_57 = arith.constant 0 : index
      %97 = vector.load %arg18[%c0_56, %c0_57] : memref<8x128xf32, #tpu.memory_space<vmem>>, vector<8x128xf32>
      tpu.vector_store %arg18[%c0_56, %c0_57], %96 {strides = array<i32>} : memref<8x128xf32, #tpu.memory_space<vmem>>, vector<8x128xf32>,
    } else {
    }
    %c0 = arith.constant 0 : index
    %c0_1 = arith.constant 0 : index
    %c0_2 = arith.constant 0 : index
    %3 = vector.load %arg3[%c0, %c0_1, %c0_2] : memref<8x128x128xbf16, #tpu.memory_space<vmem>>, vector<8x128x128xbf16>
    %4 = arith.extf %3 : vector<8x128x128xbf16> to vector<8x128x128xf32>
    %c0_3 = arith.constant 0 : index
    %c0_4 = arith.constant 0 : index
    %5 = vector.load %arg20[%c0_3, %c0_4] : memref<8x128xf32, #tpu.memory_space<vmem>>, vector<8x128xf32>
    %6 = vector.shape_cast %5 : vector<8x128xf32> to vector<8x1x128xf32>
    %7 = vector.broadcast %6 : vector<8x1x128xf32> to vector<8x128x128xf32>
    %8 = arith.mulf %4, %7 : vector<8x128x128xf32>
    %cst = arith.constant dense<0.000000e+00> : vector<8x128xf32>
    %9 = vector.multi_reduction <add>, %8, %cst [2] : vector<8x128x128xf32> to vector<8x128xf32>
    %10 = tpu.iota {dimensions = array<i32: 1>} : vector<8x128xi32>
    %c128_i32 = arith.constant 128 : i32
    %11 = arith.muli %arg0, %c128_i32 : i32
    %12 = vector.broadcast %11 : i32 to vector<8x128xi32>
    %13 = arith.addi %10, %12 : vector<8x128xi32>
    %c8_i32 = arith.constant 8 : i32
    %14 = vector.broadcast %c8_i32 : i32 to vector<8x128xi32>
    %15 = arith.cmpi slt, %13, %14 : vector<8x128xi32>
    %cst_5 = arith.constant -1.000000e+30 : f32
    %16 = vector.broadcast %cst_5 : f32 to vector<8x128xf32>
    %17 = arith.select %15, %9, %16 : vector<8x128xi1>, vector<8x128xf32>
    %18 = arith.index_cast %arg0 : i32 to index
    %c0_6 = arith.constant 0 : index
    %c0_7 = arith.constant 0 : index
    %19 = vector.load %arg15[%18, %c0_6, %c0_7] : memref<1x8x128xf32, #tpu.memory_space<vmem>>, vector<1x8x128xf32>
    %20 = vector.shape_cast %19 : vector<1x8x128xf32> to vector<8x128xf32>
    %21 = vector.shape_cast %17 : vector<8x128xf32> to vector<1x8x128xf32>
    tpu.vector_store %arg15[%18, %c0_6, %c0_7], %21 {strides = array<i32>} : memref<1x8x128xf32, #tpu.memory_space<vmem>>, vector<1x8x128xf32>,
    %c0_8 = arith.constant 0 : index
    %c0_9 = arith.constant 0 : index
    %22 = vector.load %arg16[%c0_8, %c0_9] : memref<8x1xf32, #tpu.memory_space<vmem>>, vector<8x1xf32>
    %cst_10 = arith.constant dense<0xFF800000> : vector<8xf32>
    %23 = vector.multi_reduction <maximumf>, %17, %cst_10 [1] : vector<8x128xf32> to vector<8xf32>
    %24 = vector.shape_cast %23 : vector<8xf32> to vector<8x1xf32>
    %25 = arith.maximumf %22, %24 : vector<8x1xf32>
    %26 = arith.subf %22, %25 : vector<8x1xf32>
    %27 = math.exp %26 : vector<8x1xf32>
    %28 = vector.broadcast %25 : vector<8x1xf32> to vector<8x128xf32>
    %29 = arith.subf %17, %28 : vector<8x128xf32>
    %30 = math.exp %29 : vector<8x128xf32>
    %c0_11 = arith.constant 0 : index
    %c0_12 = arith.constant 0 : index
    %31 = vector.load %arg17[%c0_11, %c0_12] : memref<8x1xf32, #tpu.memory_space<vmem>>, vector<8x1xf32>
    %32 = arith.mulf %27, %31 : vector<8x1xf32>
    %cst_13 = arith.constant dense<0.000000e+00> : vector<8xf32>
    %33 = vector.multi_reduction <add>, %30, %cst_13 [1] : vector<8x128xf32> to vector<8xf32>
    %34 = vector.shape_cast %33 : vector<8xf32> to vector<8x1xf32>
    %35 = arith.addf %32, %34 : vector<8x1xf32>
    %c0_14 = arith.constant 0 : index
    %c0_15 = arith.constant 0 : index
    %36 = vector.load %arg17[%c0_14, %c0_15] : memref<8x1xf32, #tpu.memory_space<vmem>>, vector<8x1xf32>
    tpu.vector_store %arg17[%c0_14, %c0_15], %35 {strides = array<i32>} : memref<8x1xf32, #tpu.memory_space<vmem>>, vector<8x1xf32>,
    %c0_16 = arith.constant 0 : index
    %c0_17 = arith.constant 0 : index
    %37 = vector.load %arg18[%c0_16, %c0_17] : memref<8x128xf32, #tpu.memory_space<vmem>>, vector<8x128xf32>
    %38 = vector.broadcast %27 : vector<8x1xf32> to vector<8x128xf32>
    %39 = arith.mulf %38, %37 : vector<8x128xf32>
    %40 = vector.shape_cast %30 : vector<8x128xf32> to vector<8x128x1xf32>
    %41 = vector.broadcast %40 : vector<8x128x1xf32> to vector<8x128x128xf32>
    %42 = arith.mulf %41, %4 : vector<8x128x128xf32>
    %cst_18 = arith.constant dense<0.000000e+00> : vector<8x128xf32>
    %43 = vector.multi_reduction <add>, %42, %cst_18 [1] : vector<8x128x128xf32> to vector<8x128xf32>
    %44 = arith.addf %39, %43 : vector<8x128xf32>
    %c0_19 = arith.constant 0 : index
    %c0_20 = arith.constant 0 : index
    %45 = vector.load %arg18[%c0_19, %c0_20] : memref<8x128xf32, #tpu.memory_space<vmem>>, vector<8x128xf32>
    tpu.vector_store %arg18[%c0_19, %c0_20], %44 {strides = array<i32>} : memref<8x128xf32, #tpu.memory_space<vmem>>, vector<8x128xf32>,
    %c0_21 = arith.constant 0 : index
    %c0_22 = arith.constant 0 : index
    %46 = vector.load %arg16[%c0_21, %c0_22] : memref<8x1xf32, #tpu.memory_space<vmem>>, vector<8x1xf32>
    tpu.vector_store %arg16[%c0_21, %c0_22], %25 {strides = array<i32>} : memref<8x1xf32, #tpu.memory_space<vmem>>, vector<8x1xf32>,
    %c0_i32_23 = arith.constant 0 : i32
    %47 = arith.cmpi eq, %arg0, %c0_i32_23 : i32
    %48 = arith.extui %47 : i1 to i32
    %c0_i32_24 = arith.constant 0 : i32
    %49 = arith.cmpi ne, %48, %c0_i32_24 : i32
    scf.if %49 {
      %c0_25 = arith.constant 0 : index
      %c0_26 = arith.constant 0 : index
      %50 = vector.load %arg17[%c0_25, %c0_26] : memref<8x1xf32, #tpu.memory_space<vmem>>, vector<8x1xf32>
      %51 = tpu.reciprocal %50 {approx = true} : vector<8x1xf32> -> vector<8x1xf32>
      %c0_27 = arith.constant 0 : index
      %c0_28 = arith.constant 0 : index
      %52 = vector.load %arg16[%c0_27, %c0_28] : memref<8x1xf32, #tpu.memory_space<vmem>>, vector<8x1xf32>
      %c0_29 = arith.constant 0 : index
      %c0_30 = arith.constant 0 : index
      %c0_31 = arith.constant 0 : index
      %53 = vector.load %arg15[%c0_29, %c0_30, %c0_31] : memref<1x8x128xf32, #tpu.memory_space<vmem>>, vector<1x8x128xf32>
      %54 = vector.shape_cast %53 : vector<1x8x128xf32> to vector<8x128xf32>
      %55 = vector.broadcast %52 : vector<8x1xf32> to vector<8x128xf32>
      %56 = arith.subf %54, %55 : vector<8x128xf32>
      %57 = math.exp %56 : vector<8x128xf32>
      %58 = vector.broadcast %51 : vector<8x1xf32> to vector<8x128xf32>
      %59 = arith.mulf %57, %58 : vector<8x128xf32>
      %c0_32 = arith.constant 0 : index
      %c0_33 = arith.constant 0 : index
      %60 = vector.load %arg14[%c0_32, %c0_33] : memref<8x128xf32, #tpu.memory_space<vmem>>, vector<8x128xf32>
      tpu.vector_store %arg14[%c0_32, %c0_33], %59 {strides = array<i32>} : memref<8x128xf32, #tpu.memory_space<vmem>>, vector<8x128xf32>,
      %c0_34 = arith.constant 0 : index
      %c0_35 = arith.constant 0 : index
      %61 = vector.load %arg18[%c0_34, %c0_35] : memref<8x128xf32, #tpu.memory_space<vmem>>, vector<8x128xf32>
      %62 = vector.broadcast %51 : vector<8x1xf32> to vector<8x128xf32>
      %63 = arith.mulf %61, %62 : vector<8x128xf32>
      %c0_36 = arith.constant 0 : index
      %c0_37 = arith.constant 0 : index
      %64 = vector.load %arg19[%c0_36, %c0_37] : memref<8x128xf32, #tpu.memory_space<vmem>>, vector<8x128xf32>
      %c0_38 = arith.constant 0 : index
      %c0_39 = arith.constant 0 : index
      %65 = vector.load %arg9[%c0_38, %c0_39] : memref<128x128xf32, #tpu.memory_space<vmem>>, vector<128x128xf32>
      %cst_40 = arith.constant dense<0.000000e+00> : vector<8x128xf32>
      %66 = tpu.matmul %64, %65, %cst_40 {dimension_numbers = #tpu.dot_dimension_numbers<[1], [0], [0], [1], [0, 0, 1, 1], [], []>} : vector<8x128xf32>, vector<128x128xf32>, vector<8x128xf32> -> vector<8x128xf32>
      %c0_41 = arith.constant 0 : index
      %c0_42 = arith.constant 0 : index
      %67 = vector.load %arg10[%c0_41, %c0_42] : memref<128x128xf32, #tpu.memory_space<vmem>>, vector<128x128xf32>
      %cst_43 = arith.constant dense<0.000000e+00> : vector<8x128xf32>
      %68 = tpu.matmul %63, %67, %cst_43 {dimension_numbers = #tpu.dot_dimension_numbers<[1], [0], [0], [1], [0, 0, 1, 1], [], []>} : vector<8x128xf32>, vector<128x128xf32>, vector<8x128xf32> -> vector<8x128xf32>
      %69 = arith.addf %66, %68 : vector<8x128xf32>
      %c0_44 = arith.constant 0 : index
      %c0_45 = arith.constant 0 : index
      %70 = vector.load %arg11[%c0_44, %c0_45] : memref<1x128xf32, #tpu.memory_space<vmem>>, vector<1x128xf32>
      %71 = vector.broadcast %70 : vector<1x128xf32> to vector<8x128xf32>
      %72 = arith.addf %69, %71 : vector<8x128xf32>
      %73 = math.tanh %72 : vector<8x128xf32>
      %c0_46 = arith.constant 0 : index
      %c0_47 = arith.constant 0 : index
      %74 = vector.load %arg12[%c0_46, %c0_47] : memref<8x128xf32, #tpu.memory_space<vmem>>, vector<8x128xf32>
      tpu.vector_store %arg12[%c0_46, %c0_47], %73 {strides = array<i32>} : memref<8x128xf32, #tpu.memory_space<vmem>>, vector<8x128xf32>,
      %c0_48 = arith.constant 0 : index
      %c0_49 = arith.constant 0 : index
      %75 = vector.load %arg13[%c0_48, %c0_49] : memref<8x128xf32, #tpu.memory_space<vmem>>, vector<8x128xf32>
      tpu.vector_store %arg13[%c0_48, %c0_49], %64 {strides = array<i32>} : memref<8x128xf32, #tpu.memory_space<vmem>>, vector<8x128xf32>,
    } else {
    }
    return
  }
  func.func @transform_0(%arg0: i32) -> (i32, i32) {
    %c0_i32 = arith.constant 0 : i32
    %c0_i32_0 = arith.constant 0 : i32
    %c0_i32_1 = arith.constant 0 : i32
    return %c0_i32, %c0_i32_0 : i32, i32
  }
  func.func @transform_1(%arg0: i32) -> (i32, i32) {
    %c0_i32 = arith.constant 0 : i32
    %c0_i32_0 = arith.constant 0 : i32
    %c0_i32_1 = arith.constant 0 : i32
    return %c0_i32, %c0_i32_0 : i32, i32
  }
  func.func @transform_2(%arg0: i32) -> (i32, i32, i32) {
    %c0_i32 = arith.constant 0 : i32
    %c0_i32_0 = arith.constant 0 : i32
    %c0_i32_1 = arith.constant 0 : i32
    return %c0_i32, %arg0, %c0_i32_0 : i32, i32, i32
  }
  func.func @transform_3(%arg0: i32) -> (i32, i32) {
    %c0_i32 = arith.constant 0 : i32
    %c0_i32_0 = arith.constant 0 : i32
    %c0_i32_1 = arith.constant 0 : i32
    return %c0_i32, %c0_i32_0 : i32, i32
  }
  func.func @transform_4(%arg0: i32) -> (i32, i32) {
    %c0_i32 = arith.constant 0 : i32
    %c0_i32_0 = arith.constant 0 : i32
    %c0_i32_1 = arith.constant 0 : i32
    return %c0_i32, %c0_i32_0 : i32, i32
  }
  func.func @transform_5(%arg0: i32) -> (i32, i32) {
    %c0_i32 = arith.constant 0 : i32
    %c0_i32_0 = arith.constant 0 : i32
    %c0_i32_1 = arith.constant 0 : i32
    return %c0_i32, %c0_i32_0 : i32, i32
  }
  func.func @transform_6(%arg0: i32) -> (i32, i32) {
    %c0_i32 = arith.constant 0 : i32
    %c0_i32_0 = arith.constant 0 : i32
    %c0_i32_1 = arith.constant 0 : i32
    return %c0_i32, %c0_i32_0 : i32, i32
  }
  func.func @transform_7(%arg0: i32) -> (i32, i32) {
    %c0_i32 = arith.constant 0 : i32
    %c0_i32_0 = arith.constant 0 : i32
    %c0_i32_1 = arith.constant 0 : i32
    return %c0_i32, %c0_i32_0 : i32, i32
  }
  func.func @transform_8(%arg0: i32) -> (i32, i32) {
    %c0_i32 = arith.constant 0 : i32
    %c0_i32_0 = arith.constant 0 : i32
    %c0_i32_1 = arith.constant 0 : i32
    return %c0_i32, %c0_i32_0 : i32, i32
  }
  func.func @transform_9(%arg0: i32) -> (i32, i32) {
    %c0_i32 = arith.constant 0 : i32
    %c0_i32_0 = arith.constant 0 : i32
    %c0_i32_1 = arith.constant 0 : i32
    return %c0_i32, %c0_i32_0 : i32, i32
  }
  func.func @transform_10(%arg0: i32) -> (i32, i32) {
    %c0_i32 = arith.constant 0 : i32
    %c0_i32_0 = arith.constant 0 : i32
    %c0_i32_1 = arith.constant 0 : i32
    return %c0_i32, %c0_i32_0 : i32, i32
  }
  func.func @transform_11(%arg0: i32) -> (i32, i32) {
    %c0_i32 = arith.constant 0 : i32
    %c0_i32_0 = arith.constant 0 : i32
    %c0_i32_1 = arith.constant 0 : i32
    return %c0_i32, %c0_i32_0 : i32, i32
  }
  func.func @transform_12(%arg0: i32) -> (i32, i32) {
    %c0_i32 = arith.constant 0 : i32
    %c0_i32_0 = arith.constant 0 : i32
    %c0_i32_1 = arith.constant 0 : i32
    return %c0_i32, %c0_i32_0 : i32, i32
  }
  func.func @transform_13(%arg0: i32) -> (i32, i32) {
    %c0_i32 = arith.constant 0 : i32
    %c0_i32_0 = arith.constant 0 : i32
    %c0_i32_1 = arith.constant 0 : i32
    return %c0_i32, %c0_i32_0 : i32, i32
  }
}

</mosaic_0001>

<bundles_post_ra>
// kernel: tpu_custom_call.1
= control target key start
LH: loop header
LB: loop body
LE: loop exit
PB: predicated region body
PF: predicated region fallthrough
CT: control target
= control target key end

     0   :  { %19 = vsyncpa [#allocation9], 0  ;;  %s6294_s0 = inlined_call_operand.hbm [shape: f32[8,128], index: 0, kind: input, shape index: {}]   ;;  %s6295_s1 = inlined_call_operand.hbm [shape: f32[8,128], index: 1, kind: input, shape index: {}]   ;;  %s6296_s2 = inlined_call_operand.hbm [shape: bf16[8,128,128], index: 2, kind: input, shape index: {}]   ;;  %s6297_s3 = inlined_call_operand.hbm [shape: f32[128,384], index: 3, kind: input, shape index: {}]   ;;  %s6298_s4 = inlined_call_operand.vmem [shape: f32[1,384], index: 4, kind: input, shape index: {}]   ;;  %s6299_s5 = inlined_call_operand.hbm [shape: f32[128,384], index: 5, kind: input, shape index: {}]   ;;  %s6300_s6 = inlined_call_operand.vmem [shape: f32[1,384], index: 6, kind: input, shape index: {}]   ;;  %s6301_s7 = inlined_call_operand.hbm [shape: f32[128,128], index: 7, kind: input, shape index: {}]   ;;  %s6302_s8 = inlined_call_operand.hbm [shape: f32[128,128], index: 8, kind: input, shape index: {}]   ;;  %s6303_s9 = inlined_call_operand.hbm [shape: f32[128,128], index: 9, kind: input, shape index: {}]   ;;  %s6304_s10 = inlined_call_operand.vmem [shape: f32[1,128], index: 10, kind: input, shape index: {}]   ;;  %s6305_s11 = inlined_call_operand.hbm [shape: f32[8,128], index: 11, kind: output, shape index: {0}]   ;;  %s6306_s12 = inlined_call_operand.hbm [shape: f32[8,128], index: 12, kind: output, shape index: {1}]   ;;  %s6307_s13 = inlined_call_operand.hbm [shape: f32[8,128], index: 13, kind: output, shape index: {2}]  }
   0x1   :  { %20 = vsyncpa [#allocation12], 0 }
   0x2   :  { %21 = vsyncpa [#allocation15], 0 }
   0x3   :  { %22 = vsyncpa [#allocation18], 0 }
   0x4   :  { %23 = vsyncpa [#allocation21], 0 }
   0x5   :  { %24 = vsyncpa [#allocation10], 0 }
   0x6   :  { %25 = vsyncpa [#allocation24], 0  ;;  %s4219_s25 = smov [#allocation11]   ;;  %s4220_s27 = smov [#allocation14]  }
   0x7   :  { %s42_s26 = sshll.u32 %s4219_s25, 4  ;;  %s63_s28 = sshll.u32 %s4220_s27, 4  ;;  %s43_s26 = int_to_ptr.vmem [resolvable:$true] %s42_s26  ;;  %s64_s28 = int_to_ptr.vmem [resolvable:$true] %s63_s28 }
   0x8   :  { %s3993_s29 = scalar_lea.vmem %s43_s26, 128  ;;  %p3998_p1 = scmp.lt.s32.totalorder %s43_s26, %s43_s26 }
   0x9   :  { %p3994_p0 = scmp.ne.s32.totalorder %s43_s26, %s3993_s29  ;;  %p3999_p2 = scmp.lt.s32.totalorder %s3993_s29, %s3993_s29 }
   0xb   :  { %p4000_p3 = por %p3999_p2, %p3998_p1 }
   0xd   :  { %p4001_p4 = pnand %p4000_p3, %p3994_p0 }
   0xf   :  { %4004 = shalt.err (!%p4001_p4)
}
  0x10   :  { %45 = dma.hbm_to_vmem [thread:$0]  %s6295_s1, 128, %s43_s26, [#allocation12]  }
  0x11   :  { %s4013_s15 = scalar_lea.vmem %s64_s28, 6144  ;;  %p4018_p6 = scmp.lt.s32.totalorder %s64_s28, %s64_s28 }
  0x12   :  { %p4014_p5 = scmp.ne.s32.totalorder %s64_s28, %s4013_s15  ;;  %p4019_p7 = scmp.lt.s32.totalorder %s4013_s15, %s4013_s15 }
  0x14   :  { %p4020_p8 = por %p4019_p7, %p4018_p6 }
  0x16   :  { %p4021_p9 = pnand %p4020_p8, %p4014_p5 }
  0x18   :  { %4024 = shalt.err (!%p4021_p9)
}
  0x19   :  { %s4221_s16 = smov 384   ;;  %s4222_s17 = smov 24  }
  0x1a   :  { %69 = dma.hbm_to_vmem [thread:$0]  %s6297_s3, 6144, %s64_s28, [#allocation15], %s4221_s16, %s4221_s16, %s4222_s17  }
  0x1b   :  { %s4223_s20 = smov [#allocation17]  }
  0x1c   :  { %s91_s21 = sshll.u32 %s4223_s20, 4  ;;  %s92_s21 = int_to_ptr.vmem [resolvable:$true] %s91_s21 }
  0x1d   :  { %s4033_s1 = scalar_lea.vmem %s92_s21, 2048  ;;  %p4038_p11 = scmp.lt.s32.totalorder %s92_s21, %s92_s21 }
  0x1e   :  { %p4034_p10 = scmp.ne.s32.totalorder %s92_s21, %s4033_s1  ;;  %p4039_p12 = scmp.lt.s32.totalorder %s4033_s1, %s4033_s1 }
  0x20   :  { %p4040_p13 = por %p4039_p12, %p4038_p11 }
  0x22   :  { %p4041_p0 = pnand %p4040_p13, %p4034_p10 }
  0x24   :  { %4044 = shalt.err (!%p4041_p0)
}
  0x25   :  { %s4224_s22 = smov 128   ;;  %s4225_s23 = smov 8  }
  0x26   :  { %97 = dma.hbm_to_vmem [thread:$0]  %s6301_s7, 2048, %s92_s21, [#allocation18], %s4224_s22, %s4224_s22, %s4225_s23  }
  0x27   :  { %s4226_s3 = smov [#allocation8]   ;;  %s4227_s27 = smov [#allocation13]  }
  0x28   :  { %s32_s26 = sshll.u32 %s4226_s3, 4  ;;  %s51_s28 = sshll.u32 %s4227_s27, 4  ;;  %s33_s26 = int_to_ptr.vmem [resolvable:$true] %s32_s26  ;;  %s52_s28 = int_to_ptr.vmem [resolvable:$true] %s51_s28 }
  0x29   :  { %s4053_s29 = scalar_lea.vmem %s33_s26, 128  ;;  %p4058_p2 = scmp.lt.s32.totalorder %s33_s26, %s33_s26 }
  0x2a   :  { %p4054_p1 = scmp.ne.s32.totalorder %s33_s26, %s4053_s29  ;;  %p4059_p3 = scmp.lt.s32.totalorder %s4053_s29, %s4053_s29 }
  0x2c   :  { %p4060_p4 = por %p4059_p3, %p4058_p2 }
  0x2e   :  { %p4061_p5 = pnand %p4060_p4, %p4054_p1 }
  0x30   :  { %4064 = shalt.err (!%p4061_p5)
}
  0x31   :  { %35 = dma.hbm_to_vmem [thread:$0]  %s6294_s0, 128, %s33_s26, [#allocation9]  }
  0x32   :  { %s4073_s15 = scalar_lea.vmem %s52_s28, 8192  ;;  %p4078_p7 = scmp.lt.s32.totalorder %s52_s28, %s52_s28 }
  0x33   :  { %p4074_p6 = scmp.ne.s32.totalorder %s52_s28, %s4073_s15  ;;  %p4079_p8 = scmp.lt.s32.totalorder %s4073_s15, %s4073_s15 }
  0x35   :  { %p4080_p9 = por %p4079_p8, %p4078_p7 }
  0x37   :  { %p4081_p10 = pnand %p4080_p9, %p4074_p6 }
  0x39   :  { %4084 = shalt.err (!%p4081_p10)
}
  0x3a   :  { %s4228_s7 = smov 64   ;;  %s4229_s18 = smov 4  }
  0x3b   :  { %57 = dma.hbm_to_vmem [thread:$0]  %s6296_s2, 8192, %s52_s28, [#allocation12], %s4228_s7, %s4228_s7, %s4229_s18  }
  0x3c   :  { %s4230_s21 = smov [#allocation16]   ;;  %s4231_s24 = smov [#allocation19]  }
  0x3d   :  { %s77_s1 = sshll.u32 %s4230_s21, 4  ;;  %s103_s25 = sshll.u32 %s4231_s24, 4  ;;  %s78_s1 = int_to_ptr.vmem [resolvable:$true] %s77_s1  ;;  %s104_s25 = int_to_ptr.vmem [resolvable:$true] %s103_s25 }
  0x3e   :  { %s4093_s0 = scalar_lea.vmem %s78_s1, 6144  ;;  %p4098_p12 = scmp.lt.s32.totalorder %s78_s1, %s78_s1 }
  0x3f   :  { %p4094_p11 = scmp.ne.s32.totalorder %s78_s1, %s4093_s0  ;;  %p4099_p13 = scmp.lt.s32.totalorder %s4093_s0, %s4093_s0 }
  0x41   :  { %p4100_p0 = por %p4099_p13, %p4098_p12 }
  0x43   :  { %p4101_p1 = pnand %p4100_p0, %p4094_p11 }
  0x45   :  { %4104 = shalt.err (!%p4101_p1)
}
  0x46   :  { %83 = dma.hbm_to_vmem [thread:$0]  %s6299_s5, 6144, %s78_s1, [#allocation15], %s4221_s16, %s4221_s16, %s4222_s17  }
  0x47   :  { %s4113_s2 = scalar_lea.vmem %s104_s25, 2048  ;;  %p4118_p3 = scmp.lt.s32.totalorder %s104_s25, %s104_s25 }
  0x48   :  { %p4114_p2 = scmp.ne.s32.totalorder %s104_s25, %s4113_s2  ;;  %p4119_p4 = scmp.lt.s32.totalorder %s4113_s2, %s4113_s2 }
  0x4a   :  { %p4120_p5 = por %p4119_p4, %p4118_p3 }
  0x4c   :  { %p4121_p6 = pnand %p4120_p5, %p4114_p2 }
  0x4e   :  { %4124 = shalt.err (!%p4121_p6)
}
  0x4f   :  { %109 = dma.hbm_to_vmem [thread:$0]  %s6302_s8, 2048, %s104_s25, [#allocation18], %s4224_s22, %s4224_s22, %s4225_s23  }
  0x50   :  { %s4232_s29 = smov [#allocation20]  }
  0x51   :  { %s115_s30 = sshll.u32 %s4232_s29, 4  ;;  %s116_s30 = int_to_ptr.vmem [resolvable:$true] %s115_s30 }
  0x52   :  { %s4133_s14 = scalar_lea.vmem %s116_s30, 2048  ;;  %p4138_p8 = scmp.lt.s32.totalorder %s116_s30, %s116_s30 }
  0x53   :  { %p4134_p7 = scmp.ne.s32.totalorder %s116_s30, %s4133_s14  ;;  %p4139_p9 = scmp.lt.s32.totalorder %s4133_s14, %s4133_s14 }
  0x55   :  { %p4140_p10 = por %p4139_p9, %p4138_p8 }
  0x57   :  { %p4141_p11 = pnand %p4140_p10, %p4134_p7 }
  0x59   :  { %4144 = shalt.err (!%p4141_p11)
}
  0x5a   :  { %121 = dma.hbm_to_vmem [thread:$0]  %s6303_s9, 2048, %s116_s30, [#allocation21], %s4224_s22, %s4224_s22, %s4225_s23  }
  0x5b   :  { %4205 = dma.done.wait [#allocation9], 128  }
  0x5c   :  { %4206 = vsyncadd [#allocation9], 4294967168 }
  0x5d   :  { %4207 = dma.done.wait [#allocation12], 8320  }
  0x5e   :  { %4208 = vsyncadd [#allocation12], 4294958976 }
  0x5f   :  { %4209 = dma.done.wait [#allocation15], 12288  }
  0x60   :  { %4210 = vsyncadd [#allocation15], 4294955008 }
  0x61   :  { %4211 = dma.done.wait [#allocation18], 4096  }
  0x62   :  { %4212 = vsyncadd [#allocation18], 4294963200 }
  0x63   :  { %4213 = dma.done.wait [#allocation21], 2048  }
  0x64   :  { %4214 = vsyncadd [#allocation21], 4294965248  ;;  %v6378_v0 = vmov 0.0   ;;  %vm4234_vm0 = vmmov 0   ;;  %v200_v1 = vld [vmem:[#allocation14 + $0x170] sm:$0xff]  ;;  %v199_v2 = vld [vmem:[#allocation14 + $0x168] sm:$0xff] }
  0x65   :  { %283 = vmatprep.mubr.f32.mxu0 %v6378_v0  ;;  %3766 = vmatprep.subr.mxu1 %v6378_v0  ;;  %v197_v3 = vld [vmem:[#allocation14 + $0x158] sm:$0xff]  ;;  %v196_v4 = vld [vmem:[#allocation14 + $0x150] sm:$0xff]  ;;  %v194_v5 = vld [vmem:[#allocation14 + $0x140] sm:$0xff]  ;;  %vm1553_vm1 = vcmask 130112   ;;  %vm1560_vm2 = vcmask 195712   ;;  %vm1567_vm3 = vcmask 261312  }
  0x66   :  { %3798 = vmatprep.mubr.msk.f32.mxu1 %vm4234_vm0, %v6378_v0  ;;  %219 = vmatprep.subr.mxu0 %v200_v1  ;;  %v193_v6 = vld [vmem:[#allocation14 + $0x138] sm:$0xff]  ;;  %v191_v7 = vld [vmem:[#allocation14 + $0x128] sm:$0xff]  ;;  %v190_v8 = vld [vmem:[#allocation14 + $0x120] sm:$0xff]  ;;  %vm1574_vm4 = vcmask 326912   ;;  %vm1581_vm5 = vcmask 392512   ;;  %vm1588_vm6 = vcmask 458112  }
  0x67   :  { %220 = vmatpush1.msra.mxu0 %v199_v2  ;;  %v188_v9 = vld [vmem:[#allocation14 + $0x110] sm:$0xff]  ;;  %v187_v10 = vld [vmem:[#allocation14 + $0x108] sm:$0xff]  ;;  %v185_v11 = vld [vmem:[#allocation14 + $0xf8] sm:$0xff]  ;;  %vm1595_vm7 = vcmask 523712   ;;  %vm1602_vm8 = vcmask 589312   ;;  %vm1609_vm9 = vcmask 654912  }
  0x68   :  { %221 = vmatprep.subr.mxu0 %v197_v3  ;;  %v184_v12 = vld [vmem:[#allocation14 + $0xf0] sm:$0xff]  ;;  %v182_v13 = vld [vmem:[#allocation14 + $0xe0] sm:$0xff]  ;;  %v181_v14 = vld [vmem:[#allocation14 + $0xd8] sm:$0xff]  ;;  %vm1616_vm10 = vcmask 720512   ;;  %vm1623_vm11 = vcmask 786112   ;;  %vm6543_vm12 = vcmask 851712  }
  0x69   :  { %222 = vmatpush1.msra.mxu0 %v196_v4  ;;  %v201_v15 = vld [vmem:[#allocation14 + $0x178] sm:$0xff]  ;;  %v179_v16 = vld [vmem:[#allocation14 + $0xc8] sm:$0xff]  ;;  %v198_v17 = vld [vmem:[#allocation14 + $0x160] sm:$0xff]  ;;  %vm1637_vm13 = vcmask 917312   ;;  %vm1644_vm14 = vcmask 982912   ;;  %vm1651_vm15 = vcmask 1048512  }
  0x6a   :  { %223 = vmatprep.subr.mxu0 %v194_v5  ;;  %3767 = vmatpush3.msra.mxu1 %v201_v15  ;;  %v178_v18 = vld [vmem:[#allocation14 + $0xc0] sm:$0xff]  ;;  %v195_v19 = vld [vmem:[#allocation14 + $0x148] sm:$0xff]  ;;  %v176_v20 = vld [vmem:[#allocation14 + $0xb0] sm:$0xff] }
  0x6b   :  { %224 = vmatpush1.msra.mxu0 %v193_v6  ;;  %3768 = vmatprep.subr.mxu1 %v6378_v0  ;;  %v175_v21 = vld [vmem:[#allocation14 + $0xa8] sm:$0xff]  ;;  %v192_v22 = vld [vmem:[#allocation14 + $0x130] sm:$0xff]  ;;  %v173_v23 = vld [vmem:[#allocation14 + $0x98] sm:$0xff] }
  0x6c   :  { %225 = vmatprep.subr.mxu0 %v191_v7  ;;  %3769 = vmatpush3.msra.mxu1 %v198_v17  ;;  %v172_v24 = vld [vmem:[#allocation14 + $0x90] sm:$0xff]  ;;  %v189_v25 = vld [vmem:[#allocation14 + $0x118] sm:$0xff]  ;;  %v170_v26 = vld [vmem:[#allocation14 + $0x80] sm:$0xff] }
  0x6d   :  { %226 = vmatpush1.msra.mxu0 %v190_v8  ;;  %3770 = vmatprep.subr.mxu1 %v6378_v0  ;;  %v169_v27 = vld [vmem:[#allocation14 + $0x78] sm:$0xff]  ;;  %v186_v28 = vld [vmem:[#allocation14 + $0x100] sm:$0xff]  ;;  %v167_v29 = vld [vmem:[#allocation14 + $0x68] sm:$0xff] }
  0x6e   :  { %227 = vmatprep.subr.mxu0 %v188_v9  ;;  %3771 = vmatpush3.msra.mxu1 %v195_v19  ;;  %v166_v30 = vld [vmem:[#allocation14 + $0x60] sm:$0xff]  ;;  %v183_v31 = vld [vmem:[#allocation14 + $0xe8] sm:$0xff]  ;;  %v164_v32 = vld [vmem:[#allocation14 + $0x50] sm:$0xff] }
  0x6f   :  { %228 = vmatpush1.msra.mxu0 %v187_v10  ;;  %3772 = vmatprep.subr.mxu1 %v6378_v0  ;;  %v163_v33 = vld [vmem:[#allocation14 + $0x48] sm:$0xff]  ;;  %v180_v34 = vld [vmem:[#allocation14 + $0xd0] sm:$0xff]  ;;  %v161_v35 = vld [vmem:[#allocation14 + $0x38] sm:$0xff] }
  0x70   :  { %229 = vmatprep.subr.mxu0 %v185_v11  ;;  %3773 = vmatpush3.msra.mxu1 %v192_v22  ;;  %v160_v36 = vld [vmem:[#allocation14 + $0x30] sm:$0xff]  ;;  %v177_v37 = vld [vmem:[#allocation14 + $0xb8] sm:$0xff]  ;;  %v158_v38 = vld [vmem:[#allocation14 + $0x20] sm:$0xff] }
  0x71   :  { %230 = vmatpush1.msra.mxu0 %v184_v12  ;;  %3774 = vmatprep.subr.mxu1 %v6378_v0  ;;  %v157_v39 = vld [vmem:[#allocation14 + $0x18] sm:$0xff]  ;;  %v174_v40 = vld [vmem:[#allocation14 + $0xa0] sm:$0xff]  ;;  %v155_v41 = vld [vmem:[#allocation14 + $0x8] sm:$0xff] }
  0x72   :  { %231 = vmatprep.subr.mxu0 %v182_v13  ;;  %3775 = vmatpush3.msra.mxu1 %v189_v25  ;;  %v154_v42 = vld [vmem:[#allocation14] sm:$0xff]  ;;  %v171_v43 = vld [vmem:[#allocation14 + $0x88] sm:$0xff]  ;;  %v152_v44 = vld [vmem:[#allocation8] sm:$0xff] }
  0x73   :  { %232 = vmatpush1.msra.mxu0 %v181_v14  ;;  %3776 = vmatprep.subr.mxu1 %v6378_v0  ;;  %v406_v45 = vld [vmem:[#allocation16 + $0x170] sm:$0xff]  ;;  %v405_v46 = vld [vmem:[#allocation16 + $0x168] sm:$0xff]  ;;  %v403_v47 = vld [vmem:[#allocation16 + $0x158] sm:$0xff] }
  0x74   :  { %233 = vmatprep.subr.mxu0 %v179_v16  ;;  %3777 = vmatpush3.msra.mxu1 %v186_v28  ;;  %v168_v48 = vld [vmem:[#allocation14 + $0x70] sm:$0xff]  ;;  %v400_v50 = vld [vmem:[#allocation16 + $0x140] sm:$0xff]  ;;  %v165_v51 = vld [vmem:[#allocation14 + $0x58] sm:$0xff] }
  0x75   :  { %234 = vmatpush1.msra.mxu0 %v178_v18  ;;  %3778 = vmatprep.subr.mxu1 %v6378_v0  ;;  %v402_v49 = vld [vmem:[#allocation16 + $0x150] sm:$0xff]  ;;  %v399_v52 = vld [vmem:[#allocation16 + $0x138] sm:$0xff]  ;;  %v397_v53 = vld [vmem:[#allocation16 + $0x128] sm:$0xff] }
  0x76   :  { %235 = vmatprep.subr.mxu0 %v176_v20  ;;  %3779 = vmatpush3.msra.mxu1 %v183_v31  ;;  %v162_v54 = vld [vmem:[#allocation14 + $0x40] sm:$0xff]  ;;  %v394_v56 = vld [vmem:[#allocation16 + $0x110] sm:$0xff]  ;;  %v159_v57 = vld [vmem:[#allocation14 + $0x28] sm:$0xff] }
  0x77   :  { %236 = vmatpush1.msra.mxu0 %v175_v21  ;;  %3780 = vmatprep.subr.mxu1 %v6378_v0  ;;  %v396_v55 = vld [vmem:[#allocation16 + $0x120] sm:$0xff]  ;;  %v393_v58 = vld [vmem:[#allocation16 + $0x108] sm:$0xff]  ;;  %v391_v59 = vld [vmem:[#allocation16 + $0xf8] sm:$0xff] }
  0x78   :  { %237 = vmatprep.subr.mxu0 %v173_v23  ;;  %3781 = vmatpush3.msra.mxu1 %v180_v34  ;;  %v156_v60 = vld [vmem:[#allocation14 + $0x10] sm:$0xff]  ;;  %v388_v62 = vld [vmem:[#allocation16 + $0xe0] sm:$0xff]  ;;  %v387_v63 = vld [vmem:[#allocation16 + $0xd8] sm:$0xff] }
  0x79   :  { %238 = vmatpush1.msra.mxu0 %v172_v24  ;;  %3782 = vmatprep.subr.mxu1 %v6378_v0  ;;  %v390_v61 = vld [vmem:[#allocation16 + $0xf0] sm:$0xff]  ;;  %v385_v1 = vld [vmem:[#allocation16 + $0xc8] sm:$0xff]  ;;  %v407_v2 = vld [vmem:[#allocation16 + $0x178] sm:$0xff] }
  0x7a   :  { %239 = vmatprep.subr.mxu0 %v170_v26  ;;  %3783 = vmatpush3.msra.mxu1 %v177_v37  ;;  %v384_v3 = vld [vmem:[#allocation16 + $0xc0] sm:$0xff]  ;;  %v382_v4 = vld [vmem:[#allocation16 + $0xb0] sm:$0xff]  ;;  %v381_v6 = vld [vmem:[#allocation16 + $0xa8] sm:$0xff] }
  0x7b   :  { %240 = vmatpush1.msra.mxu0 %v169_v27  ;;  %3784 = vmatprep.subr.mxu1 %v6378_v0  ;;  %v404_v5 = vld [vmem:[#allocation16 + $0x160] sm:$0xff]  ;;  %v379_v7 = vld [vmem:[#allocation16 + $0x98] sm:$0xff]  ;;  %v401_v8 = vld [vmem:[#allocation16 + $0x148] sm:$0xff] }
  0x7c   :  { %241 = vmatprep.subr.mxu0 %v167_v29  ;;  %3785 = vmatpush3.msra.mxu1 %v174_v40  ;;  %v378_v9 = vld [vmem:[#allocation16 + $0x90] sm:$0xff]  ;;  %v376_v10 = vld [vmem:[#allocation16 + $0x80] sm:$0xff]  ;;  %v375_v12 = vld [vmem:[#allocation16 + $0x78] sm:$0xff] }
  0x7d   :  { %242 = vmatpush1.msra.mxu0 %v166_v30  ;;  %3786 = vmatprep.subr.mxu1 %v6378_v0  ;;  %v398_v11 = vld [vmem:[#allocation16 + $0x130] sm:$0xff]  ;;  %v373_v13 = vld [vmem:[#allocation16 + $0x68] sm:$0xff]  ;;  %v395_v14 = vld [vmem:[#allocation16 + $0x118] sm:$0xff] }
  0x7e   :  { %243 = vmatprep.subr.mxu0 %v164_v32  ;;  %3787 = vmatpush3.msra.mxu1 %v171_v43  ;;  %v372_v15 = vld [vmem:[#allocation16 + $0x60] sm:$0xff]  ;;  %v370_v16 = vld [vmem:[#allocation16 + $0x50] sm:$0xff]  ;;  %v369_v18 = vld [vmem:[#allocation16 + $0x48] sm:$0xff] }
  0x7f   :  { %244 = vmatpush1.msra.mxu0 %v163_v33  ;;  %3788 = vmatprep.subr.mxu1 %v6378_v0  ;;  %v392_v17 = vld [vmem:[#allocation16 + $0x100] sm:$0xff]  ;;  %v367_v19 = vld [vmem:[#allocation16 + $0x38] sm:$0xff]  ;;  %v389_v20 = vld [vmem:[#allocation16 + $0xe8] sm:$0xff] }
  0x80   :  { %245 = vmatprep.subr.mxu0 %v161_v35  ;;  %3789 = vmatpush3.msra.mxu1 %v168_v48  ;;  %v366_v21 = vld [vmem:[#allocation16 + $0x30] sm:$0xff]  ;;  %v364_v22 = vld [vmem:[#allocation16 + $0x20] sm:$0xff]  ;;  %v363_v24 = vld [vmem:[#allocation16 + $0x18] sm:$0xff] }
  0x81   :  { %246 = vmatpush1.msra.mxu0 %v160_v36  ;;  %3790 = vmatprep.subr.mxu1 %v6378_v0  ;;  %v386_v23 = vld [vmem:[#allocation16 + $0xd0] sm:$0xff]  ;;  %v361_v25 = vld [vmem:[#allocation16 + $0x8] sm:$0xff]  ;;  %v383_v26 = vld [vmem:[#allocation16 + $0xb8] sm:$0xff] }
  0x82   :  { %247 = vmatprep.subr.mxu0 %v158_v38  ;;  %3791 = vmatpush3.msra.mxu1 %v165_v51  ;;  %v360_v27 = vld [vmem:[#allocation16] sm:$0xff]  ;;  %v4378_v28 = vld [vmem:[#allocation11] sm:$0xff]  ;;  %v377_v30 = vld [vmem:[#allocation16 + $0x88] sm:$0xff] }
  0x83   :  { %248 = vmatpush1.msra.mxu0 %v157_v39  ;;  %3792 = vmatprep.subr.mxu1 %v6378_v0  ;;  %v380_v29 = vld [vmem:[#allocation16 + $0xa0] sm:$0xff]  ;;  %v374_v31 = vld [vmem:[#allocation16 + $0x70] sm:$0xff]  ;;  %v371_v32 = vld [vmem:[#allocation16 + $0x58] sm:$0xff] }
  0x84   :  { %249 = vmatprep.subr.mxu0 %v155_v41  ;;  %3793 = vmatpush3.msra.mxu1 %v162_v54  ;;  %v368_v33 = vld [vmem:[#allocation16 + $0x40] sm:$0xff]  ;;  %v365_v34 = vld [vmem:[#allocation16 + $0x28] sm:$0xff]  ;;  %v362_v35 = vld [vmem:[#allocation16 + $0x10] sm:$0xff]  ;;  %v204_v54 = vlaneseq }
  0x85   :  { %250 = vmatpush1.msra.mxu0 %v154_v42  ;;  %3794 = vmatprep.subr.mxu1 %v6378_v0  ;;  %v603_v36 = vld [vmem:[#allocation17 + $0x78] sm:$0xff]  ;;  %v602_v37 = vld [vmem:[#allocation17 + $0x70] sm:$0xff]  ;;  %v601_v38 = vld [vmem:[#allocation17 + $0x68] sm:$0xff] }
  0x86   :  { %284 = vmatmul.mubr.f32.vlgmr.msra.gmra.mxu0 %v152_v44  ;;  %425 = vmatprep.subr.mxu0 %v406_v45  ;;  %v600_v39 = vld [vmem:[#allocation17 + $0x60] sm:$0xff]  ;;  %v599_v40 = vld [vmem:[#allocation17 + $0x58] sm:$0xff]  ;;  %v598_v41 = vld [vmem:[#allocation17 + $0x50] sm:$0xff] }
  0x87   :  { %426 = vmatpush1.msra.mxu0 %v405_v46  ;;  %3795 = vmatpush3.msra.mxu1 %v159_v57  ;;  %v597_v42 = vld [vmem:[#allocation17 + $0x48] sm:$0xff]  ;;  %v596_v43 = vld [vmem:[#allocation17 + $0x40] sm:$0xff]  ;;  %v594_v45 = vld [vmem:[#allocation17 + $0x30] sm:$0xff] }
  0x88   :  { %427 = vmatprep.subr.mxu0 %v403_v47  ;;  %3796 = vmatprep.subr.mxu1 %v6378_v0  ;;  %v593_v46 = vld [vmem:[#allocation17 + $0x28] sm:$0xff]  ;;  %v592_v47 = vld [vmem:[#allocation17 + $0x20] sm:$0xff]  ;;  %v591_v48 = vld [vmem:[#allocation17 + $0x18] sm:$0xff] }
  0x89   :  { %428 = vmatpush1.msra.mxu0 %v402_v49  ;;  %3797 = vmatpush3.msra.mxu1 %v156_v60  ;;  %v590_v49 = vld [vmem:[#allocation17 + $0x10] sm:$0xff]  ;;  %v588_v51 = vld [vmem:[#allocation17] sm:$0xff] }
  0x8a   :  { %429 = vmatprep.subr.mxu0 %v400_v50  ;;  %489 = vmatprep.mubr.f32.mxu0 %v6378_v0  ;;  %v589_v50 = vld [vmem:[#allocation17 + $0x8] sm:$0xff]  ;;  %v202_v57 = vld [vmem:[%s6298_s4] sm:$0x7]  ;;  %s4238_s4 = smov [#allocation23]  }
  0x8b   :  { %430 = vmatpush1.msra.mxu0 %v399_v52  ;;  %3801 = vmatprep.subr.mxu1 %v6378_v0 }
  0x8c   :  { %431 = vmatprep.subr.mxu0 %v397_v53  ;;  %3799 = vmatmul.mubr.f32.vlgmr.msra.gmra.mxu1 %v152_v44  ;;  %v595_v44 = vld [vmem:[#allocation17 + $0x38] sm:$0xff] }
  0x8d   :  { %432 = vmatpush1.msra.mxu0 %v396_v55  ;;  %3802 = vmatpush3.msra.mxu1 %v407_v2  ;;  %v4415_v55 = vshrl.u32 %v204_v54, 7 }
  0x8e   :  { %433 = vmatprep.subr.mxu0 %v394_v56  ;;  %3803 = vmatprep.subr.mxu1 %v6378_v0 }
  0x8f   :  { %434 = vmatpush1.msra.mxu0 %v393_v58  ;;  %3804 = vmatpush3.msra.mxu1 %v404_v5  ;;  %6544 = vst [vmem:[#allocation33_spill] sm:$0xff] %v4415_v55  ;;  %v4418_v56 = vsub.s32 0, %v4415_v55 }
  0x90   :  { %435 = vmatprep.subr.mxu0 %v391_v59  ;;  %3805 = vmatprep.subr.mxu1 %v6378_v0  ;;  %v408_v59 = vld [vmem:[%s6300_s6] sm:$0x7]  ;;  %s3329_s6 = sshll.u32 %s4238_s4, 4  ;;  %s3330_s6 = int_to_ptr.vmem [resolvable:$true] %s3329_s6 }
  0x91   :  { %436 = vmatpush1.msra.mxu0 %v390_v61  ;;  %3806 = vmatpush3.msra.mxu1 %v401_v8  ;;  %6545 = vst [vmem:[#allocation34_spill] sm:$0xff] %v4418_v56  ;;  %v207_v60 = vrot.slane %v202_v57, %v4418_v56  ;;  %v413_v61 = vrot.slane %v408_v59, %v4418_v56  ;;  %s4145_s23 = scalar_lea.vmem %s3330_s6, 128  ;;  %p4150_p13 = scmp.lt.s32.totalorder %s3330_s6, %s3330_s6 }
  0x92   :  { %437 = vmatprep.subr.mxu0 %v388_v62  ;;  %3807 = vmatprep.subr.mxu1 %v6378_v0  ;;  %p4146_p12 = scmp.ne.s32.totalorder %s3330_s6, %s4145_s23  ;;  %p4151_p0 = scmp.lt.s32.totalorder %s4145_s23, %s4145_s23 }
  0x93   :  { %438 = vmatpush1.msra.mxu0 %v387_v63  ;;  %3808 = vmatpush3.msra.mxu1 %v398_v11  ;;  %v4429_v63 = vsub.s32 1, %v4415_v55 }
  0x94   :  { %439 = vmatprep.subr.mxu0 %v385_v1  ;;  %3809 = vmatprep.subr.mxu1 %v6378_v0  ;;  %p4152_p1 = por %p4151_p0, %p4150_p13 }
  0x95   :  { %440 = vmatpush1.msra.mxu0 %v384_v3  ;;  %3810 = vmatpush3.msra.mxu1 %v395_v14  ;;  %6546 = vst [vmem:[#allocation35_spill] sm:$0xff] %v4429_v63 }
  0x96   :  { %441 = vmatprep.subr.mxu0 %v382_v4  ;;  %3811 = vmatprep.subr.mxu1 %v6378_v0  ;;  %v417_v4 = vrot.slane %v408_v59, %v4429_v63  ;;  %p4153_p2 = pnand %p4152_p1, %p4146_p12 }
  0x97   :  { %442 = vmatpush1.msra.mxu0 %v381_v6  ;;  %3812 = vmatpush3.msra.mxu1 %v392_v17  ;;  %v211_v6 = vrot.slane %v202_v57, %v4429_v63  ;;  %v4434_v17 = vsub.s32 2, %v4415_v55 }
  0x98   :  { %443 = vmatprep.subr.mxu0 %v379_v7  ;;  %3813 = vmatprep.subr.mxu1 %v6378_v0 }
  0x99   :  { %444 = vmatpush1.msra.mxu0 %v378_v9  ;;  %3814 = vmatpush3.msra.mxu1 %v389_v20  ;;  %6547 = vst [vmem:[#allocation36_spill] sm:$0xff] %v4434_v17  ;;  %v215_v20 = vrot.slane %v202_v57, %v4434_v17 }
  0x9a   :  { %445 = vmatprep.subr.mxu0 %v376_v10  ;;  %3815 = vmatprep.subr.mxu1 %v6378_v0 }
  0x9b   :  { %446 = vmatpush1.msra.mxu0 %v375_v12  ;;  %3816 = vmatpush3.msra.mxu1 %v386_v23 }
  0x9c   :  { %447 = vmatprep.subr.mxu0 %v373_v13  ;;  %3817 = vmatprep.subr.mxu1 %v6378_v0 }
  0x9d   :  { %448 = vmatpush1.msra.mxu0 %v372_v15  ;;  %3818 = vmatpush3.msra.mxu1 %v383_v26 }
  0x9e   :  { %449 = vmatprep.subr.mxu0 %v370_v16  ;;  %3819 = vmatprep.subr.mxu1 %v6378_v0 }
  0x9f   :  { %450 = vmatpush1.msra.mxu0 %v369_v18  ;;  %3820 = vmatpush3.msra.mxu1 %v380_v29  ;;  %v421_v18 = vrot.slane %v408_v59, %v4434_v17  ;;  %v4460_v59 = vld [vmem:[#allocation13 + $0x10] sm:$0xff]  }
  0xa0   :  { %451 = vmatprep.subr.mxu0 %v367_v19  ;;  %3821 = vmatprep.subr.mxu1 %v6378_v0  ;;  %6548 = vst [vmem:[#allocation37_spill] sm:$0xff] %v4460_v59 }
  0xa1   :  { %452 = vmatpush1.msra.mxu0 %v366_v21  ;;  %3833 = vmatprep.mubr.msk.f32.mxu1 %vm4234_vm0, %v6378_v0 }
  0xa2   :  { %453 = vmatprep.subr.mxu0 %v364_v22  ;;  %3822 = vmatpush3.msra.mxu1 %v377_v30 }
  0xa3   :  { %454 = vmatpush1.msra.mxu0 %v363_v24  ;;  %3823 = vmatprep.subr.mxu1 %v6378_v0 }
  0xa4   :  { %455 = vmatprep.subr.mxu0 %v361_v25  ;;  %3824 = vmatpush3.msra.mxu1 %v374_v31 }
  0xa5   :  { %456 = vmatpush1.msra.mxu0 %v360_v27  ;;  %3825 = vmatprep.subr.mxu1 %v6378_v0 }
  0xa6   :  { %490 = vmatmul.mubr.f32.vlgmr.msra.gmra.mxu0 %v4378_v28  ;;  %3836 = vmatprep.subr.mxu0 %v6378_v0 }
  0xa7   :  { %3868 = vmatprep.mubr.msk.f32.mxu0 %vm4234_vm0, %v6378_v0  ;;  %3826 = vmatpush3.msra.mxu1 %v371_v32 }
  0xa8   :  { %3827 = vmatprep.subr.mxu1 %v6378_v0  ;;  %3837 = vmatpush3.msra.mxu0 %v603_v36  ;;  %v3143_v36 = vld [vmem:[#allocation19 + $0x68] sm:$0xff] }
  0xa9   :  { %3828 = vmatpush3.msra.mxu1 %v368_v33  ;;  %3838 = vmatprep.subr.mxu0 %v6378_v0 }
  0xaa   :  { %3829 = vmatprep.subr.mxu1 %v6378_v0  ;;  %3839 = vmatpush3.msra.mxu0 %v602_v37  ;;  %v3142_v37 = vld [vmem:[#allocation19 + $0x60] sm:$0xff] }
  0xab   :  { %3830 = vmatpush3.msra.mxu1 %v365_v34  ;;  %3840 = vmatprep.subr.mxu0 %v6378_v0  ;;  %v3145_v34 = vld [vmem:[#allocation19 + $0x78] sm:$0xff] }
  0xac   :  { %3831 = vmatprep.subr.mxu1 %v6378_v0  ;;  %3841 = vmatpush3.msra.mxu0 %v601_v38  ;;  %v3140_v38 = vld [vmem:[#allocation19 + $0x50] sm:$0xff] }
  0xad   :  { %3832 = vmatpush3.msra.mxu1 %v362_v35  ;;  %3842 = vmatprep.subr.mxu0 %v6378_v0  ;;  %v3144_v35 = vld [vmem:[#allocation19 + $0x70] sm:$0xff] }
  0xae   :  { %3834 = vmatmul.mubr.f32.vlgmr.msra.gmra.mxu1 %v4378_v28  ;;  %3871 = vmatprep.subr.mxu1 %v6378_v0 }
  0xaf   :  { %3903 = vmatprep.mubr.msk.f32.mxu1 %vm4234_vm0, %v6378_v0  ;;  %3843 = vmatpush3.msra.mxu0 %v600_v39  ;;  %v3139_v39 = vld [vmem:[#allocation19 + $0x48] sm:$0xff] }
  0xb0   :  { %3844 = vmatprep.subr.mxu0 %v6378_v0 }
  0xb1   :  { %3845 = vmatpush3.msra.mxu0 %v599_v40  ;;  %v3138_v40 = vld [vmem:[#allocation19 + $0x40] sm:$0xff] }
  0xb2   :  { %3846 = vmatprep.subr.mxu0 %v6378_v0 }
  0xb3   :  { %3847 = vmatpush3.msra.mxu0 %v598_v41  ;;  %v3137_v41 = vld [vmem:[#allocation19 + $0x38] sm:$0xff] }
  0xb4   :  { %3848 = vmatprep.subr.mxu0 %v6378_v0 }
  0xb5   :  { %3849 = vmatpush3.msra.mxu0 %v597_v42  ;;  %v3136_v42 = vld [vmem:[#allocation19 + $0x30] sm:$0xff] }
  0xb6   :  { %3850 = vmatprep.subr.mxu0 %v6378_v0 }
  0xb7   :  { %3851 = vmatpush3.msra.mxu0 %v596_v43  ;;  %v3135_v43 = vld [vmem:[#allocation19 + $0x28] sm:$0xff] }
  0xb8   :  { %3852 = vmatprep.subr.mxu0 %v6378_v0 }
  0xb9   :  { %3853 = vmatpush3.msra.mxu0 %v595_v44  ;;  %v3134_v44 = vld [vmem:[#allocation19 + $0x20] sm:$0xff] }
  0xba   :  { %3854 = vmatprep.subr.mxu0 %v6378_v0 }
  0xbb   :  { %3855 = vmatpush3.msra.mxu0 %v594_v45  ;;  %v3133_v45 = vld [vmem:[#allocation19 + $0x18] sm:$0xff] }
  0xbc   :  { %3856 = vmatprep.subr.mxu0 %v6378_v0 }
  0xbd   :  { %3857 = vmatpush3.msra.mxu0 %v593_v46  ;;  %v3132_v46 = vld [vmem:[#allocation19 + $0x10] sm:$0xff] }
  0xbe   :  { %3858 = vmatprep.subr.mxu0 %v6378_v0 }
  0xbf   :  { %3859 = vmatpush3.msra.mxu0 %v592_v47  ;;  %v3131_v47 = vld [vmem:[#allocation19 + $0x8] sm:$0xff] }
  0xc0   :  { %3860 = vmatprep.subr.mxu0 %v6378_v0 }
  0xc1   :  { %3861 = vmatpush3.msra.mxu0 %v591_v48  ;;  %v3130_v48 = vld [vmem:[#allocation19] sm:$0xff] }
  0xc2   :  { %3862 = vmatprep.subr.mxu0 %v6378_v0 }
  0xc3   :  { %3863 = vmatpush3.msra.mxu0 %v590_v49  ;;  %v4235_v49 = vmov 1966171168  }
  0xc4   :  { %3864 = vmatprep.subr.mxu0 %v6378_v0 }
  0xc5   :  { %3865 = vmatpush3.msra.mxu0 %v589_v50  ;;  %v939_v50 = vunpack.c.l.s4 %v4235_v49  ;;  %v4558_v49 = vld [vmem:[#allocation13 + $0x50] sm:$0xff]  }
  0xc6   :  { %3866 = vmatprep.subr.mxu0 %v6378_v0  ;;  %6559 = vst [vmem:[#allocation48_spill] sm:$0xff] %v4558_v49 }
  0xc7   :  { %3867 = vmatpush3.msra.mxu0 %v588_v51  ;;  %v940_v51 = vunpack.c.0.s8 %v939_v50 }
  0xc8   :  { %3906 = vmatprep.subr.mxu0 %v6378_v0 }
 0x146   :  { %v285_v58 = vpop.f32.mrf.mxu0 }
 0x147   :  { %v286_v2 = vadd.f32 %v285_v58, %v207_v60  ;;  %v4462_v60 = vld [vmem:[#allocation13] sm:$0xff]  }
 0x148   :  { %v287_v62 = vpop.f32.mrf.mxu0  ;;  %6549 = vst [vmem:[#allocation38_spill] sm:$0xff] %v4462_v60 }
 0x149   :  { %v288_v10 = vadd.f32 %v287_v62, %v211_v6 }
 0x14c   :  { %v356_v52 = vpop.f32.mrf.mxu1 }
 0x14d   :  { %v357_v24 = vadd.f32 %v356_v52, %v215_v20  ;;  %v4457_v52 = vsub.s32 %v940_v51, %v4415_v55 }
 0x14e   :  { %v3800_v53 = vpop.f32.mrf.mxu1 }
 0x166   :  { %v491_v1 = vpop.f32.mrf.mxu0 }
 0x167   :  { %v492_v3 = vadd.f32 %v491_v1, %v413_v61 }
 0x168   :  { %v493_v5 = vpop.f32.mrf.mxu0 }
 0x169   :  { %v566_v7 = vadd.f32 %v492_v3, %v286_v2  ;;  %v494_v9 = vadd.f32 %v493_v5, %v417_v4  ;;  %v6323_v2 = vunpack.c.l.bf16 %v4460_v59  ;;  %v6346_v3 = vunpack.c.l.bf16 %v4462_v60 }
 0x16b   :  { %v3359_v8 = vmul.f32 -1.442695, %v566_v7  ;;  %v573_v11 = vadd.f32 %v494_v9, %v288_v10  ;;  %v6320_v9 = vunpack.c.h.bf16 %v4460_v59  ;;  %v6342_v10 = vunpack.c.h.bf16 %v4462_v60 }
 0x16d   :  { %3965 = vpow2.f32 %v3359_v8  ;;  %v3360_v12 = vmul.f32 -1.442695, %v573_v11  ;;  %v4486_v11 = vld [vmem:[#allocation13 + $0x20] sm:$0xff]  }
 0x16e   :  { %v562_v13 = vpop.f32.mrf.mxu1  ;;  %6550 = vst [vmem:[#allocation39_spill] sm:$0xff] %v4486_v11  ;;  %v6314_v20 = vunpack.c.h.bf16 %v4486_v11 }
 0x16f   :  { %3967 = vpow2.f32 %v3360_v12  ;;  %v563_v22 = vadd.f32 %v562_v13, %v421_v18  ;;  %v4488_v12 = vld [vmem:[#allocation13 + $0x8] sm:$0xff]  }
 0x170   :  { %v3835_v14 = vpop.f32.mrf.mxu1  ;;  %6551 = vst [vmem:[#allocation40_spill] sm:$0xff] %v4488_v12 }
 0x17a   :  { %v3966_v15 = vpop.eup %3965 }
 0x17b   :  { %v570_v16 = vadd.f32 1.0, %v3966_v15  ;;  %v6315_v15 = vunpack.c.l.bf16 %v4486_v11 }
 0x17c   :  { %v3968_v19 = vpop.eup %3967 }
 0x17d   :  { %3969 = vrcp.f32 %v570_v16  ;;  %v577_v21 = vadd.f32 1.0, %v3968_v19  ;;  %v6335_v16 = vunpack.c.l.bf16 %v4488_v12 }
 0x17f   :  { %3971 = vrcp.f32 %v577_v21  ;;  %v6328_v21 = vunpack.c.h.bf16 %v4488_v12 }
 0x18a   :  { %v3970_v23 = vpop.eup %3969 }
 0x18b   :  { %v580_v25 = vmul.f32 %v3970_v23, %v563_v22  ;;  %v4506_v22 = vld [vmem:[#allocation13 + $0x28] sm:$0xff]   ;;  %v4508_v23 = vld [vmem:[#allocation13 + $0x18] sm:$0xff]  }
 0x18c   :  { %v3972_v27 = vpop.eup %3971  ;;  %6552 = vst [vmem:[#allocation41_spill] sm:$0xff] %v4506_v22  ;;  %6553 = vst [vmem:[#allocation42_spill] sm:$0xff] %v4508_v23 }
 0x18d   :  { %v581_v26 = vadd.f32 %v580_v25, %v357_v24  ;;  %v583_v29 = vsub.f32 1.0, %v3972_v27  ;;  %v585_v32 = vmul.f32 %v3972_v27, %v4378_v28  ;;  %v3141_v28 = vld [vmem:[#allocation19 + $0x58] sm:$0xff]  ;;  %v6319_v27 = vunpack.c.l.bf16 %v4508_v23 }
 0x18f   :  { %3973 = vtanh.f32 %v581_v26  ;;  %v6313_v26 = vunpack.c.l.bf16 %v4506_v22 }
 0x19c   :  { %v3974_v30 = vpop.eup %3973 }
 0x19d   :  { %v584_v31 = vmul.f32 %v3974_v30, %v583_v29  ;;  %v6312_v29 = vunpack.c.h.bf16 %v4506_v22  ;;  %v4918_v22 = vld [vmem:[#allocation13 + $0xe8] sm:$0xff]  }
 0x19e   :  { %6594 = vst [vmem:[#allocation80_spill] sm:$0xff] %v4918_v22 }
 0x19f   :  { %v586_v33 = vadd.f32 %v585_v32, %v584_v31 }
 0x1a1   :  { %3869 = vmatmul.mubr.f32.vlgmr.msra.gmra.mxu0 %v586_v33  ;;  %3312 = vst [vmem:[#allocation23] sm:$0xff] %v586_v33 }
 0x1a2   :  { %3907 = vmatpush3.msra.mxu0 %v3145_v34  ;;  %3938 = vmatprep.mubr.msk.f32.mxu0 %vm4234_vm0, %v6378_v0  ;;  %v4526_v34 = vld [vmem:[#allocation13 + $0x30] sm:$0xff]   ;;  %vm6506_vm0 = vcmask 1041409  }
 0x1a3   :  { %3908 = vmatprep.subr.mxu0 %v6378_v0  ;;  %6554 = vst [vmem:[#allocation43_spill] sm:$0xff] %v4526_v34 }
 0x1a4   :  { %3909 = vmatpush3.msra.mxu0 %v3144_v35  ;;  %v4528_v35 = vld [vmem:[#allocation13 + $0x80] sm:$0xff]  }
 0x1a5   :  { %3910 = vmatprep.subr.mxu0 %v6378_v0  ;;  %6555 = vst [vmem:[#allocation44_spill] sm:$0xff] %v4528_v35 }
 0x1a6   :  { %3911 = vmatpush3.msra.mxu0 %v3143_v36  ;;  %v6311_v36 = vunpack.c.l.bf16 %v4526_v34 }
 0x1a7   :  { %3912 = vmatprep.subr.mxu0 %v6378_v0 }
 0x1a8   :  { %3913 = vmatpush3.msra.mxu0 %v3142_v37  ;;  %v6374_v37 = vunpack.c.l.bf16 %v4528_v35 }
 0x1a9   :  { %3914 = vmatprep.subr.mxu0 %v6378_v0 }
 0x1aa   :  { %3915 = vmatpush3.msra.mxu0 %v3141_v28 }
 0x1ab   :  { %3916 = vmatprep.subr.mxu0 %v6378_v0 }
 0x1ac   :  { %3917 = vmatpush3.msra.mxu0 %v3140_v38 }
 0x1ad   :  { %3918 = vmatprep.subr.mxu0 %v6378_v0 }
 0x1ae   :  { %3919 = vmatpush3.msra.mxu0 %v3139_v39 }
 0x1af   :  { %3920 = vmatprep.subr.mxu0 %v6378_v0 }
 0x1b0   :  { %3921 = vmatpush3.msra.mxu0 %v3138_v40 }
 0x1b1   :  { %3922 = vmatprep.subr.mxu0 %v6378_v0 }
 0x1b2   :  { %3923 = vmatpush3.msra.mxu0 %v3137_v41  ;;  %v4541_v41 = vld [vmem:[#allocation13 + $0x88] sm:$0xff]  }
 0x1b3   :  { %3924 = vmatprep.subr.mxu0 %v6378_v0  ;;  %6556 = vst [vmem:[#allocation45_spill] sm:$0xff] %v4541_v41 }
 0x1b4   :  { %3925 = vmatpush3.msra.mxu0 %v3136_v42  ;;  %v6310_v42 = vunpack.c.h.bf16 %v4526_v34 }
 0x1b5   :  { %3926 = vmatprep.subr.mxu0 %v6378_v0 }
 0x1b6   :  { %3927 = vmatpush3.msra.mxu0 %v3135_v43 }
 0x1b7   :  { %3928 = vmatprep.subr.mxu0 %v6378_v0 }
 0x1b8   :  { %3929 = vmatpush3.msra.mxu0 %v3134_v44 }
 0x1b9   :  { %3930 = vmatprep.subr.mxu0 %v6378_v0 }
 0x1ba   :  { %3931 = vmatpush3.msra.mxu0 %v3133_v45 }
 0x1bb   :  { %3932 = vmatprep.subr.mxu0 %v6378_v0 }
 0x1bc   :  { %3933 = vmatpush3.msra.mxu0 %v3132_v46 }
 0x1bd   :  { %3934 = vmatprep.subr.mxu0 %v6378_v0 }
 0x1be   :  { %3935 = vmatpush3.msra.mxu0 %v3131_v47  ;;  %v6364_v47 = vunpack.c.l.bf16 %v4541_v41 }
 0x1bf   :  { %3936 = vmatprep.subr.mxu0 %v6378_v0 }
 0x1c0   :  { %3937 = vmatpush3.msra.mxu0 %v3130_v48  ;;  %v4556_v48 = vld [vmem:[#allocation13 + $0x38] sm:$0xff]  }
 0x1c1   :  { %3939 = vmatmul.mubr.f32.vlgmr.msra.gmra.mxu0 %v586_v33  ;;  %v6317_v33 = vunpack.c.h.bf16 %v4508_v23  ;;  %6558 = vst [vmem:[#allocation47_spill] sm:$0xff] %v4556_v48  ;;  %v6309_v51 = vunpack.c.l.bf16 %v4556_v48 }
 0x261   :  { %v670_v53 = vpop.f32.mrf.mxu0 }
 0x262   :  { %v937_v57 = vcombine.high %v670_v53, %v670_v53  ;;  %v944_v58 = vrot.slane %v670_v53, %v4457_v52  ;;  %v6350_v53 = vunpack.c.l.bf16 %v4558_v49 }
 0x263   :  { %v3870_v61 = vpop.f32.mrf.mxu0 }
 0x264   :  { %v4465_v62 = vrot.slane %v937_v57, %v4457_v52  ;;  %v960_v1 = vrot.slane %v944_v58, %v4457_v52  ;;  %v952_v28 = vcombine.high %v944_v58, %v944_v58 }
 0x266   :  { %v953_v4 = vcombine.high %v4465_v62, %v4465_v62  ;;  %v4473_v5 = vrot.slane %v960_v1, %v4418_v56  ;;  %v982_v30 = vcombine.high %v960_v1, %v960_v1  ;;  %v4545_v43 = vrot.slane %v952_v28, %v4457_v52 }
 0x267   :  { %v4564_v57 = vrot.slane %v4465_v62, %v4457_v52 }
 0x268   :  { %v4476_v6 = vrot.slane %v953_v4, %v4457_v52  ;;  %v1030_v7 = vmul.f32 %v6323_v2, %v4473_v5  ;;  %v1026_v8 = vmul.f32 %v6346_v3, %v4473_v5  ;;  %v1031_v13 = vmul.f32 %v6320_v9, %v4473_v5  ;;  %v4576_v4 = vld [vmem:[#allocation13 + $0x100] sm:$0xff]   ;;  %v4680_v9 = vld [vmem:[#allocation13 + $0x58] sm:$0xff]  }
 0x269   :  { %v1027_v14 = vmul.f32 %v6342_v10, %v4473_v5  ;;  %v1034_v18 = vmul.f32 %v6315_v15, %v4473_v5  ;;  %v1028_v19 = vmul.f32 %v6335_v16, %v4473_v5  ;;  %v1035_v24 = vmul.f32 %v6314_v20, %v4473_v5  ;;  %6560 = vst [vmem:[#allocation49_spill] sm:$0xff] %v4576_v4  ;;  %v4660_v20 = vld [vmem:[#allocation13 + $0x68] sm:$0xff]   ;;  %v4775_v3 = vld [vmem:[#allocation13 + $0x140] sm:$0xff]  }
 0x26a   :  { %1162 = vadd.xlane.f32.xlu1 %v1030_v7  ;;  %1154 = vadd.xlane.f32.xlu0 %v1026_v8  ;;  %v1029_v25 = vmul.f32 %v6328_v21, %v4473_v5  ;;  %v1036_v31 = vmul.f32 %v6313_v26, %v4473_v5  ;;  %v1032_v32 = vmul.f32 %v6319_v27, %v4473_v5  ;;  %v6308_v7 = vunpack.c.h.bf16 %v4556_v48  ;;  %v4678_v27 = vld [vmem:[#allocation13 + $0x70] sm:$0xff]   ;;  %v4763_v10 = vld [vmem:[#allocation13 + $0xa8] sm:$0xff]  }
 0x26b   :  { %v4533_v38 = vrot.slane %v982_v30, %v4418_v56  ;;  %v1037_v39 = vmul.f32 %v6312_v29, %v4473_v5  ;;  %v1033_v40 = vmul.f32 %v6317_v33, %v4473_v5  ;;  %v1038_v45 = vmul.f32 %v6311_v36, %v4473_v5  ;;  %v4600_v30 = vld [vmem:[#allocation13 + $0x90] sm:$0xff]   ;;  %6568 = vst [vmem:[#allocation57_spill] sm:$0xff] %v4660_v20 }
 0x26c   :  { %v4568_v58 = vrot.slane %v4545_v43, %v4418_v56  ;;  %v1039_v61 = vmul.f32 %v6310_v42, %v4473_v5  ;;  %v4581_v52 = vrot.slane %v4564_v57, %v4418_v56  ;;  %v1040_v62 = vmul.f32 %v6309_v51, %v4473_v5  ;;  %6562 = vst [vmem:[#allocation51_spill] sm:$0xff] %v4600_v30  ;;  %v4642_v51 = vld [vmem:[#allocation13 + $0x60] sm:$0xff]  }
 0x26d   :  { %v1058_v46 = vmul.f32 %v6374_v37, %v4533_v38  ;;  %v1060_v1 = vmul.f32 %v6364_v47, %v4533_v38  ;;  %v6356_v28 = vunpack.c.h.bf16 %v4600_v30  ;;  %6567 = vst [vmem:[#allocation56_spill] sm:$0xff] %v4642_v51  ;;  %v6360_v42 = vunpack.c.h.bf16 %v4541_v41  ;;  %6569 = vst [vmem:[#allocation58_spill] sm:$0xff] %v4678_v27  ;;  %v4870_v37 = vld [vmem:[#allocation13 + $0x130] sm:$0xff]  }
 0x26e   :  { %1164 = vadd.xlane.f32.xlu1 %v1031_v13  ;;  %1156 = vadd.xlane.f32.xlu0 %v1027_v14  ;;  %v1046_v8 = vmul.f32 %v6350_v53, %v4568_v58  ;;  %v6330_v13 = vunpack.c.h.bf16 %v4576_v4  ;;  %v4590_v14 = vld [vmem:[#allocation13 + $0x40] sm:$0xff]   ;;  %v6316_v36 = vunpack.c.l.bf16 %v4642_v51  ;;  %v6334_v26 = vunpack.c.l.bf16 %v4576_v4  ;;  %6570 = vst [vmem:[#allocation59_spill] sm:$0xff] %v4680_v9  ;;  %6577 = vst [vmem:[#allocation66_spill] sm:$0xff] %v4763_v10 }
 0x26f   :  { %6561 = vst [vmem:[#allocation50_spill] sm:$0xff] %v4590_v14  ;;  %v1061_v29 = vmul.f32 %v6360_v42, %v4533_v38  ;;  %v6321_v15 = vunpack.c.l.bf16 %v4660_v20  ;;  %6579 = vst [vmem:[#allocation68_spill] sm:$0xff] %v4775_v3  ;;  %v6358_v53 = vunpack.c.h.bf16 %v4763_v10  ;;  %v4826_v42 = vld [vmem:[#allocation13 + $0x128] sm:$0xff]  }
 0x270   :  { %6584 = vst [vmem:[#allocation73_spill] sm:$0xff] %v4826_v42  ;;  %6589 = vst [vmem:[#allocation78_spill] sm:$0xff] %v4870_v37 }
 0x271   :  { %v1052_v33 = vmul.f32 %v6321_v15, %v4568_v58  ;;  %v6326_v15 = vunpack.c.l.bf16 %v4678_v27 }
 0x272   :  { %1170 = vadd.xlane.f32.xlu1 %v1034_v18  ;;  %1158 = vadd.xlane.f32.xlu0 %v1028_v19  ;;  %v1041_v18 = vmul.f32 %v6308_v7, %v4473_v5  ;;  %v1091_v19 = vmul.f32 %v6330_v13, %v4581_v52  ;;  %v4716_v13 = vld [vmem:[#allocation13 + $0x138] sm:$0xff]  }
 0x273   :  { %v1054_v2 = vmul.f32 %v6326_v15, %v4568_v58  ;;  %6572 = vst [vmem:[#allocation61_spill] sm:$0xff] %v4716_v13  ;;  %v6341_v16 = vunpack.c.h.bf16 %v4716_v13 }
 0x276   :  { %1172 = vadd.xlane.f32.xlu1 %v1035_v24  ;;  %1160 = vadd.xlane.f32.xlu0 %v1029_v25  ;;  %v6368_v24 = vunpack.c.l.bf16 %v4590_v14  ;;  %v6345_v25 = vunpack.c.h.bf16 %v4558_v49  ;;  %v985_v49 = vcombine.high %v4476_v6, %v4476_v6 }
 0x278   :  { %v1047_v5 = vmul.f32 %v6345_v25, %v4568_v58  ;;  %v4773_v25 = vld [vmem:[#allocation13 + $0x120] sm:$0xff]  }
 0x279   :  { %6578 = vst [vmem:[#allocation67_spill] sm:$0xff] %v4773_v25 }
 0x27a   :  { %1174 = vadd.xlane.f32.xlu1 %v1036_v31  ;;  %1166 = vadd.xlane.f32.xlu0 %v1032_v32  ;;  %v1042_v31 = vmul.f32 %v6368_v24, %v4568_v58  ;;  %v6372_v32 = vunpack.c.h.bf16 %v4590_v14  ;;  %v4854_v24 = vld [vmem:[#allocation13 + $0xb8] sm:$0xff]  }
 0x27b   :  { %6586 = vst [vmem:[#allocation75_spill] sm:$0xff] %v4854_v24 }
 0x27e   :  { %1176 = vadd.xlane.f32.xlu1 %v1037_v39  ;;  %1168 = vadd.xlane.f32.xlu0 %v1033_v40  ;;  %v4610_v39 = vld [vmem:[#allocation13 + $0x48] sm:$0xff]  }
 0x27f   :  { %6563 = vst [vmem:[#allocation52_spill] sm:$0xff] %v4610_v39  ;;  %v4612_v40 = vld [vmem:[#allocation13 + $0x108] sm:$0xff]  }
 0x280   :  { %6564 = vst [vmem:[#allocation53_spill] sm:$0xff] %v4612_v40 }
 0x281   :  { %v4547_v44 = vpop.f32.mrf.mxu0 }
 0x282   :  { %6557 = vst [vmem:[#allocation46_spill] sm:$0xff] %v4547_v44  ;;  %1178 = vadd.xlane.f32.xlu1 %v1038_v45  ;;  %1218 = vadd.xlane.f32.xlu0 %v1058_v46  ;;  %v1043_v45 = vmul.f32 %v6372_v32, %v4568_v58  ;;  %v1063_v46 = vmul.f32 %v6356_v28, %v4533_v38  ;;  %v4814_v28 = vld [vmem:[#allocation13 + $0xb0] sm:$0xff]  }
 0x283   :  { %v3940_v50 = vpop.f32.mrf.mxu0  ;;  %6582 = vst [vmem:[#allocation71_spill] sm:$0xff] %v4814_v28 }
 0x284   :  { %v6361_v50 = vunpack.c.l.bf16 %v4610_v39 }
 0x286   :  { %1180 = vadd.xlane.f32.xlu1 %v1039_v61  ;;  %1222 = vadd.xlane.f32.xlu0 %v1060_v1  ;;  %v6325_v61 = vunpack.c.h.bf16 %v4612_v40  ;;  %v4622_v1 = vld [vmem:[#allocation13 + $0x98] sm:$0xff]  }
 0x287   :  { %6565 = vst [vmem:[#allocation54_spill] sm:$0xff] %v4622_v1 }
 0x28a   :  { %1182 = vadd.xlane.f32.xlu1 %v1040_v62  ;;  %1194 = vadd.xlane.f32.xlu0 %v1046_v8  ;;  %v1044_v62 = vmul.f32 %v6361_v50, %v4568_v58  ;;  %v1093_v8 = vmul.f32 %v6325_v61, %v4581_v52  ;;  %v4698_v61 = vld [vmem:[#allocation13 + $0x78] sm:$0xff]   ;;  %v4828_v50 = vld [vmem:[#allocation13 + $0x150] sm:$0xff]  }
 0x28b   :  { %6571 = vst [vmem:[#allocation60_spill] sm:$0xff] %v4698_v61  ;;  %v6332_v15 = vunpack.c.l.bf16 %v4698_v61  ;;  %6585 = vst [vmem:[#allocation74_spill] sm:$0xff] %v4828_v50 }
 0x28d   :  { %v1056_v21 = vmul.f32 %v6332_v15, %v4568_v58  ;;  %v6338_v15 = vunpack.c.l.bf16 %v4716_v13 }
 0x28e   :  { %1184 = vadd.xlane.f32.xlu1 %v1041_v18  ;;  %1284 = vadd.xlane.f32.xlu0 %v1091_v19  ;;  %v6376_v18 = vunpack.c.h.bf16 %v4528_v35  ;;  %v6347_v19 = vunpack.c.l.bf16 %v4622_v1 }
 0x292   :  { %1186 = vadd.xlane.f32.xlu1 %v1042_v31  ;;  %1196 = vadd.xlane.f32.xlu0 %v1047_v5  ;;  %v4632_v31 = vld [vmem:[#allocation13 + $0x110] sm:$0xff]   ;;  %v1059_v5 = vmul.f32 %v6376_v18, %v4533_v38 }
 0x293   :  { %6566 = vst [vmem:[#allocation55_spill] sm:$0xff] %v4632_v31  ;;  %v6322_v7 = vunpack.c.l.bf16 %v4632_v31 }
 0x296   :  { %1188 = vadd.xlane.f32.xlu1 %v1043_v45  ;;  %1228 = vadd.xlane.f32.xlu0 %v1063_v46  ;;  %v1064_v45 = vmul.f32 %v6347_v19, %v4533_v38  ;;  %v6353_v46 = vunpack.c.h.bf16 %v4610_v39  ;;  %v983_v19 = vcombine.high %v4564_v57, %v4564_v57 }
 0x298   :  { %v4795_v57 = vrot.slane %v983_v19, %v4418_v56 }
 0x29a   :  { %1190 = vadd.xlane.f32.xlu1 %v1044_v62  ;;  %1288 = vadd.xlane.f32.xlu0 %v1093_v8  ;;  %v1045_v62 = vmul.f32 %v6353_v46, %v4568_v58  ;;  %v1094_v8 = vmul.f32 %v6322_v7, %v4581_v52  ;;  %v6340_v7 = vunpack.c.l.bf16 %v4680_v9 }
 0x29e   :  { %1220 = vadd.xlane.f32.xlu1 %v1059_v5  ;;  %1230 = vadd.xlane.f32.xlu0 %v1064_v45  ;;  %v1050_v5 = vmul.f32 %v6316_v36, %v4568_v58  ;;  %v6318_v45 = vunpack.c.h.bf16 %v4642_v51  ;;  %v6357_v36 = vunpack.c.l.bf16 %v4600_v30 }
 0x2a2   :  { %1192 = vadd.xlane.f32.xlu1 %v1045_v62  ;;  %1290 = vadd.xlane.f32.xlu0 %v1094_v8  ;;  %v1051_v62 = vmul.f32 %v6318_v45, %v4568_v58  ;;  %v1090_v8 = vmul.f32 %v6334_v26, %v4581_v52  ;;  %v6327_v45 = vunpack.c.l.bf16 %v4612_v40  ;;  %v4728_v26 = vld [vmem:[#allocation13 + $0x118] sm:$0xff]   ;;  %v5092_v40 = vld [vmem:[#allocation13 + $0x190] sm:$0xff]  }
 0x2a3   :  { %6574 = vst [vmem:[#allocation63_spill] sm:$0xff] %v4728_v26  ;;  %6614 = vst [vmem:[#allocation86_spill] sm:$0xff] %v5092_v40  ;;  %v6622_v60 = vunpack.c.h.bf16 %v5092_v40 }
 0x2a6   :  { %1224 = vadd.xlane.f32.xlu1 %v1061_v29  ;;  %1202 = vadd.xlane.f32.xlu0 %v1050_v5  ;;  %v1062_v29 = vmul.f32 %v6357_v36, %v4533_v38  ;;  %v6324_v5 = vunpack.c.h.bf16 %v4660_v20  ;;  %v4816_v36 = vld [vmem:[#allocation13 + $0xd8] sm:$0xff]  }
 0x2a7   :  { %6583 = vst [vmem:[#allocation72_spill] sm:$0xff] %v4816_v36 }
 0x2aa   :  { %1204 = vadd.xlane.f32.xlu0 %v1051_v62  ;;  %1282 = vadd.xlane.f32.xlu1 %v1090_v8  ;;  %v1053_v62 = vmul.f32 %v6324_v5, %v4568_v58  ;;  %v1092_v8 = vmul.f32 %v6327_v45, %v4581_v52  ;;  %v6331_v5 = vunpack.c.h.bf16 %v4680_v9  ;;  %v6333_v45 = vunpack.c.h.bf16 %v4622_v1 }
 0x2ab   :  { %v1127_v1 = vmul.f32 %v6622_v60, %v4795_v57 }
 0x2ae   :  { %1206 = vadd.xlane.f32.xlu0 %v1052_v33  ;;  %1226 = vadd.xlane.f32.xlu1 %v1062_v29  ;;  %v1048_v33 = vmul.f32 %v6340_v7, %v4568_v58  ;;  %v6329_v29 = vunpack.c.h.bf16 %v4678_v27  ;;  %v4753_v7 = vld [vmem:[#allocation13 + $0xc8] sm:$0xff]  }
 0x2af   :  { %6576 = vst [vmem:[#allocation65_spill] sm:$0xff] %v4753_v7 }
 0x2b2   :  { %1208 = vadd.xlane.f32.xlu0 %v1053_v62  ;;  %1286 = vadd.xlane.f32.xlu1 %v1092_v8  ;;  %v1055_v62 = vmul.f32 %v6329_v29, %v4568_v58  ;;  %v1049_v8 = vmul.f32 %v6331_v5, %v4568_v58  ;;  %v6337_v29 = vunpack.c.h.bf16 %v4632_v31  ;;  %v4718_v5 = vld [vmem:[#allocation13 + $0xa0] sm:$0xff]  }
 0x2b3   :  { %6573 = vst [vmem:[#allocation62_spill] sm:$0xff] %v4718_v5 }
 0x2b6   :  { %1210 = vadd.xlane.f32.xlu0 %v1054_v2  ;;  %1198 = vadd.xlane.f32.xlu1 %v1048_v33  ;;  %v1065_v2 = vmul.f32 %v6333_v45, %v4533_v38  ;;  %v6336_v33 = vunpack.c.h.bf16 %v4698_v61  ;;  %v6339_v45 = vunpack.c.l.bf16 %v4718_v5 }
 0x2ba   :  { %1212 = vadd.xlane.f32.xlu0 %v1055_v62  ;;  %1200 = vadd.xlane.f32.xlu1 %v1049_v8  ;;  %v1057_v62 = vmul.f32 %v6336_v33, %v4568_v58  ;;  %v1095_v8 = vmul.f32 %v6337_v29, %v4581_v52  ;;  %v1104_v58 = vmul.f32 %v6338_v15, %v4581_v52  ;;  %v6343_v33 = vunpack.c.l.bf16 %v4728_v26  ;;  %v4740_v29 = vld [vmem:[#allocation13 + $0xc0] sm:$0xff]  }
 0x2bb   :  { %6575 = vst [vmem:[#allocation64_spill] sm:$0xff] %v4740_v29 }
 0x2bc   :  { %v1096_v15 = vmul.f32 %v6343_v33, %v4581_v52  ;;  %v6352_v33 = vunpack.c.h.bf16 %v4753_v7 }
 0x2be   :  { %1214 = vadd.xlane.f32.xlu0 %v1056_v21  ;;  %1232 = vadd.xlane.f32.xlu1 %v1065_v2  ;;  %v984_v21 = vcombine.high %v4545_v43, %v4545_v43  ;;  %v1066_v2 = vmul.f32 %v6339_v45, %v4533_v38  ;;  %v1105_v43 = vmul.f32 %v6341_v16, %v4581_v52  ;;  %v6351_v45 = vunpack.c.h.bf16 %v4740_v29 }
 0x2bf   :  { %v6348_v16 = vunpack.c.h.bf16 %v4728_v26 }
 0x2c2   :  { %1216 = vadd.xlane.f32.xlu0 %v1057_v62  ;;  %1292 = vadd.xlane.f32.xlu1 %v1095_v8  ;;  %v6344_v62 = vunpack.c.h.bf16 %v4718_v5  ;;  %v4744_v8 = vrot.slane %v984_v21, %v4418_v56 }
 0x2c4   :  { %v1067_v21 = vmul.f32 %v6344_v62, %v4533_v38  ;;  %v6354_v62 = vunpack.c.l.bf16 %v4763_v10  ;;  %v4928_v10 = vld [vmem:[#allocation13 + $0x160] sm:$0xff]  }
 0x2c5   :  { %6596 = vst [vmem:[#allocation81_spill] sm:$0xff] %v4928_v10 }
 0x2c6   :  { %1310 = vadd.xlane.f32.xlu0 %v1104_v58  ;;  %1234 = vadd.xlane.f32.xlu1 %v1066_v2  ;;  %v1075_v58 = vmul.f32 %v6351_v45, %v4744_v8  ;;  %v6349_v2 = vunpack.c.l.bf16 %v4753_v7 }
 0x2ca   :  { %1312 = vadd.xlane.f32.xlu0 %v1105_v43  ;;  %1294 = vadd.xlane.f32.xlu1 %v1096_v15  ;;  %v1076_v15 = vmul.f32 %v6349_v2, %v4744_v8  ;;  %v1097_v43 = vmul.f32 %v6348_v16, %v4581_v52  ;;  %v4783_v16 = vrot.slane %v4476_v6, %v4418_v56 }
 0x2cb   :  { %v1077_v2 = vmul.f32 %v6352_v33, %v4744_v8 }
 0x2ce   :  { %1252 = vadd.xlane.f32.xlu0 %v1075_v58  ;;  %1236 = vadd.xlane.f32.xlu1 %v1067_v21  ;;  %v6355_v58 = vunpack.c.l.bf16 %v4773_v25  ;;  %v6373_v21 = vunpack.c.l.bf16 %v4775_v3 }
 0x2d0   :  { %v1098_v45 = vmul.f32 %v6355_v58, %v4581_v52  ;;  %v1106_v33 = vmul.f32 %v6373_v21, %v4783_v16 }
 0x2d2   :  { %1254 = vadd.xlane.f32.xlu0 %v1076_v15  ;;  %1296 = vadd.xlane.f32.xlu1 %v1097_v43  ;;  %v1068_v15 = vmul.f32 %v6354_v62, %v4533_v38  ;;  %v4791_v43 = vld [vmem:[#allocation13 + $0x180] sm:$0xff]   ;;  %v4804_v62 = vld [vmem:[#allocation13 + $0x188] sm:$0xff]  }
 0x2d3   :  { %6580 = vst [vmem:[#allocation69_spill] sm:$0xff] %v4791_v43  ;;  %v6359_v46 = vunpack.c.l.bf16 %v4791_v43  ;;  %6581 = vst [vmem:[#allocation70_spill] sm:$0xff] %v4804_v62  ;;  %v6363_v58 = vunpack.c.l.bf16 %v4804_v62 }
 0x2d5   :  { %v1122_v19 = vmul.f32 %v6359_v46, %v4795_v57  ;;  %v6366_v46 = vunpack.c.l.bf16 %v4816_v36 }
 0x2d6   :  { %1256 = vadd.xlane.f32.xlu0 %v1077_v2  ;;  %1238 = vadd.xlane.f32.xlu1 %v1068_v15  ;;  %v1069_v2 = vmul.f32 %v6358_v53, %v4533_v38  ;;  %v6362_v15 = vunpack.c.h.bf16 %v4773_v25  ;;  %v6365_v53 = vunpack.c.l.bf16 %v4814_v28 }
 0x2da   :  { %1298 = vadd.xlane.f32.xlu1 %v1098_v45  ;;  %1314 = vadd.xlane.f32.xlu0 %v1106_v33  ;;  %v1099_v45 = vmul.f32 %v6362_v15, %v4581_v52  ;;  %v1124_v33 = vmul.f32 %v6363_v58, %v4795_v57  ;;  %v6367_v15 = vunpack.c.l.bf16 %v4826_v42  ;;  %v6369_v58 = vunpack.c.l.bf16 %v4828_v50 }
 0x2dc   :  { %v1100_v47 = vmul.f32 %v6367_v15, %v4581_v52  ;;  %v6377_v15 = vunpack.c.h.bf16 %v4828_v50 }
 0x2de   :  { %1240 = vadd.xlane.f32.xlu1 %v1069_v2  ;;  %1346 = vadd.xlane.f32.xlu0 %v1122_v19  ;;  %v1070_v2 = vmul.f32 %v6365_v53, %v4533_v38  ;;  %v1080_v19 = vmul.f32 %v6366_v46, %v4744_v8  ;;  %v6371_v53 = vunpack.c.h.bf16 %v4816_v36 }
 0x2e2   :  { %1300 = vadd.xlane.f32.xlu1 %v1099_v45  ;;  %1350 = vadd.xlane.f32.xlu0 %v1124_v33  ;;  %v1110_v45 = vmul.f32 %v6369_v58, %v4783_v16  ;;  %v6370_v33 = vunpack.c.h.bf16 %v4814_v28  ;;  %v4856_v58 = vld [vmem:[#allocation13 + $0xe0] sm:$0xff]  }
 0x2e3   :  { %6587 = vst [vmem:[#allocation76_spill] sm:$0xff] %v4856_v58  ;;  %v6385_v32 = vunpack.c.l.bf16 %v4856_v58 }
 0x2e4   :  { %v1071_v46 = vmul.f32 %v6370_v33, %v4533_v38 }
 0x2e6   :  { %1242 = vadd.xlane.f32.xlu1 %v1070_v2  ;;  %1262 = vadd.xlane.f32.xlu0 %v1080_v19  ;;  %v1081_v2 = vmul.f32 %v6371_v53, %v4744_v8  ;;  %v6375_v19 = vunpack.c.h.bf16 %v4826_v42  ;;  %v1111_v53 = vmul.f32 %v6377_v15, %v4783_v16 }
 0x2e8   :  { %v1101_v33 = vmul.f32 %v6375_v19, %v4581_v52 }
 0x2ea   :  { %1302 = vadd.xlane.f32.xlu1 %v1100_v47  ;;  %1322 = vadd.xlane.f32.xlu0 %v1110_v45  ;;  %v4859_v47 = vand.u32 127, %v204_v54  ;;  %v6382_v45 = vunpack.c.l.bf16 %v4854_v24 }
 0x2ec   :  { %6588 = vst [vmem:[#allocation77_spill] sm:$0xff] %v4859_v47  ;;  %v1548_v21 = vadd.s32 4294967288, %v4859_v47  ;;  %v1072_v0 = vmul.f32 %v6382_v45, %v4533_v38  ;;  %v1555_v44 = vadd.s32 4294967280, %v4859_v47  ;;  %v6591_v45 = vunpack.c.l.bf16 %v4870_v37 }
 0x2ed   :  { %v1562_v13 = vadd.s32 4294967272, %v4859_v47  ;;  %v1569_v42 = vadd.s32 4294967264, %v4859_v47  ;;  %v1576_v28 = vadd.s32 4294967256, %v4859_v47  ;;  %v1625_v5 = vadd.s32 4294967200, %v4859_v47 }
 0x2ee   :  { %1244 = vadd.xlane.f32.xlu1 %v1071_v46  ;;  %1264 = vadd.xlane.f32.xlu0 %v1081_v2  ;;  %v4872_v46 = vld [vmem:[#allocation13 + $0x158] sm:$0xff]   ;;  %v4878_v2 = vsub.s32 %v4859_v47, %v4415_v55  ;;  %v1102_v48 = vmul.f32 %v6591_v45, %v4581_v52 }
 0x2ef   :  { %6590 = vst [vmem:[#allocation79_spill] sm:$0xff] %v4872_v46  ;;  %v4935_v27 = vsub.s32 %v1576_v28, %v4415_v55 }
 0x2f2   :  { %1304 = vadd.xlane.f32.xlu1 %v1101_v33  ;;  %1324 = vadd.xlane.f32.xlu0 %v1111_v53  ;;  %v1082_v33 = vmul.f32 %v6385_v32, %v4744_v8  ;;  %v4889_v53 = vsub.s32 %v1548_v21, %v4415_v55  ;;  %v6592_v32 = vunpack.c.l.bf16 %v4872_v46 }
 0x2f3   :  { %v4874_v54 = vpop.xlane.xlu1 %1162  ;;  %v1155_v19 = vpop.xlane.xlu0 %1154 }
 0x2f4   :  { %v1112_v61 = vmul.f32 %v6592_v32, %v4783_v16  ;;  %v1547_v34 = vrot.slane %v1155_v19, %v4878_v2 }
 0x2f6   :  { %1246 = vadd.xlane.f32.xlu1 %v1072_v0  ;;  %1266 = vadd.xlane.f32.xlu0 %v1082_v33  ;;  %v4905_v33 = vsub.s32 %v1555_v44, %v4415_v55 }
 0x2f7   :  { %v4893_v18 = vpop.xlane.xlu1 %1164  ;;  %v1157_v15 = vpop.xlane.xlu0 %1156 }
 0x2f8   :  { %v1552_v0 = vrot.slane %v1157_v15, %v4889_v53  ;;  %v6593_v15 = vunpack.c.h.bf16 %v4854_v24 }
 0x2fa   :  { %v1554_v45 = vsel %vm1553_vm1, %v1552_v0, %v1547_v34  ;;  %1306 = vadd.xlane.f32.xlu1 %v1102_v48  ;;  %1326 = vadd.xlane.f32.xlu0 %v1112_v61  ;;  %v1073_v19 = vmul.f32 %v6593_v15, %v4533_v38  ;;  %v6595_v34 = vunpack.c.h.bf16 %v4856_v58  ;;  %v4925_v61 = vsub.s32 %v1562_v13, %v4415_v55 }
 0x2fb   :  { %v4911_v32 = vpop.xlane.xlu1 %1170  ;;  %v1159_v21 = vpop.xlane.xlu0 %1158  ;;  %v1583_v0 = vadd.s32 4294967248, %v4859_v47  ;;  %v4931_v38 = vsub.s32 %v1569_v42, %v4415_v55  ;;  %v6597_v42 = vunpack.c.h.bf16 %v4870_v37  ;;  %v4965_v37 = vld [vmem:[#allocation13 + $0xd0] sm:$0xff]  }
 0x2fc   :  { %v1559_v25 = vrot.slane %v1159_v21, %v4905_v33  ;;  %v1083_v48 = vmul.f32 %v6595_v34, %v4744_v8  ;;  %v1597_v34 = vadd.s32 4294967232, %v4859_v47  ;;  %6600 = vst [vmem:[#allocation82_spill] sm:$0xff] %v4965_v37 }
 0x2fd   :  { %v1103_v15 = vmul.f32 %v6597_v42, %v4581_v52  ;;  %v1573_v13 = vrot.slane %v4874_v54, %v4931_v38  ;;  %v1604_v52 = vadd.s32 4294967224, %v4859_v47  ;;  %v4967_v54 = vld [vmem:[#allocation13 + $0x148] sm:$0xff]  }
 0x2fe   :  { %v1561_v21 = vsel %vm1560_vm2, %v1559_v25, %v1554_v45  ;;  %1248 = vadd.xlane.f32.xlu1 %v1073_v19  ;;  %1268 = vadd.xlane.f32.xlu0 %v1083_v48  ;;  %v6598_v25 = vunpack.c.h.bf16 %v4872_v46  ;;  %v4951_v19 = vsub.s32 %v1583_v0, %v4415_v55  ;;  %v1590_v48 = vadd.s32 4294967240, %v4859_v47  ;;  %6601 = vst [vmem:[#allocation83_spill] sm:$0xff] %v4967_v54 }
 0x2ff   :  { %v4940_v44 = vpop.xlane.xlu1 %1172  ;;  %v1161_v24 = vpop.xlane.xlu0 %1160  ;;  %v1611_v0 = vadd.s32 4294967216, %v4859_v47  ;;  %v4987_v36 = vsub.s32 %v1604_v52, %v4415_v55  ;;  %v6604_v52 = vunpack.c.l.bf16 %v4928_v10 }
 0x300   :  { %v1566_v58 = vrot.slane %v1161_v24, %v4925_v61  ;;  %v1113_v45 = vmul.f32 %v6598_v25, %v4783_v16  ;;  %v1580_v24 = vrot.slane %v4893_v18, %v4935_v27  ;;  %v6599_v25 = vunpack.c.l.bf16 %v4740_v29 }
 0x301   :  { %v6602_v18 = vunpack.c.l.bf16 %v4918_v22 }
 0x302   :  { %v1568_v42 = vsel %vm1567_vm3, %v1566_v58, %v1561_v21  ;;  %1308 = vadd.xlane.f32.xlu1 %v1103_v15  ;;  %1328 = vadd.xlane.f32.xlu0 %v1113_v45  ;;  %v1074_v28 = vmul.f32 %v6599_v25, %v4744_v8  ;;  %v1618_v15 = vadd.s32 4294967208, %v4859_v47  ;;  %v4977_v25 = vsub.s32 %v1590_v48, %v4415_v55 }
 0x303   :  { %v1575_v20 = vsel %vm1574_vm4, %v1573_v13, %v1568_v42  ;;  %v1175_v11 = vpop.xlane.xlu1 %1174  ;;  %v1167_v26 = vpop.xlane.xlu0 %1166  ;;  %v1084_v58 = vmul.f32 %v6602_v18, %v4744_v8  ;;  %v4981_v13 = vsub.s32 %v1597_v34, %v4415_v55  ;;  %v1114_v18 = vmul.f32 %v6604_v52, %v4783_v16 }
 0x304   :  { %v1582_v21 = vsel %vm1581_vm5, %v1580_v24, %v1575_v20  ;;  %v1587_v45 = vrot.slane %v1167_v26, %v4951_v19  ;;  %v6603_v26 = vunpack.c.h.bf16 %v4775_v3  ;;  %v4995_v24 = vsub.s32 %v1611_v0, %v4415_v55 }
 0x305   :  { %v1601_v0 = vrot.slane %v4911_v32, %v4981_v13  ;;  %v6606_v52 = vunpack.c.h.bf16 %v4918_v22 }
 0x306   :  { %v1589_v20 = vsel %vm1588_vm6, %v1587_v45, %v1582_v21  ;;  %1250 = vadd.xlane.f32.xlu1 %v1074_v28  ;;  %1270 = vadd.xlane.f32.xlu0 %v1084_v58  ;;  %v1107_v48 = vmul.f32 %v6603_v26, %v4783_v16  ;;  %v1632_v21 = vadd.s32 4294967192, %v4859_v47  ;;  %v5002_v28 = vsub.s32 %v1618_v15, %v4415_v55 }
 0x307   :  { %v1177_v42 = vpop.xlane.xlu1 %1176  ;;  %v1169_v46 = vpop.xlane.xlu0 %1168  ;;  %v5006_v45 = vsub.s32 %v1625_v5, %v4415_v55  ;;  %v6605_v26 = vunpack.c.l.bf16 %v4965_v37  ;;  %v1085_v51 = vmul.f32 %v6606_v52, %v4744_v8  ;;  %v1608_v15 = vrot.slane %v4940_v44, %v4987_v36 }
 0x308   :  { %v1594_v58 = vrot.slane %v1169_v46, %v4977_v25  ;;  %v1615_v5 = vrot.slane %v1175_v11, %v4995_v24  ;;  %v5024_v22 = vsub.s32 %v1632_v21, %v4415_v55  ;;  %v1622_v52 = vrot.slane %v1177_v42, %v5002_v28 }
 0x309   :  { %v1078_v34 = vmul.f32 %v6605_v26, %v4744_v8 }
 0x30a   :  { %v1596_v46 = vsel %vm1595_vm7, %v1594_v58, %v1589_v20  ;;  %1316 = vadd.xlane.f32.xlu1 %v1107_v48  ;;  %1330 = vadd.xlane.f32.xlu0 %v1114_v18  ;;  %v1639_v18 = vadd.s32 4294967184, %v4859_v47  ;;  %v5030_v48 = vld [vmem:[#allocation13 + $0xf0] sm:$0xff]  }
 0x30b   :  { %v1603_v32 = vsel %vm1602_vm8, %v1601_v0, %v1596_v46  ;;  %v1179_v23 = vpop.xlane.xlu1 %1178  ;;  %v5021_v26 = vpop.xlane.xlu0 %1218  ;;  %6607 = vst [vmem:[#allocation84_spill] sm:$0xff] %v5030_v48  ;;  %v6428_v0 = vunpack.c.h.bf16 %v4791_v43 }
 0x30c   :  { %v1610_v44 = vsel %vm1609_vm9, %v1608_v15, %v1603_v32  ;;  %v1629_v20 = vrot.slane %v1179_v23, %v5006_v45  ;;  %v6608_v23 = vunpack.c.l.bf16 %v4967_v54 }
 0x30d   :  { %v1617_v11 = vsel %vm1616_vm10, %v1615_v5, %v1610_v44  ;;  %v1646_v44 = vadd.s32 4294967176, %v4859_v47 }
 0x30e   :  { %v1624_v58 = vsel %vm1623_vm11, %v1622_v52, %v1617_v11  ;;  %1258 = vadd.xlane.f32.xlu1 %v1078_v34  ;;  %1272 = vadd.xlane.f32.xlu0 %v1085_v51  ;;  %v1108_v15 = vmul.f32 %v6608_v23, %v4783_v16  ;;  %v6609_v34 = vunpack.c.h.bf16 %v4928_v10  ;;  %v5047_v52 = vsub.s32 %v1639_v18, %v4415_v55 }
 0x30f   :  { %v1631_v21 = vsel %vm6543_vm12, %v1629_v20, %v1624_v58  ;;  %v1181_v42 = vpop.xlane.xlu1 %1180  ;;  %v5036_v46 = vpop.xlane.xlu0 %1222  ;;  %v5050_v20 = vld [vmem:[#allocation13 + $0x168] sm:$0xff]   ;;  %v1123_v18 = vmul.f32 %v6428_v0, %v4795_v57  ;;  %v6611_v10 = vunpack.c.l.bf16 %v5030_v48  ;;  %v6612_v0 = vunpack.c.h.bf16 %v4965_v37 }
 0x310   :  { %v1636_v5 = vrot.slane %v1181_v42, %v5024_v22  ;;  %v1115_v51 = vmul.f32 %v6609_v34, %v4783_v16  ;;  %6610 = vst [vmem:[#allocation85_spill] sm:$0xff] %v5050_v20  ;;  %v6616_v4 = vunpack.c.h.bf16 %v5050_v20 }
 0x311   :  { %v1079_v31 = vmul.f32 %v6612_v0, %v4744_v8 }
 0x312   :  { %v1638_v11 = vsel %vm1637_vm13, %v1636_v5, %v1631_v21  ;;  %1318 = vadd.xlane.f32.xlu1 %v1108_v15  ;;  %1332 = vadd.xlane.f32.xlu0 %v1115_v51  ;;  %v1086_v21 = vmul.f32 %v6611_v10, %v4744_v8  ;;  %v5065_v15 = vsub.s32 %v1646_v44, %v4415_v55  ;;  %v6613_v10 = vunpack.c.l.bf16 %v5050_v20 }
 0x313   :  { %v1183_v58 = vpop.xlane.xlu1 %1182  ;;  %v5053_v23 = vpop.xlane.xlu0 %1194 }
 0x314   :  { %v1643_v34 = vrot.slane %v1183_v58, %v5047_v52  ;;  %v6435_v58 = vunpack.c.h.bf16 %v4967_v54  ;;  %v1116_v44 = vmul.f32 %v6613_v10, %v4783_v16  ;;  %v6443_v10 = vunpack.c.h.bf16 %v4804_v62 }
 0x316   :  { %v1645_v5 = vsel %vm1644_vm14, %v1643_v34, %v1638_v11  ;;  %1348 = vadd.xlane.f32.xlu1 %v1123_v18  ;;  %1274 = vadd.xlane.f32.xlu0 %v1086_v21  ;;  %v6438_v11 = vunpack.c.h.bf16 %v5030_v48  ;;  %v1125_v59 = vmul.f32 %v6443_v10, %v4795_v57  ;;  %v6618_v10 = vunpack.c.l.bf16 %v5092_v40 }
 0x317   :  { %v1185_v51 = vpop.xlane.xlu1 %1184  ;;  %v5068_v32 = vpop.xlane.xlu0 %1284 }
 0x318   :  { %v1650_v42 = vrot.slane %v1185_v51, %v5065_v15  ;;  %v1109_v51 = vmul.f32 %v6435_v58, %v4783_v16  ;;  %v1087_v0 = vmul.f32 %v6438_v11, %v4744_v8  ;;  %v1126_v12 = vmul.f32 %v6618_v10, %v4795_v57 }
 0x31a   :  { %v5080_v34 = vsel %vm1651_vm15, %v1650_v42, %v1645_v5  ;;  %1260 = vadd.xlane.f32.xlu1 %v1079_v31  ;;  %1334 = vadd.xlane.f32.xlu0 %v1116_v44  ;;  %v5094_v42 = vld [vmem:[#allocation13 + $0xf8] sm:$0xff]  }
 0x31b   :  { %v1187_v18 = vpop.xlane.xlu1 %1186  ;;  %v5082_v21 = vpop.xlane.xlu0 %1196  ;;  %6615 = vst [vmem:[#allocation87_spill] sm:$0xff] %v5094_v42 }
 0x31c   :  { %v1656_v48 = vrot.slane %v1187_v18, %v4878_v2 }
 0x31e   :  { %1320 = vadd.xlane.f32.xlu1 %v1109_v51  ;;  %1276 = vadd.xlane.f32.xlu0 %v1087_v0  ;;  %v1117_v51 = vmul.f32 %v6616_v4, %v4783_v16  ;;  %v5108_v0 = vld [vmem:[#allocation13 + $0x170] sm:$0xff]   ;;  %v6619_v4 = vunpack.c.l.bf16 %v5094_v42 }
 0x31f   :  { %v1189_v31 = vpop.xlane.xlu1 %1188  ;;  %v5096_v5 = vpop.xlane.xlu0 %1228  ;;  %6617 = vst [vmem:[#allocation88_spill] sm:$0xff] %v5108_v0 }
 0x320   :  { %v1660_v11 = vrot.slane %v1189_v31, %v4889_v53  ;;  %v1088_v20 = vmul.f32 %v6619_v4, %v4744_v8  ;;  %v1735_v4 = vrot.slane %v5021_v26, %v4878_v2 }
 0x322   :  { %v1661_v37 = vsel %vm1553_vm1, %v1660_v11, %v1656_v48  ;;  %1352 = vadd.xlane.f32.xlu1 %v1125_v59  ;;  %1336 = vadd.xlane.f32.xlu0 %v1117_v51  ;;  %v5122_v48 = vld [vmem:[#allocation13 + $0x198] sm:$0xff]   ;;  %v5124_v59 = vld [vmem:[#allocation13 + $0x1b0] sm:$0xff]  }
 0x323   :  { %v1191_v44 = vpop.xlane.xlu1 %1190  ;;  %v5111_v58 = vpop.xlane.xlu0 %1288  ;;  %6620 = vst [vmem:[#allocation89_spill] sm:$0xff] %v5122_v48  ;;  %6621 = vst [vmem:[#allocation90_spill] sm:$0xff] %v5124_v59  ;;  %v6624_v40 = vunpack.c.l.bf16 %v5122_v48 }
 0x324   :  { %v1665_v31 = vrot.slane %v1191_v44, %v4905_v33 }
 0x326   :  { %v1666_v11 = vsel %vm1560_vm2, %v1665_v31, %v1661_v37  ;;  %1354 = vadd.xlane.f32.xlu1 %v1126_v12  ;;  %1278 = vadd.xlane.f32.xlu0 %v1088_v20  ;;  %v6623_v12 = vunpack.c.l.bf16 %v5108_v0  ;;  %v1744_v20 = vrot.slane %v5036_v46, %v4905_v33  ;;  %v6625_v46 = vunpack.c.l.bf16 %v5124_v59 }
 0x327   :  { %v1221_v51 = vpop.xlane.xlu1 %1220  ;;  %v5127_v44 = vpop.xlane.xlu0 %1230 }
 0x328   :  { %v1739_v9 = vrot.slane %v1221_v51, %v4889_v53  ;;  %v1118_v37 = vmul.f32 %v6623_v12, %v4783_v16  ;;  %v1128_v12 = vmul.f32 %v6624_v40, %v4795_v57  ;;  %v1134_v7 = vmul.f32 %v6625_v46, %v4795_v57 }
 0x329   :  { %v5186_v51 = vrot.slane %v985_v49, %v4418_v56 }
 0x32a   :  { %v1740_v31 = vsel %vm1553_vm1, %v1739_v9, %v1735_v4  ;;  %1356 = vadd.xlane.f32.xlu1 %v1127_v1  ;;  %1338 = vadd.xlane.f32.xlu0 %v1118_v37  ;;  %v5155_v1 = vld [vmem:[#allocation13 + $0x1a0] sm:$0xff]   ;;  %v5157_v4 = vld [vmem:[#allocation13 + $0x178] sm:$0xff]   ;;  %v1675_v37 = vrot.slane %v5053_v23, %v4931_v38  ;;  %v6628_v23 = vunpack.c.h.bf16 %v5122_v48 }
 0x32b   :  { %v1193_v10 = vpop.xlane.xlu1 %1192  ;;  %v5143_v18 = vpop.xlane.xlu0 %1290  ;;  %v1745_v26 = vsel %vm1560_vm2, %v1744_v20, %v1740_v31  ;;  %6626 = vst [vmem:[#allocation91_spill] sm:$0xff] %v5155_v1  ;;  %6627 = vst [vmem:[#allocation92_spill] sm:$0xff] %v5157_v4  ;;  %v6464_v9 = vunpack.c.l.bf16 %v5155_v1 }
 0x32c   :  { %v1670_v60 = vrot.slane %v1193_v10, %v4925_v61  ;;  %v1680_v10 = vrot.slane %v5082_v21, %v4935_v27  ;;  %v1129_v21 = vmul.f32 %v6628_v23, %v4795_v57 }
 0x32d   :  { %v1130_v23 = vmul.f32 %v6464_v9, %v4795_v57 }
 0x32e   :  { %v1671_v20 = vsel %vm1567_vm3, %v1670_v60, %v1666_v11  ;;  %1358 = vadd.xlane.f32.xlu1 %v1128_v12  ;;  %1370 = vadd.xlane.f32.xlu0 %v1134_v7  ;;  %v6629_v11 = vunpack.c.h.bf16 %v5124_v59  ;;  %v5180_v12 = vld [vmem:[#allocation13 + $0x1c0] sm:$0xff]   ;;  %v5198_v59 = vld [vmem:[#allocation13 + $0x1c8] sm:$0xff]  }
 0x32f   :  { %v1676_v40 = vsel %vm1574_vm4, %v1675_v37, %v1671_v20  ;;  %v1225_v31 = vpop.xlane.xlu1 %1224  ;;  %v5165_v46 = vpop.xlane.xlu0 %1202  ;;  %6630 = vst [vmem:[#allocation93_spill] sm:$0xff] %v5180_v12  ;;  %6633 = vst [vmem:[#allocation95_spill] sm:$0xff] %v5198_v59 }
 0x330   :  { %v1135_v7 = vmul.f32 %v6629_v11, %v4795_v57  ;;  %v5178_v60 = vsel %vm1581_vm5, %v1680_v10, %v1676_v40  ;;  %v6631_v10 = vunpack.c.h.bf16 %v5157_v4  ;;  %v6471_v11 = vunpack.c.h.bf16 %v5180_v12 }
 0x332   :  { %1360 = vadd.xlane.f32.xlu1 %v1129_v21  ;;  %1372 = vadd.xlane.f32.xlu0 %v1135_v7  ;;  %v1121_v40 = vmul.f32 %v6631_v10, %v4783_v16  ;;  %v5195_v21 = vld [vmem:[#allocation13 + $0x1a8] sm:$0xff]   ;;  %v1749_v7 = vrot.slane %v1225_v31, %v4925_v61  ;;  %v6634_v10 = vunpack.c.h.bf16 %v5155_v1  ;;  %v1139_v29 = vmul.f32 %v6471_v11, %v5186_v51 }
 0x333   :  { %v5182_v37 = vpop.xlane.xlu0 %1204  ;;  %v1283_v20 = vpop.xlane.xlu1 %1282  ;;  %6632 = vst [vmem:[#allocation94_spill] sm:$0xff] %v5195_v21 }
 0x334   :  { %v1131_v62 = vmul.f32 %v6634_v10, %v4795_v57  ;;  %v1893_v50 = vrot.slane %v1283_v20, %v4878_v2  ;;  %v1897_v10 = vrot.slane %v5068_v32, %v4889_v53 }
 0x336   :  { %1362 = vadd.xlane.f32.xlu1 %v1130_v23  ;;  %1344 = vadd.xlane.f32.xlu0 %v1121_v40  ;;  %v1759_v23 = vrot.slane %v5096_v5, %v4935_v27  ;;  %v1750_v40 = vsel %vm1567_vm3, %v1749_v7, %v1745_v26  ;;  %v6474_v5 = vunpack.c.h.bf16 %v5195_v21  ;;  %v6477_v26 = vunpack.c.h.bf16 %v5198_v59 }
 0x337   :  { %v5200_v49 = vpop.xlane.xlu0 %1206  ;;  %v1227_v6 = vpop.xlane.xlu1 %1226 }
 0x338   :  { %v1754_v9 = vrot.slane %v1227_v6, %v4931_v38  ;;  %v1764_v6 = vrot.slane %v5127_v44, %v4951_v19  ;;  %v6635_v44 = vunpack.c.l.bf16 %v5195_v21 }
 0x33a   :  { %v1755_v48 = vsel %vm1574_vm4, %v1754_v9, %v1750_v40  ;;  %1364 = vadd.xlane.f32.xlu1 %v1131_v62  ;;  %1380 = vadd.xlane.f32.xlu0 %v1139_v29  ;;  %v1132_v7 = vmul.f32 %v6635_v44, %v4795_v57  ;;  %v6636_v29 = vunpack.c.l.bf16 %v5198_v59  ;;  %v1898_v9 = vsel %vm1553_vm1, %v1897_v10, %v1893_v50 }
 0x33b   :  { %v1760_v11 = vsel %vm1581_vm5, %v1759_v23, %v1755_v48  ;;  %v1209_v31 = vpop.xlane.xlu0 %1208  ;;  %v1287_v1 = vpop.xlane.xlu1 %1286  ;;  %v1907_v48 = vrot.slane %v5111_v58, %v4925_v61  ;;  %v5236_v23 = vld [vmem:[#allocation13 + $0x1d0] sm:$0xff]   ;;  %v6475_v44 = vunpack.c.h.bf16 %v5094_v42  ;;  %v1133_v58 = vmul.f32 %v6474_v5, %v4795_v57 }
 0x33c   :  { %v1902_v20 = vrot.slane %v1287_v1, %v4905_v33  ;;  %v1140_v62 = vmul.f32 %v6636_v29, %v5186_v51  ;;  %v5231_v32 = vsel %vm1588_vm6, %v1764_v6, %v1760_v11  ;;  %6637 = vst [vmem:[#allocation96_spill] sm:$0xff] %v5236_v23  ;;  %v1912_v1 = vrot.slane %v5143_v18, %v4931_v38 }
 0x33d   :  { %v1141_v50 = vmul.f32 %v6477_v26, %v5186_v51  ;;  %v6476_v18 = vunpack.c.l.bf16 %v5236_v23 }
 0x33e   :  { %v1903_v40 = vsel %vm1560_vm2, %v1902_v20, %v1898_v9  ;;  %1366 = vadd.xlane.f32.xlu1 %v1132_v7  ;;  %1382 = vadd.xlane.f32.xlu0 %v1140_v62  ;;  %v6478_v7 = vunpack.c.h.bf16 %v5108_v0 }
 0x33f   :  { %v1908_v29 = vsel %vm1567_vm3, %v1907_v48, %v1903_v40  ;;  %v1211_v11 = vpop.xlane.xlu0 %1210  ;;  %v1199_v6 = vpop.xlane.xlu1 %1198  ;;  %v1089_v40 = vmul.f32 %v6475_v44, %v4744_v8  ;;  %v1142_v5 = vmul.f32 %v6476_v18, %v5186_v51  ;;  %v1705_v8 = vrot.slane %v5200_v49, %v4995_v24 }
 0x340   :  { %v5251_v10 = vsel %vm1574_vm4, %v1912_v1, %v1908_v29  ;;  %v1685_v20 = vrot.slane %v1199_v6, %v4951_v19  ;;  %v5263_v29 = vld [vmem:[#allocation13 + $0x1d8] sm:$0xff]   ;;  %v1695_v6 = vrot.slane %v5165_v46, %v4981_v13  ;;  %v6480_v46 = vunpack.c.l.bf16 %v5157_v4 }
 0x341   :  { %6638 = vst [vmem:[#allocation97_spill] sm:$0xff] %v5263_v29  ;;  %v6640_v49 = vunpack.c.h.bf16 %v5236_v23 }
 0x342   :  { %1368 = vadd.xlane.f32.xlu1 %v1133_v58  ;;  %1384 = vadd.xlane.f32.xlu0 %v1141_v50  ;;  %v1686_v58 = vsel %vm1588_vm6, %v1685_v20, %v5178_v60  ;;  %v1700_v50 = vrot.slane %v5182_v37, %v4987_v36  ;;  %v5279_v60 = vld [vmem:[#allocation13 + $0x1b8] sm:$0xff]   ;;  %v1710_v37 = vrot.slane %v1209_v31, %v5002_v28 }
 0x343   :  { %v1213_v62 = vpop.xlane.xlu0 %1212  ;;  %v1201_v48 = vpop.xlane.xlu1 %1200  ;;  %6639 = vst [vmem:[#allocation98_spill] sm:$0xff] %v5279_v60  ;;  %v6479_v31 = vunpack.c.l.bf16 %v5279_v60 }
 0x344   :  { %v1690_v9 = vrot.slane %v1201_v48, %v4977_v25 }
 0x346   :  { %v1691_v48 = vsel %vm1595_vm7, %v1690_v9, %v1686_v58  ;;  %1280 = vadd.xlane.f32.xlu1 %v1089_v40  ;;  %1386 = vadd.xlane.f32.xlu0 %v1142_v5  ;;  %v1119_v5 = vmul.f32 %v6478_v7, %v4783_v16  ;;  %v1143_v9 = vmul.f32 %v6640_v49, %v5186_v51  ;;  %v5308_v49 = vld [vmem:[#allocation13 + $0x1e0] sm:$0xff]  }
 0x347   :  { %v1696_v44 = vsel %vm1602_vm8, %v1695_v6, %v1691_v48  ;;  %v1215_v18 = vpop.xlane.xlu0 %1214  ;;  %v5275_v26 = vpop.xlane.xlu1 %1232  ;;  %v1715_v40 = vrot.slane %v1211_v11, %v5006_v45  ;;  %v1720_v58 = vrot.slane %v1213_v62, %v5024_v22  ;;  %v1120_v11 = vmul.f32 %v6480_v46, %v4783_v16  ;;  %6642 = vst [vmem:[#allocation99_spill] sm:$0xff] %v5308_v49 }
 0x348   :  { %v1701_v20 = vsel %vm1609_vm9, %v1700_v50, %v1696_v44  ;;  %v1725_v50 = vrot.slane %v1215_v18, %v5047_v52 }
 0x349   :  { %v1706_v6 = vsel %vm1616_vm10, %v1705_v8, %v1701_v20  ;;  %v6484_v8 = vunpack.c.h.bf16 %v5263_v29  ;;  %v6641_v20 = vunpack.c.l.bf16 %v5263_v29  ;;  %v1769_v29 = vrot.slane %v5275_v26, %v4977_v25 }
 0x34a   :  { %v1711_v48 = vsel %vm1623_vm11, %v1710_v37, %v1706_v6  ;;  %1340 = vadd.xlane.f32.xlu1 %v1119_v5  ;;  %1388 = vadd.xlane.f32.xlu0 %v1143_v9 }
 0x34b   :  { %v1716_v44 = vsel %vm6543_vm12, %v1715_v40, %v1711_v48  ;;  %v1217_v7 = vpop.xlane.xlu0 %1216  ;;  %v5296_v1 = vpop.xlane.xlu1 %1292  ;;  %v1144_v5 = vmul.f32 %v6641_v20, %v5186_v51  ;;  %v6481_v48 = vunpack.c.l.bf16 %v5308_v49  ;;  %v6483_v20 = vunpack.c.h.bf16 %v5279_v60 }
 0x34c   :  { %v1721_v62 = vsel %vm1637_vm13, %v1720_v58, %v1716_v44  ;;  %v1730_v37 = vrot.slane %v1217_v7, %v5065_v15  ;;  %v1136_v7 = vmul.f32 %v6479_v31, %v4795_v57  ;;  %v1145_v58 = vmul.f32 %v6484_v8, %v5186_v51 }
 0x34d   :  { %v1726_v18 = vsel %vm1644_vm14, %v1725_v50, %v1721_v62  ;;  %v6485_v44 = vunpack.c.l.bf16 %v5180_v12 }
 0x34e   :  { %v1731_v9 = vsel %vm1651_vm15, %v1730_v37, %v1726_v18  ;;  %1342 = vadd.xlane.f32.xlu1 %v1120_v11  ;;  %1390 = vadd.xlane.f32.xlu0 %v1144_v5  ;;  %v1146_v11 = vmul.f32 %v6481_v48, %v5186_v51  ;;  %v6482_v37 = vunpack.c.h.bf16 %v5308_v49  ;;  %v5339_v5 = vld [vmem:[#allocation13 + $0x1e8] sm:$0xff]   ;;  %v5351_v48 = vld [vmem:[#allocation13 + $0x1f0] sm:$0xff]  }
 0x34f   :  { %v5313_v16 = vsel %vm6506_vm0, %v1731_v9, %v5080_v34  ;;  %v5315_v40 = vpop.xlane.xlu0 %1310  ;;  %v5317_v6 = vpop.xlane.xlu1 %1234  ;;  %v1138_v62 = vmul.f32 %v6485_v44, %v5186_v51  ;;  %6643 = vst [vmem:[#allocation100_spill] sm:$0xff] %v5339_v5  ;;  %v6488_v31 = vunpack.c.l.bf16 %v5339_v5  ;;  %v6489_v46 = vunpack.c.h.bf16 %v5339_v5  ;;  %6644 = vst [vmem:[#allocation101_spill] sm:$0xff] %v5351_v48  ;;  %v5365_v44 = vld [vmem:[#allocation13 + $0x1f8] sm:$0xff]  }
 0x350   :  { %v6495_v8 = vunpack.c.l.bf16 %v5351_v48  ;;  %6645 = vst [vmem:[#allocation102_spill] sm:$0xff] %v5365_v44  ;;  %v6510_v5 = vunpack.c.h.bf16 %v5365_v44  ;;  %vm6531_vm0 = vcmask 7168   ;;  %v1774_v23 = vrot.slane %v5317_v6, %v4981_v13 }
 0x352   :  { %1374 = vadd.xlane.f32.xlu1 %v1136_v7  ;;  %1392 = vadd.xlane.f32.xlu0 %v1145_v58  ;;  %v1147_v7 = vmul.f32 %v6482_v37, %v5186_v51  ;;  %v1137_v58 = vmul.f32 %v6483_v20, %v4795_v57  ;;  %v1148_v37 = vmul.f32 %v6488_v31, %v5186_v51  ;;  %v6494_v20 = vunpack.c.h.bf16 %v5351_v48 }
 0x353   :  { %v5327_v34 = vpop.xlane.xlu0 %1312  ;;  %v5329_v50 = vpop.xlane.xlu1 %1294  ;;  %v1149_v57 = vmul.f32 %v6489_v46, %v5186_v51  ;;  %v1150_v31 = vmul.f32 %v6495_v8, %v5186_v51  ;;  %v6507_v46 = vunpack.c.l.bf16 %v5365_v44 }
 0x354   :  { %v1151_v60 = vmul.f32 %v6494_v20, %v5186_v51  ;;  %v1153_v20 = vmul.f32 %v6510_v5, %v5186_v51 }
 0x356   :  { %1394 = vadd.xlane.f32.xlu0 %v1146_v11  ;;  %1378 = vadd.xlane.f32.xlu1 %v1138_v62 }
 0x357   :  { %v5341_v18 = vpop.xlane.xlu0 %1252  ;;  %v1237_v9 = vpop.xlane.xlu1 %1236 }
 0x358   :  { %v1779_v43 = vrot.slane %v1237_v9, %v4987_v36  ;;  %v1818_v17 = vrot.slane %v5341_v18, %v4889_v53 }
 0x35a   :  { %1396 = vadd.xlane.f32.xlu0 %v1147_v7  ;;  %1376 = vadd.xlane.f32.xlu1 %v1137_v58 }
 0x35b   :  { %v5353_v11 = vpop.xlane.xlu0 %1254  ;;  %v5355_v62 = vpop.xlane.xlu1 %1296 }
 0x35e   :  { %1398 = vadd.xlane.f32.xlu0 %v1148_v37  ;;  %1400 = vadd.xlane.f32.xlu1 %v1149_v57  ;;  %v1152_v57 = vmul.f32 %v6507_v46, %v5186_v51  ;;  %v4236_v51 = vmov -1e+30  }
 0x35f   :  { %v5367_v7 = vpop.xlane.xlu0 %1256  ;;  %v1239_v58 = vpop.xlane.xlu1 %1238  ;;  %676 = vst.msk [vmem:[#allocation3] sm:$0xff] %vm6531_vm0, %v4236_v51 }
 0x360   :  { %v1784_v51 = vrot.slane %v1239_v58, %v4995_v24  ;;  %v1828_v18 = vrot.slane %v5367_v7, %v4925_v61 }
 0x362   :  { %1404 = vadd.xlane.f32.xlu0 %v1151_v60  ;;  %1402 = vadd.xlane.f32.xlu1 %v1150_v31 }
 0x363   :  { %v5377_v21 = vpop.xlane.xlu1 %1298  ;;  %v5379_v37 = vpop.xlane.xlu0 %1314 }
 0x366   :  { %1406 = vadd.xlane.f32.xlu0 %v1152_v57  ;;  %1408 = vadd.xlane.f32.xlu1 %v1153_v20  ;;  %v6647_v20 = vmov 0.0  }
 0x367   :  { %v1241_v8 = vpop.xlane.xlu1 %1240  ;;  %v5387_v48 = vpop.xlane.xlu0 %1346  ;;  %677 = vst.msk [vmem:[#allocation4] sm:$0xff] %vm6531_vm0, %v6647_v20  ;;  %v1770_v20 = vsel %vm1595_vm7, %v1769_v29, %v5231_v32  ;;  %vm6542_vm0 = vcmask 1042434  }
 0x368   :  { %v1789_v30 = vrot.slane %v1241_v8, %v5002_v28  ;;  %v1775_v39 = vsel %vm1602_vm8, %v1774_v23, %v1770_v20 }
 0x369   :  { %v1780_v6 = vsel %vm1609_vm9, %v1779_v43, %v1775_v39 }
 0x36a   :  { %v1785_v9 = vsel %vm1616_vm10, %v1784_v51, %v1780_v6 }
 0x36b   :  { %v5389_v42 = vpop.xlane.xlu1 %1300  ;;  %v5391_v60 = vpop.xlane.xlu0 %1350  ;;  %v1790_v32 = vsel %vm1623_vm11, %v1789_v30, %v1785_v9 }
 0x36c   :  { %6646 = vst [vmem:[#allocation103_spill] sm:$0xff] %v5391_v60 }
 0x36f   :  { %v1243_v31 = vpop.xlane.xlu1 %1242  ;;  %v5393_v4 = vpop.xlane.xlu0 %1262 }
 0x370   :  { %v1794_v41 = vrot.slane %v1243_v31, %v5006_v45 }
 0x372   :  { %v1795_v29 = vsel %vm6543_vm12, %v1794_v41, %v1790_v32 }
 0x373   :  { %v5395_v0 = vpop.xlane.xlu1 %1302  ;;  %v5397_v49 = vpop.xlane.xlu0 %1322 }
 0x377   :  { %v1245_v46 = vpop.xlane.xlu1 %1244  ;;  %v5399_v44 = vpop.xlane.xlu0 %1264 }
 0x378   :  { %v1799_v54 = vrot.slane %v1245_v46, %v5024_v22 }
 0x37a   :  { %v1800_v31 = vsel %vm1637_vm13, %v1799_v54, %v1795_v29 }
 0x37b   :  { %v5404_v57 = vpop.xlane.xlu1 %1304  ;;  %v5406_v5 = vpop.xlane.xlu0 %1324 }
 0x37f   :  { %v1247_v59 = vpop.xlane.xlu1 %1246  ;;  %v5412_v12 = vpop.xlane.xlu0 %1266 }
 0x380   :  { %v1804_v58 = vrot.slane %v1247_v59, %v5047_v52 }
 0x382   :  { %v1805_v3 = vsel %vm1644_vm14, %v1804_v58, %v1800_v31 }
 0x383   :  { %v5421_v26 = vpop.xlane.xlu1 %1306  ;;  %v5423_v14 = vpop.xlane.xlu0 %1326 }
 0x387   :  { %v1249_v8 = vpop.xlane.xlu1 %1248  ;;  %v1269_v23 = vpop.xlane.xlu0 %1268 }
 0x388   :  { %v1809_v20 = vrot.slane %v1249_v8, %v5065_v15 }
 0x38a   :  { %v1810_v39 = vsel %vm1651_vm15, %v1809_v20, %v1805_v3 }
 0x38b   :  { %v5437_v43 = vsel %vm6542_vm0, %v1810_v39, %v5313_v16  ;;  %v5439_v59 = vpop.xlane.xlu1 %1308  ;;  %v5441_v30 = vpop.xlane.xlu0 %1328  ;;  %vm2210_vm0 = vcmask 1043459  }
 0x38f   :  { %v1251_v41 = vpop.xlane.xlu1 %1250  ;;  %v1271_v46 = vpop.xlane.xlu0 %1270 }
 0x390   :  { %v1814_v55 = vrot.slane %v1251_v41, %v4878_v2 }
 0x392   :  { %v1819_v47 = vsel %vm1553_vm1, %v1818_v17, %v1814_v55 }
 0x393   :  { %v5443_v51 = vpop.xlane.xlu1 %1316  ;;  %v5445_v54 = vpop.xlane.xlu0 %1330 }
 0x394   :  { %6648 = vst [vmem:[#allocation104_spill] sm:$0xff] %v5445_v54 }
 0x397   :  { %v1259_v6 = vpop.xlane.xlu1 %1258  ;;  %v5447_v9 = vpop.xlane.xlu0 %1272 }
 0x398   :  { %v1833_v54 = vrot.slane %v1259_v6, %v4931_v38  ;;  %v1843_v6 = vrot.slane %v5393_v4, %v4951_v19  ;;  %v1917_v4 = vrot.slane %v5296_v1, %v4935_v27 }
 0x39a   :  { %v1918_v1 = vsel %vm1581_vm5, %v1917_v4, %v5251_v10  ;;  %v1868_v4 = vrot.slane %v5447_v9, %v5002_v28 }
 0x39b   :  { %v5449_v58 = vpop.xlane.xlu1 %1318  ;;  %v5451_v3 = vpop.xlane.xlu0 %1332 }
 0x39c   :  { %6649 = vst [vmem:[#allocation105_spill] sm:$0xff] %v5451_v3 }
 0x39f   :  { %v5453_v32 = vpop.xlane.xlu1 %1348  ;;  %v5455_v16 = vpop.xlane.xlu0 %1274 }
 0x3a3   :  { %v1261_v29 = vpop.xlane.xlu1 %1260  ;;  %v5457_v8 = vpop.xlane.xlu0 %1334 }
 0x3a4   :  { %6650 = vst [vmem:[#allocation106_spill] sm:$0xff] %v5457_v8  ;;  %v1823_v8 = vrot.slane %v5353_v11, %v4905_v33  ;;  %v1838_v41 = vrot.slane %v1261_v29, %v4935_v27 }
 0x3a6   :  { %v1824_v3 = vsel %vm1560_vm2, %v1823_v8, %v1819_v47 }
 0x3a7   :  { %v5459_v31 = vpop.xlane.xlu1 %1320  ;;  %v5461_v20 = vpop.xlane.xlu0 %1276 }
 0x3ab   :  { %v5463_v39 = vpop.xlane.xlu1 %1352  ;;  %v5465_v35 = vpop.xlane.xlu0 %1336 }
 0x3ac   :  { %6651 = vst [vmem:[#allocation107_spill] sm:$0xff] %v5465_v35 }
 0x3af   :  { %v5470_v63 = vpop.xlane.xlu1 %1354  ;;  %v5472_v56 = vpop.xlane.xlu0 %1278 }
 0x3b0   :  { %6652 = vst [vmem:[#allocation108_spill] sm:$0xff] %v5470_v63  ;;  %v1829_v63 = vsel %vm1567_vm3, %v1828_v18, %v1824_v3  ;;  %v1848_v3 = vrot.slane %v5399_v44, %v4977_v25  ;;  %v1927_v44 = vrot.slane %v5355_v62, %v4977_v25  ;;  %v1942_v62 = vrot.slane %v5395_v0, %v4995_v24 }
 0x3b1   :  { %v1834_v55 = vsel %vm1574_vm4, %v1833_v54, %v1829_v63  ;;  %v1853_v54 = vrot.slane %v5412_v12, %v4981_v13 }
 0x3b2   :  { %v1839_v47 = vsel %vm1581_vm5, %v1838_v41, %v1834_v55  ;;  %v1922_v55 = vrot.slane %v5329_v50, %v4951_v19  ;;  %v1937_v50 = vrot.slane %v5389_v42, %v4987_v36 }
 0x3b3   :  { %v5479_v60 = vpop.xlane.xlu1 %1356  ;;  %v5481_v35 = vpop.xlane.xlu0 %1338  ;;  %v1844_v8 = vsel %vm1588_vm6, %v1843_v6, %v1839_v47  ;;  %v1858_v47 = vrot.slane %v1269_v23, %v4987_v36  ;;  %v1863_v23 = vrot.slane %v1271_v46, %v4995_v24  ;;  %v1952_v46 = vrot.slane %v5421_v26, %v5006_v45 }
 0x3b4   :  { %6653 = vst [vmem:[#allocation109_spill] sm:$0xff] %v5481_v35  ;;  %v1849_v63 = vsel %vm1595_vm7, %v1848_v3, %v1844_v8  ;;  %v1932_v8 = vrot.slane %v5377_v21, %v4981_v13  ;;  %v1947_v21 = vrot.slane %v5404_v57, %v5002_v28  ;;  %v1976_v57 = vrot.slane %v5443_v51, %v4889_v53 }
 0x3b5   :  { %v1854_v41 = vsel %vm1602_vm8, %v1853_v54, %v1849_v63  ;;  %v1923_v63 = vsel %vm1588_vm6, %v1922_v55, %v1918_v1  ;;  %v1957_v55 = vrot.slane %v5439_v59, %v5024_v22  ;;  %v1972_v26 = vrot.slane %v5379_v37, %v4878_v2 }
 0x3b6   :  { %v1859_v3 = vsel %vm1609_vm9, %v1858_v47, %v1854_v41  ;;  %v1928_v54 = vsel %vm1595_vm7, %v1927_v44, %v1923_v63  ;;  %v1873_v1 = vrot.slane %v5455_v16, %v5006_v45  ;;  %v1986_v59 = vrot.slane %v5459_v31, %v4925_v61 }
 0x3b7   :  { %v5488_v17 = vpop.xlane.xlu1 %1358  ;;  %v5490_v11 = vpop.xlane.xlu0 %1370  ;;  %v1864_v41 = vsel %vm1616_vm10, %v1863_v23, %v1859_v3  ;;  %v1933_v42 = vsel %vm1602_vm8, %v1932_v8, %v1928_v54  ;;  %v1981_v3 = vrot.slane %v5449_v58, %v4905_v33  ;;  %v1977_v63 = vsel %vm1553_vm1, %v1976_v57, %v1972_v26 }
 0x3b8   :  { %v1938_v0 = vsel %vm1609_vm9, %v1937_v50, %v1933_v42  ;;  %v1869_v8 = vsel %vm1623_vm11, %v1868_v4, %v1864_v41  ;;  %v1962_v16 = vrot.slane %v5315_v40, %v5047_v52  ;;  %v1878_v54 = vrot.slane %v5461_v20, %v5024_v22 }
 0x3b9   :  { %v1943_v44 = vsel %vm1616_vm10, %v1942_v62, %v1938_v0  ;;  %v1874_v37 = vsel %vm6543_vm12, %v1873_v1, %v1869_v8  ;;  %v1883_v62 = vrot.slane %v5472_v56, %v5047_v52  ;;  %v1982_v31 = vsel %vm1560_vm2, %v1981_v3, %v1977_v63 }
 0x3ba   :  { %v1948_v9 = vsel %vm1623_vm11, %v1947_v21, %v1943_v44  ;;  %v1987_v21 = vsel %vm1567_vm3, %v1986_v59, %v1982_v31  ;;  %v1879_v56 = vsel %vm1637_vm13, %v1878_v54, %v1874_v37  ;;  %v1967_v0 = vrot.slane %v5327_v34, %v5065_v15  ;;  %v6654_v31 = vld [vmem:[#allocation103_spill] sm:$0xff] }
 0x3bb   :  { %v5496_v35 = vpop.xlane.xlu1 %1360  ;;  %v5498_v7 = vpop.xlane.xlu0 %1372  ;;  %v1953_v23 = vsel %vm6543_vm12, %v1952_v46, %v1948_v9  ;;  %v1991_v46 = vrot.slane %v5397_v49, %v4931_v38  ;;  %v1884_v20 = vsel %vm1644_vm14, %v1883_v62, %v1879_v56  ;;  %vm2212_vm12 = vcmask 1044484  }
 0x3bc   :  { %v1958_v58 = vsel %vm1637_vm13, %v1957_v55, %v1953_v23  ;;  %v1996_v44 = vrot.slane %v5406_v5, %v4935_v27  ;;  %v2001_v1 = vrot.slane %v5423_v14, %v4951_v19  ;;  %v2055_v59 = vrot.slane %v5453_v32, %v4889_v53 }
 0x3bd   :  { %v1963_v4 = vsel %vm1644_vm14, %v1962_v16, %v1958_v58  ;;  %v1992_v55 = vsel %vm1574_vm4, %v1991_v46, %v1987_v21  ;;  %v2006_v63 = vrot.slane %v5441_v30, %v4977_v25  ;;  %v2065_v62 = vrot.slane %v5463_v39, %v4925_v61  ;;  %v6655_v21 = vld [vmem:[#allocation104_spill] sm:$0xff] }
 0x3be   :  { %v1968_v49 = vsel %vm1651_vm15, %v1967_v0, %v1963_v4  ;;  %v1997_v9 = vsel %vm1581_vm5, %v1996_v44, %v1992_v55  ;;  %v2060_v54 = vrot.slane %v6654_v31, %v4905_v33  ;;  %v2075_v30 = vrot.slane %v5479_v60, %v4935_v27 }
 0x3bf   :  { %v5505_v29 = vpop.xlane.xlu1 %1362  ;;  %v5507_v18 = vpop.xlane.xlu0 %1344  ;;  %v2002_v58 = vsel %vm1588_vm6, %v2001_v1, %v1997_v9  ;;  %v2080_v56 = vrot.slane %v5488_v17, %v4951_v19  ;;  %v2085_v44 = vrot.slane %v5496_v35, %v4977_v25 }
 0x3c0   :  { %v2007_v14 = vsel %vm1595_vm7, %v2006_v63, %v2002_v58  ;;  %v2090_v9 = vrot.slane %v5505_v29, %v4981_v13 }
 0x3c3   :  { %v5517_v6 = vpop.xlane.xlu1 %1364  ;;  %v5519_v12 = vpop.xlane.xlu0 %1380 }
 0x3c4   :  { %v2134_v17 = vrot.slane %v5519_v12, %v4889_v53 }
 0x3c7   :  { %v5536_v47 = vpop.xlane.xlu1 %1366  ;;  %v5538_v10 = vpop.xlane.xlu0 %1382 }
 0x3c8   :  { %v2139_v35 = vrot.slane %v5538_v10, %v4905_v33  ;;  %v2100_v29 = vrot.slane %v5536_v47, %v4995_v24 }
 0x3cb   :  { %v5561_v50 = vpop.xlane.xlu1 %1368  ;;  %v5563_v51 = vpop.xlane.xlu0 %1384 }
 0x3cc   :  { %v2144_v53 = vrot.slane %v5563_v51, %v4925_v61 }
 0x3cf   :  { %v1281_v41 = vpop.xlane.xlu1 %1280  ;;  %v5577_v42 = vpop.xlane.xlu0 %1386 }
 0x3d0   :  { %v1888_v40 = vrot.slane %v1281_v41, %v5065_v15  ;;  %v2011_v41 = vrot.slane %v6655_v21, %v4981_v13 }
 0x3d2   :  { %v1889_v57 = vsel %vm1651_vm15, %v1888_v40, %v1884_v20  ;;  %v2012_v39 = vsel %vm1602_vm8, %v2011_v41, %v2007_v14  ;;  %v6657_v40 = vld [vmem:[#allocation105_spill] sm:$0xff]  ;;  %v6658_v20 = vld [vmem:[#allocation106_spill] sm:$0xff]  ;;  %v6659_v14 = vld [vmem:[#allocation107_spill] sm:$0xff] }
 0x3d3   :  { %v2211_v3 = vsel %vm2210_vm0, %v1889_v57, %v5437_v43  ;;  %v5594_v8 = vpop.xlane.xlu1 %1340  ;;  %v1389_v26 = vpop.xlane.xlu0 %1388  ;;  %v2051_v43 = vrot.slane %v5387_v48, %v4878_v2  ;;  %v6656_v48 = vld [vmem:[#allocation108_spill] sm:$0xff]  ;;  %v2016_v0 = vrot.slane %v6657_v40, %v4987_v36  ;;  %v2021_v55 = vrot.slane %v6658_v20, %v4995_v24 }
 0x3d4   :  { %v5597_v34 = vsel %vm2212_vm12, %v1968_v49, %v2211_v3  ;;  %v2070_v46 = vrot.slane %v6656_v48, %v4931_v38  ;;  %v2026_v47 = vrot.slane %v6659_v14, %v5002_v28  ;;  %v2154_v61 = vrot.slane %v1389_v26, %v4935_v27 }
 0x3d5   :  { %v2056_v37 = vsel %vm1553_vm1, %v2055_v59, %v2051_v43  ;;  %v2017_v59 = vsel %vm1609_vm9, %v2016_v0, %v2012_v39  ;;  %v2095_v43 = vrot.slane %v5517_v6, %v4987_v36  ;;  %v2149_v6 = vrot.slane %v5577_v42, %v4931_v38  ;;  %v6660_v42 = vld [vmem:[#allocation109_spill] sm:$0xff] }
 0x3d6   :  { %v2061_v4 = vsel %vm1560_vm2, %v2060_v54, %v2056_v37  ;;  %v2105_v37 = vrot.slane %v5561_v50, %v5002_v28  ;;  %v2022_v54 = vsel %vm1616_vm10, %v2021_v55, %v2017_v59  ;;  %v2031_v41 = vrot.slane %v6660_v42, %v5006_v45  ;;  %v6668_v42 = vld [vmem:[#allocation36_spill] sm:$0xff] }
 0x3d7   :  { %v5604_v5 = vpop.xlane.xlu1 %1342  ;;  %v1391_v23 = vpop.xlane.xlu0 %1390  ;;  %v2066_v57 = vsel %vm1567_vm3, %v2065_v62, %v2061_v4  ;;  %v2036_v26 = vrot.slane %v5594_v8, %v5024_v22  ;;  %v2027_v0 = vsel %vm1623_vm11, %v2026_v47, %v2022_v54  ;;  %v2110_v8 = vrot.slane %v5490_v11, %v5006_v45  ;;  %v6666_v54 = vld [vmem:[#allocation34_spill] sm:$0xff] }
 0x3d8   :  { %v2071_v3 = vsel %vm1574_vm4, %v2070_v46, %v2066_v57  ;;  %v2159_v21 = vrot.slane %v1391_v23, %v4951_v19  ;;  %v2115_v55 = vrot.slane %v5498_v7, %v5024_v22 }
 0x3d9   :  { %v2076_v58 = vsel %vm1581_vm5, %v2075_v30, %v2071_v3 }
 0x3da   :  { %v2081_v63 = vsel %vm1588_vm6, %v2080_v56, %v2076_v58  ;;  %v2041_v56 = vrot.slane %v5604_v5, %v5047_v52 }
 0x3db   :  { %v5615_v16 = vpop.xlane.xlu1 %1374  ;;  %v1393_v32 = vpop.xlane.xlu0 %1392  ;;  %v2086_v12 = vsel %vm1595_vm7, %v2085_v44, %v2081_v63 }
 0x3dc   :  { %v2091_v31 = vsel %vm1602_vm8, %v2090_v9, %v2086_v12  ;;  %v2164_v46 = vrot.slane %v1393_v32, %v4977_v25  ;;  %v2120_v44 = vrot.slane %v5615_v16, %v5047_v52 }
 0x3dd   :  { %v2096_v50 = vsel %vm1609_vm9, %v2095_v43, %v2091_v31 }
 0x3de   :  { %v2101_v48 = vsel %vm1616_vm10, %v2100_v29, %v2096_v50 }
 0x3df   :  { %v1395_v49 = vpop.xlane.xlu0 %1394  ;;  %v1379_v60 = vpop.xlane.xlu1 %1378  ;;  %v2106_v27 = vsel %vm1623_vm11, %v2105_v37, %v2101_v48  ;;  %v6669_v48 = vld [vmem:[#allocation33_spill] sm:$0xff] }
 0x3e0   :  { %v2130_v1 = vrot.slane %v1379_v60, %v4878_v2  ;;  %v2169_v4 = vrot.slane %v1395_v49, %v4981_v13 }
 0x3e2   :  { %v2135_v2 = vsel %vm1553_vm1, %v2134_v17, %v2130_v1  ;;  %vm6661_vm1 = vcmask 851712  }
 0x3e3   :  { %v2140_v33 = vsel %vm1560_vm2, %v2139_v35, %v2135_v2  ;;  %v1397_v10 = vpop.xlane.xlu0 %1396  ;;  %v1377_v62 = vpop.xlane.xlu1 %1376  ;;  %v2032_v20 = vsel %vm6661_vm1, %v2031_v41, %v2027_v0  ;;  %vm6662_vm2 = vmmov %vm6661_vm1  ;;  %v6664_v2 = vld [vmem:[#allocation77_spill] sm:$0xff] }
 0x3e4   :  { %v2145_v51 = vsel %vm1567_vm3, %v2144_v53, %v2140_v33  ;;  %v2174_v25 = vrot.slane %v1397_v10, %v4987_v36  ;;  %v2111_v36 = vsel %vm6662_vm2, %v2110_v8, %v2106_v27  ;;  %v2125_v9 = vrot.slane %v1377_v62, %v5065_v15  ;;  %vm6663_vm3 = vmmov %vm6661_vm1  ;;  %v5723_v10 = vld [vmem:[#allocation3] sm:$0xff] }
 0x3e5   :  { %v2150_v38 = vsel %vm1574_vm4, %v2149_v6, %v2145_v51  ;;  %v2116_v59 = vsel %vm1637_vm13, %v2115_v55, %v2111_v36  ;;  %vm2214_vm4 = vcmask 1045509   ;;  %v2524_v27 = vsub.s32 4, %v6669_v48 }
 0x3e6   :  { %v2155_v30 = vsel %vm1581_vm5, %v2154_v61, %v2150_v38  ;;  %v2121_v43 = vsel %vm1644_vm14, %v2120_v44, %v2116_v59  ;;  %vm2216_vm5 = vcmask 1046534  }
 0x3e7   :  { %v2160_v19 = vsel %vm1588_vm6, %v2159_v21, %v2155_v30  ;;  %v1399_v23 = vpop.xlane.xlu0 %1398  ;;  %v1401_v39 = vpop.xlane.xlu1 %1400  ;;  %v2126_v29 = vsel %vm1651_vm15, %v2125_v9, %v2121_v43  ;;  %vm2218_vm6 = vcmask 1047559   ;;  %v6667_v21 = vld [vmem:[#allocation35_spill] sm:$0xff] }
 0x3e8   :  { %v2165_v40 = vsel %vm1595_vm7, %v2164_v46, %v2160_v19  ;;  %v2179_v32 = vrot.slane %v1399_v23, %v4995_v24  ;;  %v2184_v57 = vrot.slane %v1401_v39, %v5002_v28  ;;  %v2037_v24 = vsel %vm1637_vm13, %v2036_v26, %v2032_v20 }
 0x3e9   :  { %v2170_v13 = vsel %vm1602_vm8, %v2169_v4, %v2165_v40  ;;  %v2042_v3 = vsel %vm1644_vm14, %v2041_v56, %v2037_v24  ;;  %v2046_v28 = vrot.slane %v5507_v18, %v5065_v15  ;;  %vm1415_vm7 = vcmp.lt.s32.totalorder %v6664_v2, 8 }
 0x3ea   :  { %v2175_v5 = vsel %vm1609_vm9, %v2174_v25, %v2170_v13  ;;  %vm6665_vm8 = vcmask 7168   ;;  %v2457_v46 = vsub.s32 3, %v6669_v48  ;;  %v2591_v4 = vsub.s32 5, %v6669_v48 }
 0x3eb   :  { %v2180_v11 = vsel %vm1616_vm10, %v2179_v32, %v2175_v5  ;;  %v1405_v49 = vpop.xlane.xlu0 %1404  ;;  %v1403_v60 = vpop.xlane.xlu1 %1402  ;;  %v2047_v58 = vsel %vm1651_vm15, %v2046_v28, %v2042_v3  ;;  %v2658_v23 = vsub.s32 6, %v6669_v48  ;;  %v2725_v56 = vsub.s32 7, %v6669_v48  ;;  %v2240_v5 = vld [vmem:[#allocation4] sm:$0xff]  ;;  %vm6670_vm9 = vmmov %vm6665_vm8 }
 0x3ec   :  { %v2185_v7 = vsel %vm1623_vm11, %v2184_v57, %v2180_v11  ;;  %v2189_v17 = vrot.slane %v1403_v60, %v5006_v45  ;;  %v2194_v1 = vrot.slane %v1405_v49, %v5024_v22  ;;  %v2215_v12 = vsel %vm2214_vm4, %v2047_v58, %v5597_v34 }
 0x3ed   :  { %v2217_v6 = vsel %vm2216_vm5, %v2126_v29, %v2215_v12  ;;  %vm6847_vm10 = vcmask 1041409   ;;  %vm6850_vm11 = vcmask 1042434  }
 0x3ee   :  { %v2190_v16 = vsel %vm6663_vm3, %v2189_v17, %v2185_v7 }
 0x3ef   :  { %v1407_v35 = vpop.xlane.xlu0 %1406  ;;  %v1409_v63 = vpop.xlane.xlu1 %1408  ;;  %v2195_v22 = vsel %vm1637_vm13, %v2194_v1, %v2190_v16 }
 0x3f0   :  { %v2199_v45 = vrot.slane %v1407_v35, %v5047_v52  ;;  %v2204_v53 = vrot.slane %v1409_v63, %v5065_v15  ;;  %v4237_v15 = vmov 0  }
 0x3f1   :  { %3963 = vset.pattern.permute.xlu1 %v4237_v15  ;;  %3964 = vset.pattern.permute.xlu0 %v4237_v15 }
 0x3f2   :  { %v2200_v18 = vsel %vm1644_vm14, %v2199_v45, %v2195_v22 }
 0x3f3   :  { %v2205_v37 = vsel %vm1651_vm15, %v2204_v53, %v2200_v18 }
 0x3f4   :  { %v2219_v33 = vsel %vm2218_vm6, %v2205_v37, %v2217_v6 }
 0x3f5   :  { %v5720_v52 = vsel %vm1415_vm7, %v2219_v33, -1e+30 }
 0x3f6   :  { %2226 = vmax.xlane.f32.xlu0 %v5720_v52 }
 0x47f   :  { %v2227_v62 = vpop.xlane.xlu0 %2226 }
 0x480   :  { %v5726_v14 = vmax.f32 %v5723_v10, %v2227_v62 }
 0x482   :  { %v2229_v34 = vsub.f32 %v5723_v10, %v5726_v14  ;;  %3104 = vst.msk [vmem:[#allocation3] sm:$0xff] %vm6665_vm8, %v5726_v14  ;;  %2234 = vperm.xlu1 %3963, %v5726_v14   ;;  %v6671_v14 = vld [vmem:[#allocation44_spill] sm:$0xff] }
 0x484   :  { %v2230_v25 = vmul.f32 1.442695, %v2229_v34  ;;  %v6672_v34 = vunpack.c.h.bf16 %v6671_v14 }
 0x4fd   :  { %v2235_v47 = vpop.permute.xlu1 %2234 }
 0x4fe   :  { %v2237_v31 = vsub.f32 %v5720_v52, %v2235_v47 }
 0x500   :  { %v2238_v61 = vmul.f32 1.442695, %v2237_v31  ;;  %v6673_v31 = vld [vmem:[#allocation68_spill] sm:$0xff] }
 0x501   :  { %v6676_v48 = vunpack.c.l.bf16 %v6673_v31 }
 0x502   :  { %3975 = vpow2.f32 %v2238_v61  ;;  %v6674_v61 = vunpack.c.h.bf16 %v6673_v31 }
 0x503   :  { %3977 = vpow2.f32 %v2230_v25  ;;  %v6679_v25 = vld [vmem:[#allocation50_spill] sm:$0xff] }
 0x50f   :  { %v3976_v51 = vpop.eup %3975 }
 0x510   :  { %2242 = vadd.xlane.f32.xlu0 %v3976_v51  ;;  %v5735_v50 = vrot.slane %v3976_v51, %v6666_v54  ;;  %v5739_v38 = vrot.slane %v3976_v51, %v6667_v21  ;;  %v5744_v41 = vrot.slane %v3976_v51, %v6668_v42  ;;  %v5749_v30 = vrot.slane %v3976_v51, %v2457_v46  ;;  %v5832_v55 = vpop.eup %3977 }
 0x511   :  { %v5756_v26 = vrot.slane %v3976_v51, %v2524_v27  ;;  %v5763_v19 = vrot.slane %v3976_v51, %v2591_v4  ;;  %v5770_v39 = vrot.slane %v3976_v51, %v2658_v23  ;;  %v5779_v40 = vrot.slane %v3976_v51, %v2725_v56  ;;  %v6677_v27 = vld [vmem:[#allocation83_spill] sm:$0xff] }
 0x512   :  { %2263 = vbcast.lane.b32.xlu1 %v5735_v50, 264  ;;  %v2241_v36 = vmul.f32 %v5832_v55, %v2240_v5  ;;  %v6675_v54 = vunpack.c.l.bf16 %v6671_v14  ;;  %v6678_v4 = vunpack.c.l.bf16 %v6677_v27  ;;  %v6680_v5 = vunpack.c.h.bf16 %v6679_v25  ;;  %v6684_v14 = vld [vmem:[#allocation52_spill] sm:$0xff] }
 0x516   :  { %2326 = vbcast.lane.b32.xlu1 %v5739_v38, 256 }
 0x51a   :  { %2330 = vbcast.lane.b32.xlu1 %v5739_v38, 264 }
 0x51e   :  { %2393 = vbcast.lane.b32.xlu1 %v5744_v41, 256 }
 0x522   :  { %2267 = vbcast.lane.b32.xlu1 %v5735_v50, 272 }
 0x526   :  { %2460 = vbcast.lane.b32.xlu1 %v5749_v30, 256  ;;  %2259 = vbcast.lane.b32.xlu0 %v5735_v50, 256 }
 0x52a   :  { %2401 = vbcast.lane.b32.xlu1 %v5744_v41, 272  ;;  %2397 = vbcast.lane.b32.xlu0 %v5744_v41, 264 }
 0x52e   :  { %2531 = vbcast.lane.b32.xlu1 %v5756_v26, 264  ;;  %2334 = vbcast.lane.b32.xlu0 %v5739_v38, 272 }
 0x532   :  { %2338 = vbcast.lane.b32.xlu1 %v5739_v38, 280  ;;  %2464 = vbcast.lane.b32.xlu0 %v5749_v30, 264 }
 0x536   :  { %2594 = vbcast.lane.b32.xlu1 %v5763_v19, 256  ;;  %2527 = vbcast.lane.b32.xlu0 %v5756_v26, 256 }
 0x53a   :  { %2405 = vbcast.lane.b32.xlu1 %v5744_v41, 280  ;;  %2271 = vbcast.lane.b32.xlu0 %v5735_v50, 280 }
 0x53e   :  { %2661 = vbcast.lane.b32.xlu1 %v5770_v39, 256  ;;  %2468 = vbcast.lane.b32.xlu0 %v5749_v30, 272 }
 0x542   :  { %2275 = vbcast.lane.b32.xlu1 %v5735_v50, 288  ;;  %2598 = vbcast.lane.b32.xlu0 %v5763_v19, 264 }
 0x546   :  { %2472 = vbcast.lane.b32.xlu1 %v5749_v30, 280  ;;  %2535 = vbcast.lane.b32.xlu0 %v5756_v26, 272 }
 0x54a   :  { %2728 = vbcast.lane.b32.xlu1 %v5779_v40, 256  ;;  %2665 = vbcast.lane.b32.xlu0 %v5770_v39, 264 }
 0x54e   :  { %2409 = vbcast.lane.b32.xlu1 %v5744_v41, 288  ;;  %2342 = vbcast.lane.b32.xlu0 %v5739_v38, 288 }
 0x552   :  { %2669 = vbcast.lane.b32.xlu1 %v5770_v39, 272  ;;  %2602 = vbcast.lane.b32.xlu0 %v5763_v19, 272 }
 0x556   :  { %2346 = vbcast.lane.b32.xlu1 %v5739_v38, 296  ;;  %2732 = vbcast.lane.b32.xlu0 %v5779_v40, 264 }
 0x55a   :  { %2606 = vbcast.lane.b32.xlu1 %v5763_v19, 280  ;;  %2539 = vbcast.lane.b32.xlu0 %v5756_v26, 280 }
 0x55e   :  { %2413 = vbcast.lane.b32.xlu1 %v5744_v41, 296  ;;  %2279 = vbcast.lane.b32.xlu0 %v5735_v50, 296 }
 0x562   :  { %2673 = vbcast.lane.b32.xlu1 %v5770_v39, 280  ;;  %2476 = vbcast.lane.b32.xlu0 %v5749_v30, 288 }
 0x566   :  { %2350 = vbcast.lane.b32.xlu1 %v5739_v38, 304  ;;  %2736 = vbcast.lane.b32.xlu0 %v5779_v40, 272 }
 0x56a   :  { %2610 = vbcast.lane.b32.xlu1 %v5763_v19, 288  ;;  %2543 = vbcast.lane.b32.xlu0 %v5756_v26, 288 }
 0x56e   :  { %2417 = vbcast.lane.b32.xlu1 %v5744_v41, 304  ;;  %2283 = vbcast.lane.b32.xlu0 %v5735_v50, 304 }
 0x572   :  { %2677 = vbcast.lane.b32.xlu1 %v5770_v39, 288  ;;  %2480 = vbcast.lane.b32.xlu0 %v5749_v30, 296 }
 0x576   :  { %2354 = vbcast.lane.b32.xlu1 %v5739_v38, 312  ;;  %2740 = vbcast.lane.b32.xlu0 %v5779_v40, 280 }
 0x57a   :  { %2614 = vbcast.lane.b32.xlu1 %v5763_v19, 296  ;;  %2547 = vbcast.lane.b32.xlu0 %v5756_v26, 296 }
 0x57e   :  { %2421 = vbcast.lane.b32.xlu1 %v5744_v41, 312  ;;  %2287 = vbcast.lane.b32.xlu0 %v5735_v50, 312 }
 0x582   :  { %2681 = vbcast.lane.b32.xlu1 %v5770_v39, 296  ;;  %2484 = vbcast.lane.b32.xlu0 %v5749_v30, 304 }
 0x584   :  { %v5814_v32 = vpop.permute.xlu1 %2263 }
 0x586   :  { %2358 = vbcast.lane.b32.xlu1 %v5739_v38, 320  ;;  %2744 = vbcast.lane.b32.xlu0 %v5779_v40, 288 }
 0x588   :  { %v5818_v0 = vpop.permute.xlu1 %2326 }
 0x58a   :  { %2618 = vbcast.lane.b32.xlu1 %v5763_v19, 304  ;;  %2551 = vbcast.lane.b32.xlu0 %v5756_v26, 304 }
 0x58c   :  { %v5822_v8 = vpop.permute.xlu1 %2330 }
 0x58e   :  { %2425 = vbcast.lane.b32.xlu1 %v5744_v41, 320  ;;  %2291 = vbcast.lane.b32.xlu0 %v5735_v50, 320 }
 0x590   :  { %v5826_v13 = vpop.permute.xlu1 %2393 }
 0x591   :  { %v2822_v21 = vmul.f32 %v6675_v54, %v5826_v13  ;;  %v6681_v13 = vunpack.c.l.bf16 %v6679_v25  ;;  %v6688_v25 = vld [vmem:[#allocation51_spill] sm:$0xff] }
 0x592   :  { %2685 = vbcast.lane.b32.xlu1 %v5770_v39, 304  ;;  %2488 = vbcast.lane.b32.xlu0 %v5749_v30, 312 }
 0x594   :  { %v5830_v20 = vpop.permute.xlu1 %2267 }
 0x596   :  { %2362 = vbcast.lane.b32.xlu1 %v5739_v38, 328  ;;  %2748 = vbcast.lane.b32.xlu0 %v5779_v40, 296 }
 0x598   :  { %v5836_v57 = vpop.permute.xlu1 %2460 }
 0x599   :  { %v2243_v24 = vpop.xlane.xlu0 %2242 }
 0x59a   :  { %v2244_v44 = vadd.f32 %v2243_v24, %v2241_v36  ;;  %2622 = vbcast.lane.b32.xlu1 %v5763_v19, 312  ;;  %2555 = vbcast.lane.b32.xlu0 %v5756_v26, 312  ;;  %v2807_v36 = vmul.f32 %v6680_v5, %v5822_v8 }
 0x59c   :  { %2246 = vst.msk [vmem:[#allocation4] sm:$0xff] %vm6670_vm9, %v2244_v44  ;;  %v5842_v11 = vpop.permute.xlu1 %2401 }
 0x59d   :  { %v5844_v49 = vpop.permute.xlu0 %2259 }
 0x59e   :  { %2429 = vbcast.lane.b32.xlu1 %v5744_v41, 328  ;;  %2295 = vbcast.lane.b32.xlu0 %v5735_v50, 328 }
 0x5a0   :  { %v5848_v60 = vpop.permute.xlu1 %2531 }
 0x5a1   :  { %v2398_v3 = vpop.permute.xlu0 %2397 }
 0x5a2   :  { %2689 = vbcast.lane.b32.xlu1 %v5770_v39, 312  ;;  %2492 = vbcast.lane.b32.xlu0 %v5749_v30, 320  ;;  %v2823_v47 = vmul.f32 %v6672_v34, %v2398_v3  ;;  %v2806_v3 = vmul.f32 %v6681_v13, %v5818_v0  ;;  %v6685_v34 = vunpack.c.l.bf16 %v6684_v14  ;;  %v6689_v0 = vunpack.c.l.bf16 %v6688_v25 }
 0x5a4   :  { %v5852_v9 = vpop.permute.xlu1 %2338  ;;  %v2960_v24 = vadd.f32 %v2823_v47, %v2822_v21  ;;  %v6687_v21 = vunpack.c.h.bf16 %v6677_v27 }
 0x5a5   :  { %v2335_v7 = vpop.permute.xlu0 %2334 }
 0x5a6   :  { %2366 = vbcast.lane.b32.xlu1 %v5739_v38, 336  ;;  %2752 = vbcast.lane.b32.xlu0 %v5779_v40, 304  ;;  %v2808_v31 = vmul.f32 %v6685_v34, %v2335_v7  ;;  %v6696_v34 = vunpack.c.h.bf16 %v6684_v14 }
 0x5a8   :  { %v2595_v17 = vpop.permute.xlu1 %2594 }
 0x5a9   :  { %v5856_v28 = vpop.permute.xlu0 %2464  ;;  %v2870_v46 = vmul.f32 %v6676_v48, %v2595_v17  ;;  %v6682_v17 = vld [vmem:[#allocation45_spill] sm:$0xff] }
 0x5aa   :  { %2626 = vbcast.lane.b32.xlu1 %v5763_v19, 320  ;;  %2559 = vbcast.lane.b32.xlu0 %v5756_v26, 320 }
 0x5ac   :  { %v2406_v1 = vpop.permute.xlu1 %2405 }
 0x5ad   :  { %v5860_v59 = vpop.permute.xlu0 %2527 }
 0x5ae   :  { %2433 = vbcast.lane.b32.xlu1 %v5744_v41, 336  ;;  %2299 = vbcast.lane.b32.xlu0 %v5735_v50, 336 }
 0x5b0   :  { %v5864_v16 = vpop.permute.xlu1 %2661 }
 0x5b1   :  { %v5866_v58 = vpop.permute.xlu0 %2271 }
 0x5b2   :  { %2693 = vbcast.lane.b32.xlu1 %v5770_v39, 320  ;;  %2496 = vbcast.lane.b32.xlu0 %v5749_v30, 328 }
 0x5b4   :  { %v5870_v43 = vpop.permute.xlu1 %2275 }
 0x5b5   :  { %v5872_v35 = vpop.permute.xlu0 %2468 }
 0x5b6   :  { %2370 = vbcast.lane.b32.xlu1 %v5739_v38, 344  ;;  %2756 = vbcast.lane.b32.xlu0 %v5779_v40, 312 }
 0x5b8   :  { %v5876_v63 = vpop.permute.xlu1 %2472 }
 0x5b9   :  { %v2599_v29 = vpop.permute.xlu0 %2598 }
 0x5ba   :  { %2630 = vbcast.lane.b32.xlu1 %v5763_v19, 328  ;;  %2563 = vbcast.lane.b32.xlu0 %v5756_v26, 328  ;;  %v2871_v51 = vmul.f32 %v6674_v61, %v2599_v29  ;;  %v6683_v29 = vunpack.c.l.bf16 %v6682_v17  ;;  %v6686_v61 = vunpack.c.h.bf16 %v6682_v17 }
 0x5bc   :  { %v5880_v45 = vpop.permute.xlu1 %2728  ;;  %v3023_v44 = vadd.f32 %v2871_v51, %v2870_v46  ;;  %v2825_v8 = vmul.f32 %v6686_v61, %v2406_v1  ;;  %v2939_v46 = vadd.f32 %v2807_v36, %v2806_v3  ;;  %v6693_v36 = vunpack.c.h.bf16 %v6688_v25 }
 0x5bd   :  { %v5882_v53 = vpop.permute.xlu0 %2535  ;;  %v2809_v61 = vmul.f32 %v6696_v34, %v5852_v9 }
 0x5be   :  { %2437 = vbcast.lane.b32.xlu1 %v5744_v41, 344  ;;  %2303 = vbcast.lane.b32.xlu0 %v5735_v50, 344  ;;  %v2940_v17 = vadd.f32 %v2939_v46, %v2808_v31  ;;  %v6701_v46 = vld [vmem:[#allocation48_spill] sm:$0xff] }
 0x5c0   :  { %v2410_v22 = vpop.permute.xlu1 %2409 }
 0x5c1   :  { %v2666_v18 = vpop.permute.xlu0 %2665  ;;  %v2826_v5 = vmul.f32 %v6689_v0, %v2410_v22 }
 0x5c2   :  { %2697 = vbcast.lane.b32.xlu1 %v5770_v39, 328  ;;  %2500 = vbcast.lane.b32.xlu0 %v5749_v30, 336 }
 0x5c4   :  { %v2670_v2 = vpop.permute.xlu1 %2669 }
 0x5c5   :  { %v2343_v12 = vpop.permute.xlu0 %2342 }
 0x5c6   :  { %2374 = vbcast.lane.b32.xlu1 %v5739_v38, 352  ;;  %2760 = vbcast.lane.b32.xlu0 %v5779_v40, 320 }
 0x5c8   :  { %v5890_v37 = vpop.permute.xlu1 %2346 }
 0x5c9   :  { %v2603_v6 = vpop.permute.xlu0 %2602 }
 0x5ca   :  { %2634 = vbcast.lane.b32.xlu1 %v5763_v19, 336  ;;  %2567 = vbcast.lane.b32.xlu0 %v5756_v26, 336  ;;  %v2872_v23 = vmul.f32 %v6678_v4, %v2603_v6  ;;  %v2824_v6 = vmul.f32 %v6683_v29, %v5842_v11  ;;  %v6690_v11 = vld [vmem:[#allocation69_spill] sm:$0xff] }
 0x5cb   :  { %v6691_v7 = vunpack.c.h.bf16 %v6690_v11  ;;  %v6692_v27 = vunpack.c.l.bf16 %v6690_v11 }
 0x5cc   :  { %v2607_v33 = vpop.permute.xlu1 %2606  ;;  %v3024_v54 = vadd.f32 %v3023_v44, %v2872_v23  ;;  %v2961_v4 = vadd.f32 %v2960_v24, %v2824_v6  ;;  %v6694_v44 = vld [vmem:[#allocation74_spill] sm:$0xff] }
 0x5cd   :  { %v5894_v15 = vpop.permute.xlu0 %2732  ;;  %v2873_v48 = vmul.f32 %v6687_v21, %v2607_v33  ;;  %v2887_v13 = vmul.f32 %v6691_v7, %v2666_v18  ;;  %v2886_v33 = vmul.f32 %v6692_v27, %v5864_v16  ;;  %v6695_v22 = vunpack.c.l.bf16 %v6694_v44  ;;  %v6697_v18 = vld [vmem:[#allocation64_spill] sm:$0xff] }
 0x5ce   :  { %2441 = vbcast.lane.b32.xlu1 %v5744_v41, 352  ;;  %2307 = vbcast.lane.b32.xlu0 %v5735_v50, 352  ;;  %v2962_v1 = vadd.f32 %v2961_v4, %v2825_v8  ;;  %v6698_v31 = vunpack.c.h.bf16 %v6697_v18  ;;  %v6702_v4 = vunpack.c.l.bf16 %v6701_v46  ;;  %v6703_v9 = vunpack.c.l.bf16 %v6697_v18 }
 0x5cf   :  { %v3025_v23 = vadd.f32 %v3024_v54, %v2873_v48  ;;  %v3044_v16 = vadd.f32 %v2887_v13, %v2886_v33  ;;  %v6699_v54 = vld [vmem:[#allocation70_spill] sm:$0xff] }
 0x5d0   :  { %v2414_v10 = vpop.permute.xlu1 %2413  ;;  %v2839_v8 = vmul.f32 %v6698_v31, %v5856_v28  ;;  %v2963_v21 = vadd.f32 %v2962_v1, %v2826_v5  ;;  %v2810_v25 = vmul.f32 %v6702_v4, %v2343_v12  ;;  %v2838_v14 = vmul.f32 %v6703_v9, %v5836_v57  ;;  %v6704_v28 = vld [vmem:[#allocation65_spill] sm:$0xff] }
 0x5d1   :  { %v5898_v62 = vpop.permute.xlu0 %2539  ;;  %v2827_v24 = vmul.f32 %v6693_v36, %v2414_v10  ;;  %v6700_v10 = vunpack.c.l.bf16 %v6699_v54  ;;  %v6705_v5 = vunpack.c.l.bf16 %v6704_v28  ;;  %v2941_v1 = vadd.f32 %v2940_v17, %v2809_v61 }
 0x5d2   :  { %2701 = vbcast.lane.b32.xlu1 %v5770_v39, 336  ;;  %2504 = vbcast.lane.b32.xlu0 %v5749_v30, 344  ;;  %v6706_v13 = vunpack.c.h.bf16 %v6699_v54  ;;  %v2981_v34 = vadd.f32 %v2839_v8, %v2838_v14  ;;  %v6711_v17 = vunpack.c.h.bf16 %v6701_v46  ;;  %v6712_v18 = vunpack.c.h.bf16 %v6704_v28 }
 0x5d3   :  { %v2888_v48 = vmul.f32 %v6700_v10, %v2670_v2  ;;  %v2840_v11 = vmul.f32 %v6705_v5, %v5872_v35  ;;  %v6707_v2 = vld [vmem:[#allocation54_spill] sm:$0xff]  ;;  %v2942_v35 = vadd.f32 %v2941_v1, %v2810_v25  ;;  %v6714_v10 = vld [vmem:[#allocation59_spill] sm:$0xff] }
 0x5d4   :  { %v2674_v42 = vpop.permute.xlu1 %2673  ;;  %v6708_v33 = vunpack.c.l.bf16 %v6707_v2  ;;  %v2841_v31 = vmul.f32 %v6712_v18, %v5876_v63  ;;  %v6715_v4 = vunpack.c.l.bf16 %v6714_v10 }
 0x5d5   :  { %v5913_v56 = vpop.permute.xlu0 %2279  ;;  %v2889_v27 = vmul.f32 %v6706_v13, %v2674_v42  ;;  %v3045_v57 = vadd.f32 %v3044_v16, %v2888_v48  ;;  %v2982_v61 = vadd.f32 %v2981_v34, %v2840_v11  ;;  %v6716_v48 = vld [vmem:[#allocation86_spill] sm:$0xff] }
 0x5d6   :  { %2378 = vbcast.lane.b32.xlu1 %v5739_v38, 360  ;;  %2764 = vbcast.lane.b32.xlu0 %v5779_v40, 328  ;;  %v6717_v25 = vunpack.c.l.bf16 %v6716_v48  ;;  %v6720_v11 = vld [vmem:[#allocation82_spill] sm:$0xff] }
 0x5d7   :  { %v3046_v54 = vadd.f32 %v3045_v57, %v2889_v27  ;;  %v6721_v28 = vunpack.c.l.bf16 %v6720_v11 }
 0x5d8   :  { %v2351_v47 = vpop.permute.xlu1 %2350 }
 0x5d9   :  { %v2477_v51 = vpop.permute.xlu0 %2476  ;;  %v2812_v16 = vmul.f32 %v6715_v4, %v2351_v47 }
 0x5da   :  { %2638 = vbcast.lane.b32.xlu1 %v5763_v19, 344  ;;  %2571 = vbcast.lane.b32.xlu0 %v5756_v26, 344  ;;  %v2842_v63 = vmul.f32 %v6721_v28, %v2477_v51  ;;  %v2983_v51 = vadd.f32 %v2982_v61, %v2841_v31  ;;  %v6732_v61 = vld [vmem:[#allocation95_spill] sm:$0xff] }
 0x5db   :  { %v6733_v31 = vunpack.c.l.bf16 %v6732_v61 }
 0x5dc   :  { %v2611_v29 = vpop.permute.xlu1 %2610 }
 0x5dd   :  { %v2874_v3 = vmul.f32 %v6695_v22, %v2611_v29  ;;  %v2737_v6 = vpop.permute.xlu0 %2736  ;;  %v2964_v29 = vadd.f32 %v2963_v21, %v2827_v24  ;;  %v2811_v24 = vmul.f32 %v6711_v17, %v5890_v37  ;;  %v6718_v37 = vld [vmem:[#allocation40_spill] sm:$0xff] }
 0x5de   :  { %2445 = vbcast.lane.b32.xlu1 %v5744_v41, 360  ;;  %2311 = vbcast.lane.b32.xlu0 %v5735_v50, 360  ;;  %v6719_v14 = vunpack.c.l.bf16 %v6718_v37 }
 0x5df   :  { %v5957_v0 = vadd.f32 %v3025_v23, %v2874_v3  ;;  %v6709_v23 = vld [vmem:[#allocation38_spill] sm:$0xff] }
 0x5e0   :  { %v2418_v7 = vpop.permute.xlu1 %2417  ;;  %v6710_v22 = vunpack.c.l.bf16 %v6709_v23  ;;  %v2792_v5 = vmul.f32 %v6719_v14, %v5830_v20  ;;  %v6725_v20 = vunpack.c.h.bf16 %v6718_v37 }
 0x5e1   :  { %v2828_v36 = vmul.f32 %v6708_v33, %v2418_v7  ;;  %v2544_v12 = vpop.permute.xlu0 %2543  ;;  %v6722_v7 = vld [vmem:[#allocation49_spill] sm:$0xff] }
 0x5e2   :  { %v2790_v3 = vmul.f32 %v6710_v22, %v5844_v49  ;;  %2705 = vbcast.lane.b32.xlu1 %v5770_v39, 344  ;;  %2508 = vbcast.lane.b32.xlu0 %v5749_v30, 352  ;;  %v6713_v49 = vunpack.c.h.bf16 %v6709_v23  ;;  %v6723_v1 = vunpack.c.l.bf16 %v6722_v7  ;;  %v6724_v27 = vunpack.c.h.bf16 %v6722_v7  ;;  %v6726_v23 = vld [vmem:[#allocation93_spill] sm:$0xff] }
 0x5e3   :  { %v2965_v42 = vadd.f32 %v2964_v29, %v2828_v36  ;;  %v2943_v29 = vadd.f32 %v2942_v35, %v2811_v24  ;;  %v2793_v36 = vmul.f32 %v6725_v20, %v5866_v58  ;;  %v6727_v22 = vunpack.c.h.bf16 %v6726_v23  ;;  %v6729_v35 = vld [vmem:[#allocation53_spill] sm:$0xff] }
 0x5e4   :  { %v2678_v21 = vpop.permute.xlu1 %2677  ;;  %v2791_v8 = vmul.f32 %v6713_v49, %v5814_v32  ;;  %v2854_v47 = vmul.f32 %v6723_v1, %v5860_v59  ;;  %v2855_v33 = vmul.f32 %v6724_v27, %v5848_v60  ;;  %v6728_v57 = vunpack.c.l.bf16 %v6726_v23 }
 0x5e5   :  { %v2890_v9 = vmul.f32 %v6717_v25, %v2678_v21  ;;  %v2284_v46 = vpop.permute.xlu0 %2283  ;;  %v2903_v34 = vmul.f32 %v6727_v22, %v5894_v15  ;;  %v6730_v17 = vunpack.c.l.bf16 %v6729_v35  ;;  %v2944_v18 = vadd.f32 %v2943_v29, %v2812_v16 }
 0x5e6   :  { %2382 = vbcast.lane.b32.xlu1 %v5739_v38, 368  ;;  %2768 = vbcast.lane.b32.xlu0 %v5779_v40, 336  ;;  %v2918_v32 = vadd.f32 %v2791_v8, %v2790_v3  ;;  %v2902_v59 = vmul.f32 %v6728_v57, %v5880_v45  ;;  %v6731_v60 = vunpack.c.h.bf16 %v6714_v10  ;;  %v2984_v58 = vadd.f32 %v2983_v51, %v2842_v63 }
 0x5e7   :  { %v3047_v13 = vadd.f32 %v3046_v54, %v2890_v9  ;;  %v2856_v24 = vmul.f32 %v6730_v17, %v5882_v53  ;;  %v2904_v8 = vmul.f32 %v6733_v31, %v2737_v6  ;;  %v6734_v15 = vunpack.c.h.bf16 %v6720_v11  ;;  %v6736_v6 = vld [vmem:[#allocation37_spill] sm:$0xff] }
 0x5e8   :  { %v2355_v3 = vpop.permute.xlu1 %2354  ;;  %v3002_v45 = vadd.f32 %v2855_v33, %v2854_v47  ;;  %v2919_v4 = vadd.f32 %v2918_v32, %v2792_v5  ;;  %v3065_v53 = vadd.f32 %v2903_v34, %v2902_v59  ;;  %v6735_v10 = vunpack.c.h.bf16 %v6729_v35  ;;  %v6739_v5 = vld [vmem:[#allocation55_spill] sm:$0xff]  ;;  %v6744_v59 = vld [vmem:[#allocation42_spill] sm:$0xff] }
 0x5e9   :  { %v2813_v21 = vmul.f32 %v6731_v60, %v2355_v3  ;;  %v2481_v49 = vpop.permute.xlu0 %2480  ;;  %v6737_v28 = vunpack.c.l.bf16 %v6736_v6  ;;  %v6738_v7 = vunpack.c.h.bf16 %v6694_v44  ;;  %v6740_v32 = vunpack.c.l.bf16 %v6739_v5 }
 0x5ea   :  { %v2843_v54 = vmul.f32 %v6734_v15, %v2481_v49  ;;  %2642 = vbcast.lane.b32.xlu1 %v5763_v19, 352  ;;  %2575 = vbcast.lane.b32.xlu0 %v5756_v26, 352  ;;  %v2857_v16 = vmul.f32 %v6735_v10, %v5898_v62  ;;  %v2920_v14 = vadd.f32 %v2919_v4, %v2793_v36  ;;  %v6741_v33 = vunpack.c.h.bf16 %v6732_v61  ;;  %v6751_v10 = vld [vmem:[#allocation72_spill] sm:$0xff] }
 0x5eb   :  { %v2945_v25 = vadd.f32 %v2944_v18, %v2813_v21  ;;  %v2794_v11 = vmul.f32 %v6737_v28, %v5870_v43  ;;  %v3003_v63 = vadd.f32 %v3002_v45, %v2856_v24  ;;  %v3066_v47 = vadd.f32 %v3065_v53, %v2904_v8  ;;  %v6749_v45 = vld [vmem:[#allocation56_spill] sm:$0xff] }
 0x5ec   :  { %v2985_v9 = vadd.f32 %v2984_v58, %v2843_v54  ;;  %v2615_v37 = vpop.permute.xlu1 %2614  ;;  %v2858_v27 = vmul.f32 %v6740_v32, %v2544_v12  ;;  %v6742_v43 = vunpack.c.h.bf16 %v6736_v6  ;;  %v6743_v34 = vunpack.c.h.bf16 %v6707_v2  ;;  %v6757_v32 = vld [vmem:[#allocation62_spill] sm:$0xff] }
 0x5ed   :  { %v2875_v1 = vmul.f32 %v6738_v7, %v2615_v37  ;;  %v2741_v29 = vpop.permute.xlu0 %2740  ;;  %v3004_v36 = vadd.f32 %v3003_v63, %v2857_v16  ;;  %v2921_v22 = vadd.f32 %v2920_v14, %v2794_v11  ;;  %v6745_v35 = vunpack.c.l.bf16 %v6744_v59  ;;  %v6755_v63 = vld [vmem:[#allocation96_spill] sm:$0xff] }
 0x5ee   :  { %v2905_v20 = vmul.f32 %v6741_v33, %v2741_v29  ;;  %2449 = vbcast.lane.b32.xlu1 %v5744_v41, 368  ;;  %2315 = vbcast.lane.b32.xlu0 %v5735_v50, 368  ;;  %v2795_v44 = vmul.f32 %v6742_v43, %v5913_v56  ;;  %v6746_v24 = vunpack.c.h.bf16 %v6739_v5  ;;  %v6747_v49 = vunpack.c.h.bf16 %v6716_v48 }
 0x5ef   :  { %v3027_v62 = vadd.f32 %v5957_v0, %v2875_v1  ;;  %v3005_v57 = vadd.f32 %v3004_v36, %v2858_v27  ;;  %v2796_v17 = vmul.f32 %v6745_v35, %v2284_v46  ;;  %v6748_v31 = vunpack.c.h.bf16 %v6744_v59 }
 0x5f0   :  { %v3067_v51 = vadd.f32 %v3066_v47, %v2905_v20  ;;  %v2422_v23 = vpop.permute.xlu1 %2421  ;;  %v2922_v56 = vadd.f32 %v2921_v22, %v2795_v44  ;;  %v6752_v16 = vunpack.c.l.bf16 %v6751_v10  ;;  %v6756_v7 = vunpack.c.l.bf16 %v6755_v63 }
 0x5f1   :  { %v2829_v12 = vmul.f32 %v6743_v34, %v2422_v23  ;;  %v2548_v3 = vpop.permute.xlu0 %2547  ;;  %v6758_v27 = vunpack.c.l.bf16 %v6757_v32  ;;  %v6765_v35 = vunpack.c.h.bf16 %v6749_v45 }
 0x5f2   :  { %v2859_v18 = vmul.f32 %v6746_v24, %v2548_v3  ;;  %2709 = vbcast.lane.b32.xlu1 %v5770_v39, 352  ;;  %2512 = vbcast.lane.b32.xlu0 %v5749_v30, 360  ;;  %v2923_v61 = vadd.f32 %v2922_v56, %v2796_v17 }
 0x5f3   :  { %v2966_v0 = vadd.f32 %v2965_v42, %v2829_v12  ;;  %v6750_v42 = vunpack.c.l.bf16 %v6749_v45 }
 0x5f4   :  { %v3006_v60 = vadd.f32 %v3005_v57, %v2859_v18  ;;  %v2682_v21 = vpop.permute.xlu1 %2681  ;;  %v6766_v18 = vunpack.c.h.bf16 %v6751_v10 }
 0x5f5   :  { %v2891_v2 = vmul.f32 %v6747_v49, %v2682_v21  ;;  %v2288_v58 = vpop.permute.xlu0 %2287 }
 0x5f6   :  { %v2797_v8 = vmul.f32 %v6748_v31, %v2288_v58  ;;  %2386 = vbcast.lane.b32.xlu1 %v5739_v38, 376  ;;  %2772 = vbcast.lane.b32.xlu0 %v5779_v40, 344  ;;  %v6753_v38 = vld [vmem:[#allocation79_spill] sm:$0xff] }
 0x5f7   :  { %v3048_v46 = vadd.f32 %v3047_v13, %v2891_v2  ;;  %v6754_v28 = vunpack.c.l.bf16 %v6753_v38  ;;  %v6767_v49 = vunpack.c.h.bf16 %v6753_v38 }
 0x5f8   :  { %v2924_v15 = vadd.f32 %v2923_v61, %v2797_v8  ;;  %v2359_v54 = vpop.permute.xlu1 %2358  ;;  %v6768_v61 = vunpack.c.h.bf16 %v6755_v63 }
 0x5f9   :  { %v2814_v4 = vmul.f32 %v6750_v42, %v2359_v54  ;;  %v2485_v53 = vpop.permute.xlu0 %2484  ;;  %v3108_v54 = vld [vmem:[#allocation4] sm:$0xff] }
 0x5fa   :  { %v2844_v48 = vmul.f32 %v6752_v16, %v2485_v53  ;;  %2646 = vbcast.lane.b32.xlu1 %v5763_v19, 360  ;;  %2579 = vbcast.lane.b32.xlu0 %v5756_v26, 360  ;;  %3979 = vrcp.f32 %v3108_v54 }
 0x5fb   :  { %v2946_v37 = vadd.f32 %v2945_v25, %v2814_v4 }
 0x5fc   :  { %v2986_v14 = vadd.f32 %v2985_v9, %v2844_v48  ;;  %v2619_v6 = vpop.permute.xlu1 %2618  ;;  %v6759_v9 = vld [vmem:[#allocation63_spill] sm:$0xff] }
 0x5fd   :  { %v2876_v11 = vmul.f32 %v6754_v28, %v2619_v6  ;;  %v2745_v13 = vpop.permute.xlu0 %2744  ;;  %v6760_v20 = vunpack.c.l.bf16 %v6759_v9  ;;  %v6770_v4 = vunpack.c.h.bf16 %v6759_v9 }
 0x5fe   :  { %v2906_v1 = vmul.f32 %v6756_v7, %v2745_v13  ;;  %2453 = vbcast.lane.b32.xlu1 %v5744_v41, 376  ;;  %2319 = vbcast.lane.b32.xlu0 %v5735_v50, 376  ;;  %v6761_v41 = vld [vmem:[#allocation89_spill] sm:$0xff] }
 0x5ff   :  { %v3028_v29 = vadd.f32 %v3027_v62, %v2876_v11  ;;  %v6762_v22 = vunpack.c.l.bf16 %v6761_v41  ;;  %v6771_v48 = vunpack.c.h.bf16 %v6761_v41  ;;  %v6773_v11 = vmov 0.0   ;;  %v6774_v7 = vld [vmem:[#allocation57_spill] sm:$0xff] }
 0x600   :  { %v3068_v47 = vadd.f32 %v3067_v51, %v2906_v1  ;;  %v2426_v5 = vpop.permute.xlu1 %2425  ;;  %v6763_v51 = vld [vmem:[#allocation39_spill] sm:$0xff]  ;;  %v6775_v1 = vunpack.c.l.bf16 %v6774_v7  ;;  %v6780_v41 = vld [vmem:[#allocation97_spill] sm:$0xff] }
 0x601   :  { %v2830_v33 = vmul.f32 %v6758_v27, %v2426_v5  ;;  %v2552_v25 = vpop.permute.xlu0 %2551  ;;  %v6764_v34 = vunpack.c.l.bf16 %v6763_v51  ;;  %v6772_v6 = vunpack.c.h.bf16 %v6763_v51  ;;  %v3110_v5 = vld [vmem:[#allocation3] sm:$0xff] }
 0x602   :  { %v2860_v36 = vmul.f32 %v6760_v20, %v2552_v25  ;;  %2713 = vbcast.lane.b32.xlu1 %v5770_v39, 360  ;;  %2516 = vbcast.lane.b32.xlu0 %v5749_v30, 368  ;;  %v3159_v20 = vld [vmem:[#allocation20 + $0x68] sm:$0xff] }
 0x603   :  { %v2967_v43 = vadd.f32 %v2966_v0, %v2830_v33 }
 0x604   :  { %v3007_v44 = vadd.f32 %v3006_v60, %v2860_v36  ;;  %v2686_v23 = vpop.permute.xlu1 %2685  ;;  %v6778_v36 = vld [vmem:[#allocation81_spill] sm:$0xff] }
 0x605   :  { %v2892_v50 = vmul.f32 %v6762_v22, %v2686_v23  ;;  %v2292_v62 = vpop.permute.xlu0 %2291  ;;  %v6781_v22 = vunpack.c.l.bf16 %v6780_v41 }
 0x606   :  { %v2798_v12 = vmul.f32 %v6764_v34, %v2292_v62  ;;  %2650 = vbcast.lane.b32.xlu1 %v5763_v19, 368  ;;  %2776 = vbcast.lane.b32.xlu0 %v5779_v40, 352  ;;  %v3158_v62 = vld [vmem:[#allocation20 + $0x60] sm:$0xff] }
 0x607   :  { %v3049_v3 = vadd.f32 %v3048_v46, %v2892_v50 }
 0x608   :  { %v2925_v57 = vadd.f32 %v2924_v15, %v2798_v12  ;;  %v2363_v59 = vpop.permute.xlu1 %2362 }
 0x609   :  { %v2815_v17 = vmul.f32 %v6765_v35, %v2363_v59  ;;  %v2489_v24 = vpop.permute.xlu0 %2488  ;;  %v6782_v59 = vld [vmem:[#allocation66_spill] sm:$0xff] }
 0x60a   :  { %v2845_v0 = vmul.f32 %v6766_v18, %v2489_v24  ;;  %2587 = vbcast.lane.b32.xlu1 %v5756_v26, 376  ;;  %2583 = vbcast.lane.b32.xlu0 %v5756_v26, 368  ;;  %v6769_v26 = vunpack.c.h.bf16 %v6757_v32  ;;  %v6776_v32 = vld [vmem:[#allocation76_spill] sm:$0xff]  ;;  %v6783_v35 = vunpack.c.l.bf16 %v6782_v59  ;;  %v6784_v18 = vld [vmem:[#allocation67_spill] sm:$0xff] }
 0x60b   :  { %v2947_v56 = vadd.f32 %v2946_v37, %v2815_v17  ;;  %v6777_v27 = vunpack.c.l.bf16 %v6776_v32 }
 0x60c   :  { %v2987_v60 = vadd.f32 %v2986_v14, %v2845_v0  ;;  %v2623_v21 = vpop.permute.xlu1 %2622  ;;  %v6785_v0 = vunpack.c.l.bf16 %v6784_v18 }
 0x60d   :  { %v2877_v2 = vmul.f32 %v6767_v49, %v2623_v21  ;;  %v2749_v58 = vpop.permute.xlu0 %2748 }
 0x60e   :  { %v2907_v31 = vmul.f32 %v6768_v61, %v2749_v58  ;;  %2654 = vbcast.lane.b32.xlu1 %v5763_v19, 376  ;;  %2520 = vbcast.lane.b32.xlu0 %v5749_v30, 376  ;;  %v3161_v30 = vld [vmem:[#allocation20 + $0x78] sm:$0xff]  ;;  %v6786_v58 = vld [vmem:[#allocation91_spill] sm:$0xff] }
 0x60f   :  { %v3029_v8 = vadd.f32 %v3028_v29, %v2877_v2  ;;  %3872 = vmatpush3.msra.mxu1 %v3161_v30  ;;  %v3155_v2 = vld [vmem:[#allocation20 + $0x48] sm:$0xff]  ;;  %v6787_v61 = vunpack.c.l.bf16 %v6786_v58  ;;  %v6791_v30 = vunpack.c.h.bf16 %v6776_v32 }
 0x610   :  { %v3069_v46 = vadd.f32 %v3068_v47, %v2907_v31  ;;  %v2430_v15 = vpop.permute.xlu1 %2429  ;;  %3873 = vmatprep.subr.mxu1 %v6773_v11 }
 0x611   :  { %v2831_v45 = vmul.f32 %v6769_v26, %v2430_v15  ;;  %v2556_v42 = vpop.permute.xlu0 %2555  ;;  %v3154_v26 = vld [vmem:[#allocation20 + $0x40] sm:$0xff] }
 0x612   :  { %v2861_v53 = vmul.f32 %v6770_v4, %v2556_v42  ;;  %2721 = vbcast.lane.b32.xlu1 %v5770_v39, 376  ;;  %2780 = vbcast.lane.b32.xlu0 %v5779_v40, 360 }
 0x613   :  { %v2968_v10 = vadd.f32 %v2967_v43, %v2831_v45  ;;  %v6779_v43 = vunpack.c.l.bf16 %v6778_v36 }
 0x614   :  { %v3008_v19 = vadd.f32 %v3007_v44, %v2861_v53  ;;  %v2690_v16 = vpop.permute.xlu1 %2689  ;;  %v3153_v53 = vld [vmem:[#allocation20 + $0x38] sm:$0xff] }
 0x615   :  { %v2893_v37 = vmul.f32 %v6771_v48, %v2690_v16  ;;  %v2296_v14 = vpop.permute.xlu0 %2295 }
 0x616   :  { %v2799_v38 = vmul.f32 %v6772_v6, %v2296_v14  ;;  %2717 = vbcast.lane.b32.xlu0 %v5770_v39, 368  ;;  %2250 = vperm.xlu1 %3963, %v5832_v55   ;;  %v3160_v55 = vld [vmem:[#allocation20 + $0x70] sm:$0xff] }
 0x617   :  { %v3050_v28 = vadd.f32 %v3049_v3, %v2893_v37  ;;  %3874 = vmatpush3.msra.mxu1 %v3160_v55  ;;  %v3157_v3 = vld [vmem:[#allocation20 + $0x58] sm:$0xff]  ;;  %v3152_v37 = vld [vmem:[#allocation20 + $0x30] sm:$0xff]  ;;  %v6795_v55 = vunpack.c.h.bf16 %v6784_v18 }
 0x618   :  { %v2926_v13 = vadd.f32 %v2925_v57, %v2799_v38  ;;  %v2367_v63 = vpop.permute.xlu1 %2366  ;;  %3875 = vmatprep.subr.mxu1 %v6773_v11  ;;  %v3980_v57 = vpop.eup %3979 }
 0x619   :  { %v2816_v29 = vmul.f32 %v6775_v1, %v2367_v63  ;;  %v2493_v47 = vpop.permute.xlu0 %2492  ;;  %3876 = vmatpush3.msra.mxu1 %v3159_v20  ;;  %v6793_v1 = vunpack.c.h.bf16 %v6780_v41  ;;  %v3147_v41 = vld [vmem:[#allocation20 + $0x8] sm:$0xff] }
 0x61a   :  { %v2846_v33 = vmul.f32 %v6777_v27, %v2493_v47  ;;  %2784 = vbcast.lane.b32.xlu0 %v5779_v40, 368  ;;  %3114 = vperm.xlu1 %3963, %v3110_v5   ;;  %v3150_v47 = vld [vmem:[#allocation20 + $0x20] sm:$0xff] }
 0x61b   :  { %v2948_v25 = vadd.f32 %v2947_v56, %v2816_v29  ;;  %3877 = vmatprep.subr.mxu1 %v6773_v11 }
 0x61c   :  { %v2988_v39 = vadd.f32 %v2987_v60, %v2846_v33  ;;  %v2627_v9 = vpop.permute.xlu1 %2626  ;;  %3878 = vmatpush3.msra.mxu1 %v3158_v62  ;;  %v3149_v33 = vld [vmem:[#allocation20 + $0x18] sm:$0xff] }
 0x61d   :  { %v2878_v44 = vmul.f32 %v6779_v43, %v2627_v9  ;;  %v2753_v23 = vpop.permute.xlu0 %2752  ;;  %3879 = vmatprep.subr.mxu1 %v6773_v11 }
 0x61e   :  { %v2908_v50 = vmul.f32 %v6781_v22, %v2753_v23  ;;  %2788 = vbcast.lane.b32.xlu0 %v5779_v40, 376  ;;  %v3156_v40 = vld [vmem:[#allocation20 + $0x50] sm:$0xff]  ;;  %3880 = vmatpush3.msra.mxu1 %v3157_v3  ;;  %v6796_v22 = vunpack.c.h.bf16 %v6786_v58 }
 0x61f   :  { %v3030_v51 = vadd.f32 %v3029_v8, %v2878_v44  ;;  %3881 = vmatprep.subr.mxu1 %v6773_v11 }
 0x620   :  { %v3070_v34 = vadd.f32 %v3069_v46, %v2908_v50  ;;  %v2434_v12 = vpop.permute.xlu1 %2433  ;;  %3882 = vmatpush3.msra.mxu1 %v3156_v40  ;;  %v6788_v46 = vld [vmem:[#allocation41_spill] sm:$0xff] }
 0x621   :  { %v2832_v17 = vmul.f32 %v6783_v35, %v2434_v12  ;;  %v2560_v24 = vpop.permute.xlu0 %2559  ;;  %v6789_v15 = vunpack.c.l.bf16 %v6788_v46  ;;  %3883 = vmatprep.subr.mxu1 %v6773_v11  ;;  %v3146_v12 = vld [vmem:[#allocation20] sm:$0xff] }
 0x622   :  { %v2862_v56 = vmul.f32 %v6785_v0, %v2560_v24  ;;  %3122 = vperm.xlu0 %3964, %v3980_v57   ;;  %3884 = vmatpush3.msra.mxu1 %v3155_v2  ;;  %v6798_v35 = vld [vmem:[#allocation58_spill] sm:$0xff]  ;;  %v6800_v0 = vld [vmem:[#allocation80_spill] sm:$0xff]  ;;  %v6802_v2 = vld [vmem:[#allocation85_spill] sm:$0xff] }
 0x623   :  { %v2969_v60 = vadd.f32 %v2968_v10, %v2832_v17  ;;  %3885 = vmatprep.subr.mxu1 %v6773_v11  ;;  %v6790_v10 = vunpack.c.h.bf16 %v6774_v7  ;;  %v6799_v17 = vunpack.c.l.bf16 %v6798_v35  ;;  %v6803_v58 = vunpack.c.l.bf16 %v6802_v2 }
 0x624   :  { %v3009_v21 = vadd.f32 %v3008_v19, %v2862_v56  ;;  %v2694_v49 = vpop.permute.xlu1 %2693  ;;  %3886 = vmatpush3.msra.mxu1 %v3154_v26  ;;  %v6801_v56 = vunpack.c.l.bf16 %v6800_v0 }
 0x625   :  { %v2894_v31 = vmul.f32 %v6787_v61, %v2694_v49  ;;  %v2300_v8 = vpop.permute.xlu0 %2299  ;;  %3887 = vmatprep.subr.mxu1 %v6773_v11 }
 0x626   :  { %v2800_v54 = vmul.f32 %v6789_v15, %v2300_v8  ;;  %3888 = vmatpush3.msra.mxu1 %v3153_v53  ;;  %v6804_v8 = vld [vmem:[#allocation99_spill] sm:$0xff] }
 0x627   :  { %v3051_v45 = vadd.f32 %v3050_v28, %v2894_v31  ;;  %3889 = vmatprep.subr.mxu1 %v6773_v11  ;;  %v3151_v28 = vld [vmem:[#allocation20 + $0x28] sm:$0xff] }
 0x628   :  { %v2927_v42 = vadd.f32 %v2926_v13, %v2800_v54  ;;  %v2371_v4 = vpop.permute.xlu1 %2370  ;;  %v6792_v13 = vunpack.c.h.bf16 %v6778_v36  ;;  %3890 = vmatpush3.msra.mxu1 %v3152_v37  ;;  %v3148_v36 = vld [vmem:[#allocation20 + $0x10] sm:$0xff] }
 0x629   :  { %v2817_v19 = vmul.f32 %v6790_v10, %v2371_v4  ;;  %v2497_v16 = vpop.permute.xlu0 %2496  ;;  %3891 = vmatprep.subr.mxu1 %v6773_v11  ;;  %v6808_v10 = vld [vmem:[#allocation73_spill] sm:$0xff] }
 0x62a   :  { %v2847_v48 = vmul.f32 %v6791_v30, %v2497_v16  ;;  %3892 = vmatpush3.msra.mxu1 %v3151_v28 }
 0x62b   :  { %v2949_v14 = vadd.f32 %v2948_v25, %v2817_v19  ;;  %3893 = vmatprep.subr.mxu1 %v6773_v11  ;;  %v6794_v25 = vunpack.c.h.bf16 %v6782_v59  ;;  %v6809_v19 = vunpack.c.l.bf16 %v6808_v10 }
 0x62c   :  { %v2989_v6 = vadd.f32 %v2988_v39, %v2847_v48  ;;  %v2631_v38 = vpop.permute.xlu1 %2630  ;;  %3894 = vmatpush3.msra.mxu1 %v3150_v47 }
 0x62d   :  { %v2879_v63 = vmul.f32 %v6792_v13, %v2631_v38  ;;  %v2757_v7 = vpop.permute.xlu0 %2756  ;;  %3895 = vmatprep.subr.mxu1 %v6773_v11 }
 0x62e   :  { %v2909_v29 = vmul.f32 %v6793_v1, %v2757_v7  ;;  %3896 = vmatpush3.msra.mxu1 %v3149_v33  ;;  %v6812_v1 = vunpack.c.h.bf16 %v6800_v0 }
 0x62f   :  { %v3031_v5 = vadd.f32 %v3030_v51, %v2879_v63  ;;  %3897 = vmatprep.subr.mxu1 %v6773_v11  ;;  %v6797_v51 = vunpack.c.h.bf16 %v6788_v46  ;;  %v6805_v46 = vunpack.c.l.bf16 %v6804_v8 }
 0x630   :  { %v3071_v32 = vadd.f32 %v3070_v34, %v2909_v29  ;;  %v2438_v27 = vpop.permute.xlu1 %2437  ;;  %3898 = vmatpush3.msra.mxu1 %v3148_v36 }
 0x631   :  { %v2833_v39 = vmul.f32 %v6794_v25, %v2438_v27  ;;  %v2564_v9 = vpop.permute.xlu0 %2563  ;;  %3899 = vmatprep.subr.mxu1 %v6773_v11 }
 0x632   :  { %v2863_v20 = vmul.f32 %v6795_v55, %v2564_v9  ;;  %3900 = vmatpush3.msra.mxu1 %v3147_v41 }
 0x633   :  { %v2970_v43 = vadd.f32 %v2969_v60, %v2833_v39  ;;  %3901 = vmatprep.subr.mxu1 %v6773_v11 }
 0x634   :  { %v3010_v44 = vadd.f32 %v3009_v21, %v2863_v20  ;;  %v2698_v23 = vpop.permute.xlu1 %2697  ;;  %3902 = vmatpush3.msra.mxu1 %v3146_v12 }
 0x635   :  { %v2895_v50 = vmul.f32 %v6796_v22, %v2698_v23  ;;  %v2304_v62 = vpop.permute.xlu0 %2303  ;;  %v6813_v23 = vunpack.c.h.bf16 %v6798_v35  ;;  %v6818_v35 = vld [vmem:[#allocation75_spill] sm:$0xff] }
 0x636   :  { %v2801_v34 = vmul.f32 %v6797_v51, %v2304_v62  ;;  %v6814_v62 = vld [vmem:[#allocation60_spill] sm:$0xff] }
 0x637   :  { %v6148_v3 = vadd.f32 %v3051_v45, %v2895_v50  ;;  %v6806_v45 = vld [vmem:[#allocation71_spill] sm:$0xff]  ;;  %v6815_v51 = vunpack.c.l.bf16 %v6814_v62 }
 0x638   :  { %v2928_v57 = vadd.f32 %v2927_v42, %v2801_v34  ;;  %v2375_v59 = vpop.permute.xlu1 %2374  ;;  %v6807_v42 = vunpack.c.l.bf16 %v6806_v45  ;;  %v6817_v0 = vunpack.c.h.bf16 %v6806_v45  ;;  %v6822_v45 = vld [vmem:[#allocation47_spill] sm:$0xff] }
 0x639   :  { %v2818_v24 = vmul.f32 %v6799_v17, %v2375_v59  ;;  %v2501_v18 = vpop.permute.xlu0 %2500  ;;  %v6816_v59 = vunpack.c.h.bf16 %v6814_v62 }
 0x63a   :  { %v2848_v40 = vmul.f32 %v6801_v56, %v2501_v18 }
 0x63b   :  { %v2950_v60 = vadd.f32 %v2949_v14, %v2818_v24 }
 0x63c   :  { %v2990_v21 = vadd.f32 %v2989_v6, %v2848_v40  ;;  %v2635_v49 = vpop.permute.xlu1 %2634  ;;  %v6810_v6 = vld [vmem:[#allocation43_spill] sm:$0xff] }
 0x63d   :  { %v2880_v61 = vmul.f32 %v6803_v58, %v2635_v49  ;;  %v2761_v31 = vpop.permute.xlu0 %2760  ;;  %v6811_v38 = vunpack.c.l.bf16 %v6810_v6  ;;  %v6819_v49 = vunpack.c.l.bf16 %v6818_v35 }
 0x63e   :  { %v2910_v15 = vmul.f32 %v6805_v46, %v2761_v31  ;;  %v6820_v46 = vunpack.c.h.bf16 %v6810_v6  ;;  %v6824_v6 = vunpack.c.h.bf16 %v6822_v45 }
 0x63f   :  { %v6159_v54 = vadd.f32 %v3031_v5, %v2880_v61 }
 0x640   :  { %v6161_v11 = vadd.f32 %v3071_v32, %v2910_v15  ;;  %v2442_v26 = vpop.permute.xlu1 %2441 }
 0x641   :  { %v2834_v4 = vmul.f32 %v6807_v42, %v2442_v26  ;;  %v2568_v53 = vpop.permute.xlu0 %2567 }
 0x642   :  { %v2864_v16 = vmul.f32 %v6809_v19, %v2568_v53 }
 0x643   :  { %v2971_v30 = vadd.f32 %v2970_v43, %v2834_v4  ;;  %v6821_v4 = vunpack.c.h.bf16 %v6818_v35 }
 0x644   :  { %v6167_v48 = vadd.f32 %v3010_v44, %v2864_v16  ;;  %v6169_v37 = vpop.permute.xlu1 %2701  ;;  %v6823_v16 = vunpack.c.l.bf16 %v6822_v45 }
 0x645   :  { %v2308_v14 = vpop.permute.xlu0 %2307 }
 0x646   :  { %v2802_v28 = vmul.f32 %v6811_v38, %v2308_v14 }
 0x648   :  { %v2929_v13 = vadd.f32 %v2928_v57, %v2802_v28  ;;  %v2379_v63 = vpop.permute.xlu1 %2378 }
 0x649   :  { %v2505_v7 = vpop.permute.xlu0 %2504  ;;  %v2819_v41 = vmul.f32 %v6813_v23, %v2379_v63 }
 0x64a   :  { %v2849_v29 = vmul.f32 %v6812_v1, %v2505_v7 }
 0x64b   :  { %v2951_v12 = vadd.f32 %v2950_v60, %v2819_v41 }
 0x64c   :  { %v6175_v47 = vadd.f32 %v2990_v21, %v2849_v29  ;;  %v2639_v5 = vpop.permute.xlu1 %2638 }
 0x64d   :  { %v6177_v32 = vpop.permute.xlu0 %2764 }
 0x650   :  { %v2446_v27 = vpop.permute.xlu1 %2445 }
 0x651   :  { %v2572_v33 = vpop.permute.xlu0 %2571  ;;  %v2835_v56 = vmul.f32 %v6817_v0, %v2446_v27 }
 0x653   :  { %v2972_v31 = vadd.f32 %v2971_v30, %v2835_v56 }
 0x654   :  { %v6179_v25 = vpop.permute.xlu1 %2705 }
 0x655   :  { %v2312_v39 = vpop.permute.xlu0 %2311 }
 0x656   :  { %v2803_v60 = vmul.f32 %v6820_v46, %v2312_v39  ;;  %v6825_v39 = vunpack.c.h.bf16 %v6802_v2  ;;  %v6830_v2 = vld [vmem:[#allocation78_spill] sm:$0xff] }
 0x658   :  { %v2383_v9 = vpop.permute.xlu1 %2382  ;;  %v2930_v28 = vadd.f32 %v2929_v13, %v2803_v60 }
 0x659   :  { %v2509_v55 = vpop.permute.xlu0 %2508  ;;  %v2820_v34 = vmul.f32 %v6815_v51, %v2383_v9  ;;  %v2881_v9 = vmul.f32 %v6825_v39, %v2639_v5  ;;  %v6826_v51 = vld [vmem:[#allocation88_spill] sm:$0xff]  ;;  %v6831_v5 = vunpack.c.l.bf16 %v6830_v2 }
 0x65a   :  { %v6829_v0 = vunpack.c.h.bf16 %v6826_v51 }
 0x65b   :  { %v2952_v18 = vadd.f32 %v2951_v12, %v2820_v34 }
 0x65c   :  { %v2643_v20 = vpop.permute.xlu1 %2642 }
 0x65d   :  { %v6181_v36 = vpop.permute.xlu0 %2768 }
 0x660   :  { %v2450_v43 = vpop.permute.xlu1 %2449 }
 0x661   :  { %v2576_v44 = vpop.permute.xlu0 %2575  ;;  %v2836_v58 = vmul.f32 %v6819_v49, %v2450_v43 }
 0x663   :  { %v2973_v42 = vadd.f32 %v2972_v31, %v2836_v58  ;;  %v6832_v31 = vld [vmem:[#allocation84_spill] sm:$0xff] }
 0x664   :  { %v6185_v22 = vpop.permute.xlu1 %2709  ;;  %v6833_v46 = vunpack.c.l.bf16 %v6832_v31 }
 0x665   :  { %v2316_v50 = vpop.permute.xlu0 %2315 }
 0x666   :  { %v2804_v14 = vmul.f32 %v6823_v16, %v2316_v50  ;;  %v6827_v50 = vunpack.c.l.bf16 %v6826_v51 }
 0x668   :  { %v2387_v57 = vpop.permute.xlu1 %2386  ;;  %v2931_v29 = vadd.f32 %v2930_v28, %v2804_v14  ;;  %v2882_v34 = vmul.f32 %v6827_v50, %v2643_v20  ;;  %v2850_v20 = vmul.f32 %v6833_v46, %v2509_v55 }
 0x669   :  { %v2821_v17 = vmul.f32 %v6816_v59, %v2387_v57  ;;  %v2513_v24 = vpop.permute.xlu0 %2512  ;;  %v6828_v57 = vunpack.c.h.bf16 %v6808_v10 }
 0x66b   :  { %v2953_v40 = vadd.f32 %v2952_v18, %v2821_v17  ;;  %v2865_v59 = vmul.f32 %v6828_v57, %v2572_v33  ;;  %v3033_v18 = vadd.f32 %v6159_v54, %v2881_v9 }
 0x66c   :  { %v2647_v21 = vpop.permute.xlu1 %2646 }
 0x66d   :  { %v6195_v61 = vpop.permute.xlu0 %2772  ;;  %v2954_v15 = vrot.slane %v2953_v40, 4  ;;  %v2883_v56 = vmul.f32 %v6829_v0, %v2647_v21  ;;  %v3034_v60 = vadd.f32 %v3033_v18, %v2882_v34  ;;  %v3012_v54 = vadd.f32 %v6167_v48, %v2865_v59 }
 0x66f   :  { %v2955_v63 = vadd.f32 %v2954_v15, %v2953_v40  ;;  %v2866_v40 = vmul.f32 %v6831_v5, %v2576_v44  ;;  %v6837_v44 = vunpack.c.h.bf16 %v6832_v31  ;;  %v3035_v16 = vadd.f32 %v3034_v60, %v2883_v56 }
 0x670   :  { %v2454_v26 = vpop.permute.xlu1 %2453 }
 0x671   :  { %v2837_v53 = vmul.f32 %v6821_v4, %v2454_v26  ;;  %v2580_v19 = vpop.permute.xlu0 %2579  ;;  %v2956_v23 = vrot.slane %v2955_v63, 2  ;;  %v6834_v26 = vld [vmem:[#allocation92_spill] sm:$0xff]  ;;  %v6836_v4 = vunpack.c.h.bf16 %v6830_v2  ;;  %v2851_v45 = vmul.f32 %v6837_v44, %v2513_v24 }
 0x672   :  { %v6835_v10 = vunpack.c.l.bf16 %v6834_v26  ;;  %v3013_v14 = vadd.f32 %v3012_v54, %v2866_v40 }
 0x673   :  { %v2974_v38 = vadd.f32 %v2973_v42, %v2837_v53  ;;  %v2957_v35 = vadd.f32 %v2956_v23, %v2955_v63  ;;  %v2867_v21 = vmul.f32 %v6836_v4, %v2580_v19  ;;  %v2992_v63 = vadd.f32 %v6175_v47, %v2850_v20  ;;  %v6839_v19 = vld [vmem:[#allocation87_spill] sm:$0xff]  ;;  %v6841_v23 = vld [vmem:[#allocation61_spill] sm:$0xff]  ;;  %v6853_v4 = vld [vmem:[#allocation100_spill] sm:$0xff] }
 0x674   :  { %v6203_v7 = vpop.permute.xlu1 %2713  ;;  %v6840_v9 = vunpack.c.l.bf16 %v6839_v19  ;;  %v6842_v24 = vunpack.c.l.bf16 %v6841_v23  ;;  %v6845_v59 = vunpack.c.h.bf16 %v6841_v23 }
 0x675   :  { %v2975_v1 = vrot.slane %v2974_v38, 4  ;;  %v2320_v30 = vpop.permute.xlu0 %2319  ;;  %v2993_v34 = vadd.f32 %v2992_v63, %v2851_v45 }
 0x676   :  { %v2805_v27 = vmul.f32 %v6824_v6, %v2320_v30 }
 0x677   :  { %v2976_v43 = vadd.f32 %v2975_v1, %v2974_v38  ;;  %v2958_v38 = vrot.slane %v2957_v35, 1 }
 0x678   :  { %v2932_v41 = vadd.f32 %v2931_v29, %v2805_v27  ;;  %v2651_v62 = vpop.permute.xlu1 %2650  ;;  %v6838_v29 = vunpack.c.h.bf16 %v6834_v26  ;;  %v3014_v27 = vadd.f32 %v3013_v14, %v2867_v21  ;;  %v6854_v21 = vunpack.c.l.bf16 %v6853_v4 }
 0x679   :  { %v2977_v13 = vrot.slane %v2976_v43, 2  ;;  %v2517_v12 = vpop.permute.xlu0 %2516  ;;  %v2884_v33 = vmul.f32 %v6835_v10, %v2651_v62  ;;  %v6843_v62 = vld [vmem:[#allocation94_spill] sm:$0xff] }
 0x67a   :  { %v2933_v17 = vrot.slane %v2932_v41, 4  ;;  %v6844_v51 = vunpack.c.l.bf16 %v6843_v62  ;;  %v6846_v0 = vunpack.c.h.bf16 %v6843_v62 }
 0x67b   :  { %v2978_v15 = vadd.f32 %v2977_v13, %v2976_v43  ;;  %v3036_v30 = vadd.f32 %v3035_v16, %v2884_v33  ;;  %v2852_v43 = vmul.f32 %v6840_v9, %v2517_v12  ;;  %v2959_v13 = vadd.f32 %v2958_v38, %v2957_v35 }
 0x67c   :  { %v2934_v49 = vadd.f32 %v2933_v17, %v2932_v41  ;;  %v2588_v58 = vpop.permute.xlu1 %2587  ;;  %v2896_v50 = vmul.f32 %v6844_v51, %v6169_v37  ;;  %v2897_v56 = vmul.f32 %v6846_v0, %v6179_v25  ;;  %v6848_v37 = vunpack.c.h.bf16 %v6839_v19  ;;  %v6851_v25 = vld [vmem:[#allocation90_spill] sm:$0xff] }
 0x67d   :  { %v2777_v42 = vpop.permute.xlu0 %2776  ;;  %v2979_v1 = vrot.slane %v2978_v15, 1  ;;  %v2869_v17 = vmul.f32 %v6845_v59, %v2588_v58  ;;  %v6849_v35 = vunpack.c.h.bf16 %v6804_v8  ;;  %v6855_v8 = vunpack.c.h.bf16 %v6851_v25  ;;  %v6863_v0 = vld [vmem:[#allocation102_spill] sm:$0xff] }
 0x67e   :  { %v2935_v53 = vrot.slane %v2934_v49, 2  ;;  %v3053_v26 = vadd.f32 %v6148_v3, %v2896_v50 }
 0x67f   :  { %v2980_v12 = vadd.f32 %v2979_v1, %v2978_v15  ;;  %v2911_v20 = vmul.f32 %v6849_v35, %v6177_v32  ;;  %v6852_v15 = vunpack.c.l.bf16 %v6851_v25  ;;  %v2899_v32 = vmul.f32 %v6855_v8, %v6203_v7 }
 0x680   :  { %v2936_v28 = vadd.f32 %v2935_v53, %v2934_v49  ;;  %v2655_v55 = vpop.permute.xlu1 %2654  ;;  %v2994_v49 = vadd.f32 %v2993_v34, %v2852_v43  ;;  %v2912_v53 = vmul.f32 %v6854_v21, %v6181_v36  ;;  %v3054_v16 = vadd.f32 %v3053_v26, %v2897_v56  ;;  %v6857_v36 = vld [vmem:[#allocation101_spill] sm:$0xff]  ;;  %v6859_v43 = vld [vmem:[#allocation98_spill] sm:$0xff] }
 0x681   :  { %v2885_v6 = vmul.f32 %v6838_v29, %v2655_v55  ;;  %v2584_v48 = vpop.permute.xlu0 %2583  ;;  %v2898_v10 = vmul.f32 %v6852_v15, %v6185_v22  ;;  %v3073_v3 = vadd.f32 %v6161_v11, %v2911_v20  ;;  %v6856_v22 = vunpack.c.h.bf16 %v6853_v4 }
 0x682   :  { %v2937_v39 = vrot.slane %v2936_v28, 1  ;;  %v2868_v41 = vmul.f32 %v6842_v24, %v2584_v48  ;;  %v6858_v29 = vunpack.c.l.bf16 %v6857_v36  ;;  %v6860_v23 = vunpack.c.l.bf16 %v6859_v43 }
 0x683   :  { %v3037_v47 = vadd.f32 %v3036_v30, %v2885_v6  ;;  %v3055_v55 = vadd.f32 %v3054_v16, %v2898_v10  ;;  %v3074_v30 = vadd.f32 %v3073_v3, %v2912_v53  ;;  %v6862_v62 = vunpack.c.h.bf16 %v6859_v43 }
 0x684   :  { %v2938_v57 = vadd.f32 %v2937_v39, %v2936_v28  ;;  %v3015_v18 = vadd.f32 %v3014_v27, %v2868_v41  ;;  %v2913_v28 = vmul.f32 %v6856_v22, %v6195_v61  ;;  %v2914_v6 = vmul.f32 %v6858_v29, %v2777_v42  ;;  %v2722_v27 = vpop.permute.xlu1 %2721 }
 0x685   :  { %v3038_v2 = vrot.slane %v3037_v47, 4  ;;  %v2521_v5 = vpop.permute.xlu0 %2520  ;;  %v3056_v19 = vadd.f32 %v3055_v55, %v2899_v32  ;;  %v6861_v41 = vunpack.c.h.bf16 %v6857_v36  ;;  %v2901_v51 = vmul.f32 %v6862_v62, %v2722_v27 }
 0x686   :  { %v3094_v40 = vsel %vm6847_vm10, %v2959_v13, %v2938_v57  ;;  %v3016_v31 = vadd.f32 %v3015_v18, %v2869_v17  ;;  %v2853_v46 = vmul.f32 %v6848_v37, %v2521_v5  ;;  %v3075_v24 = vadd.f32 %v3074_v30, %v2913_v28 }
 0x687   :  { %v3039_v58 = vadd.f32 %v3038_v2, %v3037_v47  ;;  %v3095_v60 = vsel %vm6850_vm11, %v2980_v12, %v3094_v40  ;;  %v6864_v56 = vunpack.c.l.bf16 %v6863_v0 }
 0x688   :  { %v3017_v33 = vrot.slane %v3016_v31, 4  ;;  %v2995_v54 = vadd.f32 %v2994_v49, %v2853_v46  ;;  %v3076_v47 = vadd.f32 %v3075_v24, %v2914_v6 }
 0x689   :  { %v3040_v44 = vrot.slane %v3039_v58, 2  ;;  %v2781_v45 = vpop.permute.xlu0 %2780 }
 0x68a   :  { %v3018_v14 = vadd.f32 %v3017_v33, %v3016_v31  ;;  %v2996_v38 = vrot.slane %v2995_v54, 4  ;;  %v2915_v61 = vmul.f32 %v6861_v41, %v2781_v45 }
 0x68b   :  { %v3041_v48 = vadd.f32 %v3040_v44, %v3039_v58  ;;  %v6865_v58 = vunpack.c.h.bf16 %v6863_v0 }
 0x68c   :  { %v3019_v63 = vrot.slane %v3018_v14, 2  ;;  %v2997_v1 = vadd.f32 %v2996_v38, %v2995_v54  ;;  %v3077_v2 = vadd.f32 %v3076_v47, %v2915_v61 }
 0x68d   :  { %v2718_v39 = vpop.permute.xlu0 %2717  ;;  %v3042_v42 = vrot.slane %v3041_v48, 1 }
 0x68e   :  { %v3020_v7 = vadd.f32 %v3019_v63, %v3018_v14  ;;  %v2998_v9 = vrot.slane %v2997_v1, 2  ;;  %v2900_v11 = vmul.f32 %v6860_v23, %v2718_v39 }
 0x68f   :  { %v3043_v49 = vadd.f32 %v3042_v42, %v3041_v48 }
 0x690   :  { %v2999_v50 = vadd.f32 %v2998_v9, %v2997_v1  ;;  %v3057_v34 = vadd.f32 %v3056_v19, %v2900_v11  ;;  %v3021_v13 = vrot.slane %v3020_v7, 1 }
 0x691   :  { %v2785_v57 = vpop.permute.xlu0 %2784  ;;  %v2251_v59 = vpop.permute.xlu1 %2250 }
 0x692   :  { %v3000_v17 = vrot.slane %v2999_v50, 1  ;;  %v3058_v18 = vadd.f32 %v3057_v34, %v2901_v51  ;;  %v2916_v12 = vmul.f32 %v6864_v56, %v2785_v57  ;;  %v3022_v31 = vadd.f32 %v3021_v13, %v3020_v7 }
 0x694   :  { %v3001_v5 = vadd.f32 %v3000_v17, %v2999_v50  ;;  %v3059_v40 = vrot.slane %v3058_v18, 4  ;;  %v3078_v37 = vadd.f32 %v3077_v2, %v2916_v12 }
 0x695   :  { %v2789_v46 = vpop.permute.xlu0 %2788  ;;  %v3115_v35 = vpop.permute.xlu1 %3114 }
 0x696   :  { %v3060_v20 = vadd.f32 %v3059_v40, %v3058_v18  ;;  %v2917_v26 = vmul.f32 %v6865_v58, %v2789_v46  ;;  %v3117_v25 = vsub.f32 %v5720_v52, %v3115_v35  ;;  %v3096_v15 = vsel %vm2210_vm0, %v3001_v5, %v3095_v60 }
 0x697   :  { %v3097_v10 = vsel %vm2212_vm12, %v3022_v31, %v3096_v15  ;;  %v2253_v60 = vmul.f32 0.0, %v2251_v59 }
 0x698   :  { %v3061_v33 = vrot.slane %v3060_v20, 2  ;;  %v3079_v54 = vadd.f32 %v3078_v37, %v2917_v26  ;;  %v3118_v4 = vmul.f32 1.442695, %v3117_v25  ;;  %v3098_v21 = vsel %vm2214_vm4, %v3043_v49, %v3097_v10 }
 0x69a   :  { %v3062_v53 = vadd.f32 %v3061_v33, %v3060_v20  ;;  %v3080_v44 = vrot.slane %v3079_v54, 4  ;;  %3981 = vpow2.f32 %v3118_v4 }
 0x69c   :  { %v3063_v45 = vrot.slane %v3062_v53, 1  ;;  %v3081_v16 = vadd.f32 %v3080_v44, %v3079_v54 }
 0x69d   :  { %v3123_v63 = vpop.permute.xlu0 %3122 }
 0x69e   :  { %v3082_v8 = vrot.slane %v3081_v16, 2  ;;  %v3064_v32 = vadd.f32 %v3063_v45, %v3062_v53 }
 0x6a0   :  { %v3083_v14 = vadd.f32 %v3082_v8, %v3081_v16  ;;  %v3099_v38 = vsel %vm2216_vm5, %v3064_v32, %v3098_v21 }
 0x6a2   :  { %v3084_v52 = vrot.slane %v3083_v14, 1 }
 0x6a4   :  { %v3085_v3 = vadd.f32 %v3084_v52, %v3083_v14 }
 0x6a6   :  { %v3100_v22 = vsel %vm2218_vm6, %v3085_v3, %v3099_v38 }
 0x6a7   :  { %v3982_v28 = vpop.eup %3981  ;;  %v3102_v55 = vadd.f32 %v3100_v22, %v2253_v60 }
 0x6a8   :  { %v3125_v1 = vmul.f32 %v3982_v28, %v3123_v63 }
 0x6a9   :  { %v3128_v30 = vmul.f32 %v3123_v63, %v3102_v55 }
 0x6aa   :  { %3126 = vst [vmem:[#allocation25] sm:$0xff] %v3125_v1 }
 0x6ab   :  { %3904 = vmatmul.mubr.f32.vlgmr.msra.gmra.mxu1 %v3128_v30 }
 0x6ac   :  { %4156 = shalt.err (!%p4153_p2)
}
 0x6ad   :  { %3332 = dma.vmem_to_hbm [thread:$0]  %s3330_s6, 128, %s6306_s12, [#allocation24]  }
 0x6ae   :  { %s4239_s18 = smov [#allocation25]  }
 0x6af   :  { %s3339_s19 = sshll.u32 %s4239_s18, 4  ;;  %s3340_s19 = int_to_ptr.vmem [resolvable:$true] %s3339_s19 }
 0x6b0   :  { %s4165_s20 = scalar_lea.vmem %s3340_s19, 128  ;;  %p4170_p4 = scmp.lt.s32.totalorder %s3340_s19, %s3340_s19 }
 0x6b1   :  { %p4166_p3 = scmp.ne.s32.totalorder %s3340_s19, %s4165_s20  ;;  %p4171_p5 = scmp.lt.s32.totalorder %s4165_s20, %s4165_s20 }
 0x6b3   :  { %p4172_p6 = por %p4171_p5, %p4170_p4 }
 0x6b5   :  { %p4173_p7 = pnand %p4172_p6, %p4166_p3 }
 0x6b7   :  { %4176 = shalt.err (!%p4173_p7)
}
 0x6b8   :  { %3342 = dma.vmem_to_hbm [thread:$0]  %s3340_s19, 128, %s6307_s13, [#allocation24]   ;;  %v3361_v29 = vld [vmem:[%s6304_s10] ss:$0 sm:$0xff] }
 0x6b9   :  { %v6866_v6 = vld [vmem:[#allocation46_spill] sm:$0xff]  ;;  %s4240_s12 = smov [#allocation22]  }
 0x6ba   :  { %s3319_s0 = sshll.u32 %s4240_s12, 4  ;;  %s3320_s0 = int_to_ptr.vmem [resolvable:$true] %s3319_s0 }
 0x6bb   :  { %s4185_s3 = scalar_lea.vmem %s3320_s0, 128  ;;  %p4190_p9 = scmp.lt.s32.totalorder %s3320_s0, %s3320_s0 }
 0x6bc   :  { %p4186_p8 = scmp.ne.s32.totalorder %s3320_s0, %s4185_s3  ;;  %p4191_p10 = scmp.lt.s32.totalorder %s4185_s3, %s4185_s3 }
 0x6be   :  { %p4192_p11 = por %p4191_p10, %p4190_p9 }
 0x6c0   :  { %p4193_p12 = pnand %p4192_p11, %p4186_p8 }
 0x76b   :  { %v3228_v36 = vpop.f32.mrf.mxu1 }
 0x76c   :  { %v3299_v48 = vadd.f32 %v6866_v6, %v3228_v36 }
 0x76d   :  { %v3905_v27 = vpop.f32.mrf.mxu1 }
 0x76e   :  { %v3309_v39 = vadd.f32 %v3361_v29, %v3299_v48 }
 0x770   :  { %3983 = vtanh.f32 %v3309_v39 }
 0x77d   :  { %v3984_v19 = vpop.eup %3983 }
 0x77e   :  { %3311 = vst [vmem:[#allocation22] sm:$0xff] %v3984_v19 }
 0x77f   :  { %4196 = shalt.err (!%p4193_p12)
}
 0x780   :  { %3322 = dma.vmem_to_hbm [thread:$0]  %s3320_s0, 128, %s6305_s11, [#allocation10]  }
 0x781   :  { %4215 = dma.done.wait [#allocation10], 128  }
 0x782   :  { %4216 = vsyncadd [#allocation10], 4294967168 }
 0x783   :  { %4217 = dma.done.wait [#allocation24], 256  }
 0x784   :  { %4218 = vsyncadd [#allocation24], 4294967040 }
 0x785   :  { %3352 = vsyncpa [#allocation9], 1 }
 0x786   :  { %3353 = vsyncpa [#allocation12], 1 }
 0x787   :  { %3354 = vsyncpa [#allocation15], 1 }
 0x788   :  { %3355 = vsyncpa [#allocation18], 1 }
 0x789   :  { %3356 = vsyncpa [#allocation21], 1 }
 0x78a   :  { %3357 = vsyncpa [#allocation10], 1 }
 0x78b   :  { %3358 = vsyncpa [#allocation24], 1 }

</bundles_post_ra>
